<compile_context>
chip_gen: v7x
topology: tpu7x:2x2x1
jax: 0.10.0
libtpu: 0.0.40
codegen_flags: <defaults>
</compile_context>

<pallas_src>
import functools

import numpy as np
import jax
import jax.numpy as jnp
from jax import lax
from jax.experimental import pallas as pl
from jax.experimental.pallas import tpu as pltpu

# ----------------------------- constants -------------------------------------
IM = 16          # input image size (H = W = 16)
C2 = 8           # backbone layer2 channels (stride 2 -> 8x8)
C3 = 16          # backbone layer3 channels (stride 4 -> 4x4)
CC = 16          # classification feature channels

_F32 = jnp.float32
_BF16 = jnp.bfloat16


# ----------------------- host-side constant builders --------------------------
def _tap_selectors(h, w, k=3, stride=2, pad=1):
    """Per-tap one-hot gather matrices turning a 3x3 stride-2 pad-1 conv into
    9 matmuls: sel[t] @ X gathers input pixel (stride*i - pad + dy,
    stride*j - pad + dx) for every output pixel; out-of-bounds taps are
    all-zero rows (implicit zero padding)."""
    ho = (h + 2 * pad - k) // stride + 1
    wo = (w + 2 * pad - k) // stride + 1
    sel = np.zeros((k * k, ho * wo, h * w), np.float32)
    for dy in range(k):
        for dx in range(k):
            t = dy * k + dx
            for i in range(ho):
                y = i * stride - pad + dy
                if y < 0 or y >= h:
                    continue
                for j in range(wo):
                    x = j * stride - pad + dx
                    if x < 0 or x >= w:
                        continue
                    sel[t, i * wo + j, y * w + x] = 1.0
    return sel, ho, wo


def _avg_pool2x2_matrix(h, w):
    """(h//2 * w//2, h*w) matrix implementing 2x2 average pooling as a matmul."""
    ho, wo = h // 2, w // 2
    p = np.zeros((ho * wo, h * w), np.float32)
    for yy in range(ho):
        for xx in range(wo):
            for dy in range(2):
                for dx in range(2):
                    p[yy * wo + xx, (2 * yy + dy) * w + (2 * xx + dx)] = 0.25
    return p


def _blockdiag_tap_weights(w, n_images):
    """Conv weight (Cout, Cin, 3, 3) -> (9, n_images*Cin, n_images*Cout)
    block-diagonal per-tap weights (image-batched, lane-dense output)."""
    cout, cin, k, _ = w.shape
    eye = jnp.eye(n_images, dtype=w.dtype)
    taps = [jnp.kron(eye, w[:, :, dy, dx].T) for dy in range(k) for dx in range(k)]
    return jnp.stack(taps, axis=0)


def _normalized_roi_masks(bb, h, w, im_size):
    """Hard ROI masks over feature-cell centers, normalized so that a plain
    (feat * mask).sum(spatial) is the masked ROI mean.  Channel independent:
    shape (h*w, n_train_frames).
    TODO(synk): PrRoIPool2D is approximated by this hard masked ROI mean."""
    stride = im_size / h
    cy = (jnp.arange(h, dtype=_F32) + 0.5) * stride
    cx = (jnp.arange(w, dtype=_F32) + 0.5) * stride
    x0 = bb[:, 0][:, None, None]
    y0 = bb[:, 1][:, None, None]
    x1 = x0 + bb[:, 2][:, None, None]
    y1 = y0 + bb[:, 3][:, None, None]
    in_x = (cx[None, None, :] >= x0) & (cx[None, None, :] < x1)
    in_y = (cy[None, :, None] >= y0) & (cy[None, :, None] < y1)
    m = (in_x & in_y).astype(_F32).reshape(bb.shape[0], h * w)
    m = m / jnp.maximum(jnp.sum(m, axis=1, keepdims=True), 1e-6)
    return m.T


# ----------------------------- fused Pallas kernel ----------------------------
def _corner_dimp_kernel(x_ref, sel1_ref, w1_ref, b1_ref, sel2_ref, w2_ref, b2_ref,
                        wc_ref, bc_ref, m2_ref, m3_ref, pool_ref, wco_ref, bco_ref,
                        xy_ref, scores_ref, corners_ref,
                        *, n_train, n_test, n_seq, c2, c3, cc, corner_stride):
    b_all = (n_train + n_test) * n_seq
    b_tr = n_train * n_seq
    taps = sel1_ref.shape[0]
    h3w3 = pool_ref.shape[0]

    def bdot(a, b):
        # MXU matmul: bf16 operands, f32 accumulation.
        return jnp.dot(a.astype(_BF16), b.astype(_BF16), preferred_element_type=_F32)

    # ---- backbone conv1 (3x3 s2 p1), all train+test images in one pass ------
    xb = x_ref[...].astype(_BF16)                          # (H*W, b_all*3)
    acc = jnp.zeros((sel1_ref.shape[1], b_all * c2), _F32)
    for t in range(taps):
        acc = acc + bdot(bdot(sel1_ref[t], xb), w1_ref[t])
    l2 = jnp.maximum(acc + b1_ref[...], 0.0)               # (H2*W2, b_all*c2)

    # ---- backbone conv2 (3x3 s2 p1) ------------------------------------------
    l2b = l2.astype(_BF16)
    acc = jnp.zeros((h3w3, b_all * c3), _F32)
    for t in range(taps):
        acc = acc + bdot(bdot(sel2_ref[t], l2b), w2_ref[t])
    l3 = jnp.maximum(acc + b2_ref[...], 0.0)               # (H3*W3, b_all*c3)

    # ---- classification features (1x1 conv, block-diag over images) ----------
    clf = jnp.maximum(bdot(l3, wc_ref[...]) + bc_ref[...], 0.0)   # (H3*W3, b_all*cc)

    m2 = m2_ref[...]                                       # (H2*W2, b_tr)
    m3 = m3_ref[...]                                       # (H3*W3, b_tr)
    poolm = pool_ref[...]                                  # (H3*W3, H2*W2)
    wco = wco_ref[...]                                     # (c2+c3, 4)
    bco = bco_ref[...]                                     # (1, 4)
    xy4 = xy_ref[...]                                      # (H3*W3, 4) = [x, y, x, y]

    score_rows = [None] * (n_test * n_seq)
    corner_rows = [None] * (n_test * n_seq)

    for s in range(n_seq):
        # --- DiMP filter + correlation reference kernels for this sequence ----
        # TODO(synk): the steepest-descent filter optimizer is approximated by
        # mean pooling of the train classification features.
        fsum = jnp.zeros((1, cc), _F32)
        r2sum = jnp.zeros((1, c2), _F32)
        r3sum = jnp.zeros((1, c3), _F32)
        for i in range(n_train):
            b = i * n_seq + s
            fsum = fsum + jnp.sum(clf[:, b * cc:(b + 1) * cc], axis=0, keepdims=True)
            r2sum = r2sum + jnp.sum(l2[:, b * c2:(b + 1) * c2] * m2[:, b:b + 1],
                                    axis=0, keepdims=True)
            r3sum = r3sum + jnp.sum(l3[:, b * c3:(b + 1) * c3] * m3[:, b:b + 1],
                                    axis=0, keepdims=True)
        filt = fsum * (1.0 / float(n_train * h3w3))        # (1, cc)
        ref2 = r2sum * (1.0 / float(n_train))              # (1, c2)
        ref3 = r3sum * (1.0 / float(n_train))              # (1, c3)

        for j in range(n_test):
            b = b_tr + j * n_seq + s
            out_row = j * n_seq + s

            # --- target classification scores: filter . test clf features ----
            clf_b = clf[:, b * cc:(b + 1) * cc]            # (H3*W3, cc)
            score_rows[out_row] = lax.dot_general(
                filt, clf_b, (((1,), (1,)), ((), ())),
                preferred_element_type=_F32)               # (1, H3*W3) lane-dense row

            # --- corr-fused bb-regressor features + corner prediction --------
            f3 = l3[:, b * c3:(b + 1) * c3] * ref3         # (H3*W3, c3)
            f2 = l2[:, b * c2:(b + 1) * c2] * ref2         # (H2*W2, c2)
            f2p = bdot(poolm, f2)                          # (H3*W3, c2) 2x2 avg pool
            # corner-head columns are duplicated as [tl, tl, br, br] so the
            # soft-argmax expectation emits [tl_x, tl_y, br_x, br_y] directly.
            hm = bdot(f2p, wco[:c2, :]) + bdot(f3, wco[c2:, :]) + bco   # (H3*W3, 4)
            hm = hm - jnp.max(hm, axis=0, keepdims=True)
            e = jnp.exp(hm)
            p = e * pl.reciprocal(jnp.sum(e, axis=0, keepdims=True), approx=True)
            exp_xy = jnp.sum(p * xy4, axis=0, keepdims=True)            # (1, 4)
            corner_rows[out_row] = (exp_xy + 0.5) * corner_stride

    scores_ref[...] = jnp.concatenate(score_rows, axis=0)      # (b_te, H3*W3)
    corners_ref[...] = jnp.concatenate(corner_rows, axis=0)    # (b_te, 4)


# ----------------------------- fused forward wrapper --------------------------
@functools.partial(jax.jit, static_argnames=("corner_stride",))
def _corner_dimp_forward(params, train_imgs, test_imgs, train_bb, corner_stride):
    n_train, n_seq = train_imgs.shape[0], train_imgs.shape[1]
    n_test = test_imgs.shape[0]
    im = train_imgs.shape[-1]
    b_tr = n_train * n_seq
    b_te = n_test * n_seq
    b_all = b_tr + b_te

    c2 = params["w1"].shape[0]
    c3 = params["w2"].shape[0]
    cc = params["wc"].shape[0]

    # --- single boundary layout change: NCHW images -> (H*W, b_all*3) slab ----
    imgs = jnp.concatenate(
        [train_imgs.reshape((-1,) + train_imgs.shape[-3:]),
         test_imgs.reshape((-1,) + test_imgs.shape[-3:])], axis=0)   # (b_all,3,im,im)
    x_all = imgs.transpose(2, 3, 0, 1).reshape(im * im, b_all * 3)

    # --- static gather / pooling / coordinate constants (baked into trace) ----
    sel1_np, h2, w2 = _tap_selectors(im, im)
    sel2_np, h3, w3 = _tap_selectors(h2, w2)
    pool_np = _avg_pool2x2_matrix(h2, w2)
    pidx = np.arange(h3 * w3)
    coords4_np = np.stack([pidx % w3, pidx // w3, pidx % w3, pidx // w3],
                          axis=1).astype(np.float32)

    sel1 = jnp.asarray(sel1_np, _BF16)
    sel2 = jnp.asarray(sel2_np, _BF16)
    poolm = jnp.asarray(pool_np, _BF16)
    coords4 = jnp.asarray(coords4_np, _F32)

    # --- block-diagonal (image-batched) weights: lane-dense N = b_all*Cout ----
    w1blk = _blockdiag_tap_weights(params["w1"], b_all).astype(_BF16)
    w2blk = _blockdiag_tap_weights(params["w2"], b_all).astype(_BF16)
    wcblk = jnp.kron(jnp.eye(b_all, dtype=_F32), params["wc"].T).astype(_BF16)
    b1t = jnp.tile(params["b1"], b_all)[None, :]
    b2t = jnp.tile(params["b2"], b_all)[None, :]
    bct = jnp.tile(params["bc"], b_all)[None, :]

    dup = jnp.array([0, 0, 1, 1])
    wco4 = params["w_corner"].T[:, dup].astype(_BF16)      # (c2+c3, 4)
    bco4 = params["b_corner"][dup][None, :]                # (1, 4)

    # --- channel-independent, pre-normalized ROI masks ------------------------
    bb = train_bb.reshape(-1, 4)
    m2n = _normalized_roi_masks(bb, h2, w2, float(im))     # (H2*W2, b_tr)
    m3n = _normalized_roi_masks(bb, h3, w3, float(im))     # (H3*W3, b_tr)

    inputs = (x_all, sel1, w1blk, b1t, sel2, w2blk, b2t, wcblk, bct,
              m2n, m3n, poolm, wco4, bco4, coords4)

    def _zero_map(nd):
        return lambda i: (0,) * nd

    kernel = functools.partial(
        _corner_dimp_kernel, n_train=n_train, n_test=n_test, n_seq=n_seq,
        c2=c2, c3=c3, cc=cc, corner_stride=float(corner_stride))

    scores, corners = pl.pallas_call(
        kernel,
        out_shape=(jax.ShapeDtypeStruct((b_te, h3 * w3), _F32),
                   jax.ShapeDtypeStruct((b_te, 4), _F32)),
        grid=(1,),
        in_specs=[pl.BlockSpec(a.shape, _zero_map(a.ndim)) for a in inputs],
        out_specs=(pl.BlockSpec((b_te, h3 * w3), _zero_map(2)),
                   pl.BlockSpec((b_te, 4), _zero_map(2))),
        compiler_params=pltpu.CompilerParams(dimension_semantics=("arbitrary",)),
    )(*inputs)

    target_scores = scores.reshape(n_test, n_seq, h3, w3)
    return target_scores, corners


# ----------------------------- synthetic submodules ---------------------------
class Backbone:
    """Tiny 2-stage backbone (two 3x3 stride-2 convs) -> {'layer2','layer3'}."""

    def __init__(self, key):
        k1, k2 = jax.random.split(key)
        self.w1 = 0.1 * jax.random.normal(k1, (C2, 3, 3, 3), _F32)
        self.b1 = jnp.zeros((C2,), _F32)
        self.w2 = 0.1 * jax.random.normal(k2, (C3, C2, 3, 3), _F32)
        self.b2 = jnp.zeros((C3,), _F32)


class Classifier:
    """Simplified DiMP classifier: 1x1 clf-feat conv + mean-pooled train filter
    + filter/test-feature correlation (computed inside the fused kernel)."""

    def __init__(self, key):
        self.wc = 0.1 * jax.random.normal(key, (CC, C3), _F32)
        self.bc = jnp.zeros((CC,), _F32)


class CorrModule:
    """Reference-kernel extraction and channel-wise correlation fusion
    (configuration holder; the computation lives inside the fused kernel)."""

    def __init__(self, im_size, n_seq):
        self.im_size = float(im_size)
        self.n_seq = n_seq


class CornerPredictor:
    """1x1 conv -> two corner heat-maps -> soft-argmax -> (tl_x, tl_y, br_x, br_y)."""

    def __init__(self, key, c_in, feat_size, im_size):
        self.w = 0.1 * jax.random.normal(key, (2, c_in), _F32)
        self.b = jnp.zeros((2,), _F32)
        self.stride = float(im_size) / float(feat_size)


# ----------------------------- CornerDiMPnet ----------------------------------
class CornerDiMPnet:
    """CornerDiMP network.  The training-time forward() runs as one fused
    Pallas TPU kernel (backbone + classifier + corr module + corner head)."""

    def __init__(self, feature_extractor, classifier, corr_module, bb_regressor,
                 classification_layer, bb_regressor_layer):
        self.feature_extractor = feature_extractor
        self.classifier = classifier
        self.corr_module = corr_module
        self.bb_regressor = bb_regressor
        self.classification_layer = ([classification_layer]
                                     if isinstance(classification_layer, str)
                                     else classification_layer)
        self.bb_regressor_layer = bb_regressor_layer
        self.output_layers = sorted(list(set(self.classification_layer
                                             + self.bb_regressor_layer)))

    def _params(self):
        return dict(w1=self.feature_extractor.w1, b1=self.feature_extractor.b1,
                    w2=self.feature_extractor.w2, b2=self.feature_extractor.b2,
                    wc=self.classifier.wc, bc=self.classifier.bc,
                    w_corner=self.bb_regressor.w, b_corner=self.bb_regressor.b)

    def forward(self, train_imgs, test_imgs, train_bb, *args, **kwargs):
        assert train_imgs.ndim == 5 and test_imgs.ndim == 5, 'Expect 5 dimensional inputs'
        # The fused kernel hard-wires the standard CornerDiMP layer routing.
        assert self.classification_layer == ['layer3']
        assert self.bb_regressor_layer == ['layer2', 'layer3']
        return _corner_dimp_forward(self._params(), train_imgs, test_imgs, train_bb,
                                    corner_stride=self.bb_regressor.stride)

    # TODO(synk): tracking-time entry points (forward_ref / forward_test /
    # extract_backbone_features) are folded into the fused training forward and
    # are not exposed as separate Pallas kernels here.


# ----------------------------- main -------------------------------------------
if __name__ == "__main__":
    n_train, n_test, seq = 2, 1, 2

    key = jax.random.PRNGKey(0)
    k_img1, k_img2, k_bb = jax.random.split(key, 3)
    train_imgs = jax.random.normal(k_img1, (n_train, seq, 3, IM, IM), _F32)
    test_imgs = jax.random.normal(k_img2, (n_test, seq, 3, IM, IM), _F32)
    u = jax.random.uniform(k_bb, (n_train, seq, 4), _F32)
    xy = 2.0 + 4.0 * u[..., :2]
    wh = 5.0 + 3.0 * u[..., 2:]
    train_bb = jnp.concatenate([xy, wh], axis=-1)            # (n_train, seq, 4)

    pkey = jax.random.PRNGKey(42)
    kb, kc, kr = jax.random.split(pkey, 3)
    net = CornerDiMPnet(
        feature_extractor=Backbone(kb),
        classifier=Classifier(kc),
        corr_module=CorrModule(im_size=IM, n_seq=seq),
        bb_regressor=CornerPredictor(kr, c_in=C2 + C3, feat_size=IM // 4, im_size=IM),
        classification_layer='layer3',
        bb_regressor_layer=['layer2', 'layer3'],
    )

    target_scores, corner_pred = net.forward(train_imgs, test_imgs, train_bb)
    jax.block_until_ready((target_scores, corner_pred))

    assert target_scores.shape == (n_test, seq, 4, 4)
    assert corner_pred.shape == (n_test * seq, 4)
    assert jnp.all(jnp.isfinite(target_scores)) and jnp.all(jnp.isfinite(corner_pred))
    print("KERNEL_OK")
</pallas_src>

<mosaic_0001>
module attributes {stable_mosaic.version = 11 : i64} {
  func.func @_corner_dimp_kernel(%arg0: i32, %arg1: memref<256x18xf32, #tpu.memory_space<vmem>>, %arg2: memref<9x64x256xbf16, #tpu.memory_space<vmem>>, %arg3: memref<9x18x48xbf16, #tpu.memory_space<vmem>>, %arg4: memref<1x48xf32, #tpu.memory_space<vmem>>, %arg5: memref<9x16x64xbf16, #tpu.memory_space<vmem>>, %arg6: memref<9x48x96xbf16, #tpu.memory_space<vmem>>, %arg7: memref<1x96xf32, #tpu.memory_space<vmem>>, %arg8: memref<96x96xbf16, #tpu.memory_space<vmem>>, %arg9: memref<1x96xf32, #tpu.memory_space<vmem>>, %arg10: memref<64x4xf32, #tpu.memory_space<vmem>>, %arg11: memref<16x4xf32, #tpu.memory_space<vmem>>, %arg12: memref<16x64xbf16, #tpu.memory_space<vmem>>, %arg13: memref<24x4xbf16, #tpu.memory_space<vmem>>, %arg14: memref<1x4xf32, #tpu.memory_space<vmem>>, %arg15: memref<16x4xf32, #tpu.memory_space<vmem>>, %arg16: memref<2x16xf32, #tpu.memory_space<vmem>>, %arg17: memref<2x4xf32, #tpu.memory_space<vmem>>) attributes {dimension_semantics = [#tpu.dimension_semantics<arbitrary>], iteration_bounds = array<i64: 1>, scalar_prefetch = 0 : i64, scratch_operands = 0 : i64, tpu.core_type = #tpu.core_type<tc>, window_params = [{pipeline_mode = #tpu.pipeline_mode<synchronous>, transform_indices = @transform_0, window_bounds = array<i64: 256, 18>}, {pipeline_mode = #tpu.pipeline_mode<synchronous>, transform_indices = @transform_1, window_bounds = array<i64: 9, 64, 256>}, {pipeline_mode = #tpu.pipeline_mode<synchronous>, transform_indices = @transform_2, window_bounds = array<i64: 9, 18, 48>}, {pipeline_mode = #tpu.pipeline_mode<synchronous>, transform_indices = @transform_3, window_bounds = array<i64: 1, 48>}, {pipeline_mode = #tpu.pipeline_mode<synchronous>, transform_indices = @transform_4, window_bounds = array<i64: 9, 16, 64>}, {pipeline_mode = #tpu.pipeline_mode<synchronous>, transform_indices = @transform_5, window_bounds = array<i64: 9, 48, 96>}, {pipeline_mode = #tpu.pipeline_mode<synchronous>, transform_indices = @transform_6, window_bounds = array<i64: 1, 96>}, {pipeline_mode = #tpu.pipeline_mode<synchronous>, transform_indices = @transform_7, window_bounds = array<i64: 96, 96>}, {pipeline_mode = #tpu.pipeline_mode<synchronous>, transform_indices = @transform_8, window_bounds = array<i64: 1, 96>}, {pipeline_mode = #tpu.pipeline_mode<synchronous>, transform_indices = @transform_9, window_bounds = array<i64: 64, 4>}, {pipeline_mode = #tpu.pipeline_mode<synchronous>, transform_indices = @transform_10, window_bounds = array<i64: 16, 4>}, {pipeline_mode = #tpu.pipeline_mode<synchronous>, transform_indices = @transform_11, window_bounds = array<i64: 16, 64>}, {pipeline_mode = #tpu.pipeline_mode<synchronous>, transform_indices = @transform_12, window_bounds = array<i64: 24, 4>}, {pipeline_mode = #tpu.pipeline_mode<synchronous>, transform_indices = @transform_13, window_bounds = array<i64: 1, 4>}, {pipeline_mode = #tpu.pipeline_mode<synchronous>, transform_indices = @transform_14, window_bounds = array<i64: 16, 4>}, {pipeline_mode = #tpu.pipeline_mode<synchronous>, transform_indices = @transform_15, window_bounds = array<i64: 2, 16>}, {pipeline_mode = #tpu.pipeline_mode<synchronous>, transform_indices = @transform_16, window_bounds = array<i64: 2, 4>}]} {
    %c0 = arith.constant 0 : index
    %c0_0 = arith.constant 0 : index
    %0 = vector.load %arg1[%c0, %c0_0] : memref<256x18xf32, #tpu.memory_space<vmem>>, vector<256x18xf32>
    %1 = arith.truncf %0 : vector<256x18xf32> to vector<256x18xbf16>
    %cst = arith.constant 0.000000e+00 : f32
    %2 = vector.broadcast %cst : f32 to vector<64x48xf32>
    %c0_1 = arith.constant 0 : index
    %c0_2 = arith.constant 0 : index
    %c0_3 = arith.constant 0 : index
    %3 = vector.load %arg2[%c0_1, %c0_2, %c0_3] : memref<9x64x256xbf16, #tpu.memory_space<vmem>>, vector<1x64x256xbf16>
    %4 = vector.shape_cast %3 : vector<1x64x256xbf16> to vector<64x256xbf16>
    %cst_4 = arith.constant dense<0.000000e+00> : vector<64x18xf32>
    %5 = tpu.matmul %4, %1, %cst_4 {dimension_numbers = #tpu.dot_dimension_numbers<[1], [0], [0], [1], [0, 0, 1, 1], [], []>} : vector<64x256xbf16>, vector<256x18xbf16>, vector<64x18xf32> -> vector<64x18xf32>
    %c0_5 = arith.constant 0 : index
    %c0_6 = arith.constant 0 : index
    %c0_7 = arith.constant 0 : index
    %6 = vector.load %arg3[%c0_5, %c0_6, %c0_7] : memref<9x18x48xbf16, #tpu.memory_space<vmem>>, vector<1x18x48xbf16>
    %7 = vector.shape_cast %6 : vector<1x18x48xbf16> to vector<18x48xbf16>
    %8 = arith.truncf %5 : vector<64x18xf32> to vector<64x18xbf16>
    %cst_8 = arith.constant dense<0.000000e+00> : vector<64x48xf32>
    %9 = tpu.matmul %8, %7, %cst_8 {dimension_numbers = #tpu.dot_dimension_numbers<[1], [0], [0], [1], [0, 0, 1, 1], [], []>} : vector<64x18xbf16>, vector<18x48xbf16>, vector<64x48xf32> -> vector<64x48xf32>
    %10 = arith.addf %2, %9 : vector<64x48xf32>
    %c1 = arith.constant 1 : index
    %c0_9 = arith.constant 0 : index
    %c0_10 = arith.constant 0 : index
    %11 = vector.load %arg2[%c1, %c0_9, %c0_10] : memref<9x64x256xbf16, #tpu.memory_space<vmem>>, vector<1x64x256xbf16>
    %12 = vector.shape_cast %11 : vector<1x64x256xbf16> to vector<64x256xbf16>
    %cst_11 = arith.constant dense<0.000000e+00> : vector<64x18xf32>
    %13 = tpu.matmul %12, %1, %cst_11 {dimension_numbers = #tpu.dot_dimension_numbers<[1], [0], [0], [1], [0, 0, 1, 1], [], []>} : vector<64x256xbf16>, vector<256x18xbf16>, vector<64x18xf32> -> vector<64x18xf32>
    %c1_12 = arith.constant 1 : index
    %c0_13 = arith.constant 0 : index
    %c0_14 = arith.constant 0 : index
    %14 = vector.load %arg3[%c1_12, %c0_13, %c0_14] : memref<9x18x48xbf16, #tpu.memory_space<vmem>>, vector<1x18x48xbf16>
    %15 = vector.shape_cast %14 : vector<1x18x48xbf16> to vector<18x48xbf16>
    %16 = arith.truncf %13 : vector<64x18xf32> to vector<64x18xbf16>
    %cst_15 = arith.constant dense<0.000000e+00> : vector<64x48xf32>
    %17 = tpu.matmul %16, %15, %cst_15 {dimension_numbers = #tpu.dot_dimension_numbers<[1], [0], [0], [1], [0, 0, 1, 1], [], []>} : vector<64x18xbf16>, vector<18x48xbf16>, vector<64x48xf32> -> vector<64x48xf32>
    %18 = arith.addf %10, %17 : vector<64x48xf32>
    %c2 = arith.constant 2 : index
    %c0_16 = arith.constant 0 : index
    %c0_17 = arith.constant 0 : index
    %19 = vector.load %arg2[%c2, %c0_16, %c0_17] : memref<9x64x256xbf16, #tpu.memory_space<vmem>>, vector<1x64x256xbf16>
    %20 = vector.shape_cast %19 : vector<1x64x256xbf16> to vector<64x256xbf16>
    %cst_18 = arith.constant dense<0.000000e+00> : vector<64x18xf32>
    %21 = tpu.matmul %20, %1, %cst_18 {dimension_numbers = #tpu.dot_dimension_numbers<[1], [0], [0], [1], [0, 0, 1, 1], [], []>} : vector<64x256xbf16>, vector<256x18xbf16>, vector<64x18xf32> -> vector<64x18xf32>
    %c2_19 = arith.constant 2 : index
    %c0_20 = arith.constant 0 : index
    %c0_21 = arith.constant 0 : index
    %22 = vector.load %arg3[%c2_19, %c0_20, %c0_21] : memref<9x18x48xbf16, #tpu.memory_space<vmem>>, vector<1x18x48xbf16>
    %23 = vector.shape_cast %22 : vector<1x18x48xbf16> to vector<18x48xbf16>
    %24 = arith.truncf %21 : vector<64x18xf32> to vector<64x18xbf16>
    %cst_22 = arith.constant dense<0.000000e+00> : vector<64x48xf32>
    %25 = tpu.matmul %24, %23, %cst_22 {dimension_numbers = #tpu.dot_dimension_numbers<[1], [0], [0], [1], [0, 0, 1, 1], [], []>} : vector<64x18xbf16>, vector<18x48xbf16>, vector<64x48xf32> -> vector<64x48xf32>
    %26 = arith.addf %18, %25 : vector<64x48xf32>
    %c3 = arith.constant 3 : index
    %c0_23 = arith.constant 0 : index
    %c0_24 = arith.constant 0 : index
    %27 = vector.load %arg2[%c3, %c0_23, %c0_24] : memref<9x64x256xbf16, #tpu.memory_space<vmem>>, vector<1x64x256xbf16>
    %28 = vector.shape_cast %27 : vector<1x64x256xbf16> to vector<64x256xbf16>
    %cst_25 = arith.constant dense<0.000000e+00> : vector<64x18xf32>
    %29 = tpu.matmul %28, %1, %cst_25 {dimension_numbers = #tpu.dot_dimension_numbers<[1], [0], [0], [1], [0, 0, 1, 1], [], []>} : vector<64x256xbf16>, vector<256x18xbf16>, vector<64x18xf32> -> vector<64x18xf32>
    %c3_26 = arith.constant 3 : index
    %c0_27 = arith.constant 0 : index
    %c0_28 = arith.constant 0 : index
    %30 = vector.load %arg3[%c3_26, %c0_27, %c0_28] : memref<9x18x48xbf16, #tpu.memory_space<vmem>>, vector<1x18x48xbf16>
    %31 = vector.shape_cast %30 : vector<1x18x48xbf16> to vector<18x48xbf16>
    %32 = arith.truncf %29 : vector<64x18xf32> to vector<64x18xbf16>
    %cst_29 = arith.constant dense<0.000000e+00> : vector<64x48xf32>
    %33 = tpu.matmul %32, %31, %cst_29 {dimension_numbers = #tpu.dot_dimension_numbers<[1], [0], [0], [1], [0, 0, 1, 1], [], []>} : vector<64x18xbf16>, vector<18x48xbf16>, vector<64x48xf32> -> vector<64x48xf32>
    %34 = arith.addf %26, %33 : vector<64x48xf32>
    %c4 = arith.constant 4 : index
    %c0_30 = arith.constant 0 : index
    %c0_31 = arith.constant 0 : index
    %35 = vector.load %arg2[%c4, %c0_30, %c0_31] : memref<9x64x256xbf16, #tpu.memory_space<vmem>>, vector<1x64x256xbf16>
    %36 = vector.shape_cast %35 : vector<1x64x256xbf16> to vector<64x256xbf16>
    %cst_32 = arith.constant dense<0.000000e+00> : vector<64x18xf32>
    %37 = tpu.matmul %36, %1, %cst_32 {dimension_numbers = #tpu.dot_dimension_numbers<[1], [0], [0], [1], [0, 0, 1, 1], [], []>} : vector<64x256xbf16>, vector<256x18xbf16>, vector<64x18xf32> -> vector<64x18xf32>
    %c4_33 = arith.constant 4 : index
    %c0_34 = arith.constant 0 : index
    %c0_35 = arith.constant 0 : index
    %38 = vector.load %arg3[%c4_33, %c0_34, %c0_35] : memref<9x18x48xbf16, #tpu.memory_space<vmem>>, vector<1x18x48xbf16>
    %39 = vector.shape_cast %38 : vector<1x18x48xbf16> to vector<18x48xbf16>
    %40 = arith.truncf %37 : vector<64x18xf32> to vector<64x18xbf16>
    %cst_36 = arith.constant dense<0.000000e+00> : vector<64x48xf32>
    %41 = tpu.matmul %40, %39, %cst_36 {dimension_numbers = #tpu.dot_dimension_numbers<[1], [0], [0], [1], [0, 0, 1, 1], [], []>} : vector<64x18xbf16>, vector<18x48xbf16>, vector<64x48xf32> -> vector<64x48xf32>
    %42 = arith.addf %34, %41 : vector<64x48xf32>
    %c5 = arith.constant 5 : index
    %c0_37 = arith.constant 0 : index
    %c0_38 = arith.constant 0 : index
    %43 = vector.load %arg2[%c5, %c0_37, %c0_38] : memref<9x64x256xbf16, #tpu.memory_space<vmem>>, vector<1x64x256xbf16>
    %44 = vector.shape_cast %43 : vector<1x64x256xbf16> to vector<64x256xbf16>
    %cst_39 = arith.constant dense<0.000000e+00> : vector<64x18xf32>
    %45 = tpu.matmul %44, %1, %cst_39 {dimension_numbers = #tpu.dot_dimension_numbers<[1], [0], [0], [1], [0, 0, 1, 1], [], []>} : vector<64x256xbf16>, vector<256x18xbf16>, vector<64x18xf32> -> vector<64x18xf32>
    %c5_40 = arith.constant 5 : index
    %c0_41 = arith.constant 0 : index
    %c0_42 = arith.constant 0 : index
    %46 = vector.load %arg3[%c5_40, %c0_41, %c0_42] : memref<9x18x48xbf16, #tpu.memory_space<vmem>>, vector<1x18x48xbf16>
    %47 = vector.shape_cast %46 : vector<1x18x48xbf16> to vector<18x48xbf16>
    %48 = arith.truncf %45 : vector<64x18xf32> to vector<64x18xbf16>
    %cst_43 = arith.constant dense<0.000000e+00> : vector<64x48xf32>
    %49 = tpu.matmul %48, %47, %cst_43 {dimension_numbers = #tpu.dot_dimension_numbers<[1], [0], [0], [1], [0, 0, 1, 1], [], []>} : vector<64x18xbf16>, vector<18x48xbf16>, vector<64x48xf32> -> vector<64x48xf32>
    %50 = arith.addf %42, %49 : vector<64x48xf32>
    %c6 = arith.constant 6 : index
    %c0_44 = arith.constant 0 : index
    %c0_45 = arith.constant 0 : index
    %51 = vector.load %arg2[%c6, %c0_44, %c0_45] : memref<9x64x256xbf16, #tpu.memory_space<vmem>>, vector<1x64x256xbf16>
    %52 = vector.shape_cast %51 : vector<1x64x256xbf16> to vector<64x256xbf16>
    %cst_46 = arith.constant dense<0.000000e+00> : vector<64x18xf32>
    %53 = tpu.matmul %52, %1, %cst_46 {dimension_numbers = #tpu.dot_dimension_numbers<[1], [0], [0], [1], [0, 0, 1, 1], [], []>} : vector<64x256xbf16>, vector<256x18xbf16>, vector<64x18xf32> -> vector<64x18xf32>
    %c6_47 = arith.constant 6 : index
    %c0_48 = arith.constant 0 : index
    %c0_49 = arith.constant 0 : index
    %54 = vector.load %arg3[%c6_47, %c0_48, %c0_49] : memref<9x18x48xbf16, #tpu.memory_space<vmem>>, vector<1x18x48xbf16>
    %55 = vector.shape_cast %54 : vector<1x18x48xbf16> to vector<18x48xbf16>
    %56 = arith.truncf %53 : vector<64x18xf32> to vector<64x18xbf16>
    %cst_50 = arith.constant dense<0.000000e+00> : vector<64x48xf32>
    %57 = tpu.matmul %56, %55, %cst_50 {dimension_numbers = #tpu.dot_dimension_numbers<[1], [0], [0], [1], [0, 0, 1, 1], [], []>} : vector<64x18xbf16>, vector<18x48xbf16>, vector<64x48xf32> -> vector<64x48xf32>
    %58 = arith.addf %50, %57 : vector<64x48xf32>
    %c7 = arith.constant 7 : index
    %c0_51 = arith.constant 0 : index
    %c0_52 = arith.constant 0 : index
    %59 = vector.load %arg2[%c7, %c0_51, %c0_52] : memref<9x64x256xbf16, #tpu.memory_space<vmem>>, vector<1x64x256xbf16>
    %60 = vector.shape_cast %59 : vector<1x64x256xbf16> to vector<64x256xbf16>
    %cst_53 = arith.constant dense<0.000000e+00> : vector<64x18xf32>
    %61 = tpu.matmul %60, %1, %cst_53 {dimension_numbers = #tpu.dot_dimension_numbers<[1], [0], [0], [1], [0, 0, 1, 1], [], []>} : vector<64x256xbf16>, vector<256x18xbf16>, vector<64x18xf32> -> vector<64x18xf32>
    %c7_54 = arith.constant 7 : index
    %c0_55 = arith.constant 0 : index
    %c0_56 = arith.constant 0 : index
    %62 = vector.load %arg3[%c7_54, %c0_55, %c0_56] : memref<9x18x48xbf16, #tpu.memory_space<vmem>>, vector<1x18x48xbf16>
    %63 = vector.shape_cast %62 : vector<1x18x48xbf16> to vector<18x48xbf16>
    %64 = arith.truncf %61 : vector<64x18xf32> to vector<64x18xbf16>
    %cst_57 = arith.constant dense<0.000000e+00> : vector<64x48xf32>
    %65 = tpu.matmul %64, %63, %cst_57 {dimension_numbers = #tpu.dot_dimension_numbers<[1], [0], [0], [1], [0, 0, 1, 1], [], []>} : vector<64x18xbf16>, vector<18x48xbf16>, vector<64x48xf32> -> vector<64x48xf32>
    %66 = arith.addf %58, %65 : vector<64x48xf32>
    %c8 = arith.constant 8 : index
    %c0_58 = arith.constant 0 : index
    %c0_59 = arith.constant 0 : index
    %67 = vector.load %arg2[%c8, %c0_58, %c0_59] : memref<9x64x256xbf16, #tpu.memory_space<vmem>>, vector<1x64x256xbf16>
    %68 = vector.shape_cast %67 : vector<1x64x256xbf16> to vector<64x256xbf16>
    %cst_60 = arith.constant dense<0.000000e+00> : vector<64x18xf32>
    %69 = tpu.matmul %68, %1, %cst_60 {dimension_numbers = #tpu.dot_dimension_numbers<[1], [0], [0], [1], [0, 0, 1, 1], [], []>} : vector<64x256xbf16>, vector<256x18xbf16>, vector<64x18xf32> -> vector<64x18xf32>
    %c8_61 = arith.constant 8 : index
    %c0_62 = arith.constant 0 : index
    %c0_63 = arith.constant 0 : index
    %70 = vector.load %arg3[%c8_61, %c0_62, %c0_63] : memref<9x18x48xbf16, #tpu.memory_space<vmem>>, vector<1x18x48xbf16>
    %71 = vector.shape_cast %70 : vector<1x18x48xbf16> to vector<18x48xbf16>
    %72 = arith.truncf %69 : vector<64x18xf32> to vector<64x18xbf16>
    %cst_64 = arith.constant dense<0.000000e+00> : vector<64x48xf32>
    %73 = tpu.matmul %72, %71, %cst_64 {dimension_numbers = #tpu.dot_dimension_numbers<[1], [0], [0], [1], [0, 0, 1, 1], [], []>} : vector<64x18xbf16>, vector<18x48xbf16>, vector<64x48xf32> -> vector<64x48xf32>
    %74 = arith.addf %66, %73 : vector<64x48xf32>
    %c0_65 = arith.constant 0 : index
    %c0_66 = arith.constant 0 : index
    %75 = vector.load %arg4[%c0_65, %c0_66] : memref<1x48xf32, #tpu.memory_space<vmem>>, vector<1x48xf32>
    %76 = vector.broadcast %75 : vector<1x48xf32> to vector<64x48xf32>
    %77 = arith.addf %74, %76 : vector<64x48xf32>
    %cst_67 = arith.constant 0.000000e+00 : f32
    %78 = vector.broadcast %cst_67 : f32 to vector<64x48xf32>
    %79 = arith.maximumf %77, %78 : vector<64x48xf32>
    %80 = arith.truncf %79 : vector<64x48xf32> to vector<64x48xbf16>
    %cst_68 = arith.constant 0.000000e+00 : f32
    %81 = vector.broadcast %cst_68 : f32 to vector<16x96xf32>
    %c0_69 = arith.constant 0 : index
    %c0_70 = arith.constant 0 : index
    %c0_71 = arith.constant 0 : index
    %82 = vector.load %arg5[%c0_69, %c0_70, %c0_71] : memref<9x16x64xbf16, #tpu.memory_space<vmem>>, vector<1x16x64xbf16>
    %83 = vector.shape_cast %82 : vector<1x16x64xbf16> to vector<16x64xbf16>
    %cst_72 = arith.constant dense<0.000000e+00> : vector<16x48xf32>
    %84 = tpu.matmul %83, %80, %cst_72 {dimension_numbers = #tpu.dot_dimension_numbers<[1], [0], [0], [1], [0, 0, 1, 1], [], []>} : vector<16x64xbf16>, vector<64x48xbf16>, vector<16x48xf32> -> vector<16x48xf32>
    %c0_73 = arith.constant 0 : index
    %c0_74 = arith.constant 0 : index
    %c0_75 = arith.constant 0 : index
    %85 = vector.load %arg6[%c0_73, %c0_74, %c0_75] : memref<9x48x96xbf16, #tpu.memory_space<vmem>>, vector<1x48x96xbf16>
    %86 = vector.shape_cast %85 : vector<1x48x96xbf16> to vector<48x96xbf16>
    %87 = arith.truncf %84 : vector<16x48xf32> to vector<16x48xbf16>
    %cst_76 = arith.constant dense<0.000000e+00> : vector<16x96xf32>
    %88 = tpu.matmul %87, %86, %cst_76 {dimension_numbers = #tpu.dot_dimension_numbers<[1], [0], [0], [1], [0, 0, 1, 1], [], []>} : vector<16x48xbf16>, vector<48x96xbf16>, vector<16x96xf32> -> vector<16x96xf32>
    %89 = arith.addf %81, %88 : vector<16x96xf32>
    %c1_77 = arith.constant 1 : index
    %c0_78 = arith.constant 0 : index
    %c0_79 = arith.constant 0 : index
    %90 = vector.load %arg5[%c1_77, %c0_78, %c0_79] : memref<9x16x64xbf16, #tpu.memory_space<vmem>>, vector<1x16x64xbf16>
    %91 = vector.shape_cast %90 : vector<1x16x64xbf16> to vector<16x64xbf16>
    %cst_80 = arith.constant dense<0.000000e+00> : vector<16x48xf32>
    %92 = tpu.matmul %91, %80, %cst_80 {dimension_numbers = #tpu.dot_dimension_numbers<[1], [0], [0], [1], [0, 0, 1, 1], [], []>} : vector<16x64xbf16>, vector<64x48xbf16>, vector<16x48xf32> -> vector<16x48xf32>
    %c1_81 = arith.constant 1 : index
    %c0_82 = arith.constant 0 : index
    %c0_83 = arith.constant 0 : index
    %93 = vector.load %arg6[%c1_81, %c0_82, %c0_83] : memref<9x48x96xbf16, #tpu.memory_space<vmem>>, vector<1x48x96xbf16>
    %94 = vector.shape_cast %93 : vector<1x48x96xbf16> to vector<48x96xbf16>
    %95 = arith.truncf %92 : vector<16x48xf32> to vector<16x48xbf16>
    %cst_84 = arith.constant dense<0.000000e+00> : vector<16x96xf32>
    %96 = tpu.matmul %95, %94, %cst_84 {dimension_numbers = #tpu.dot_dimension_numbers<[1], [0], [0], [1], [0, 0, 1, 1], [], []>} : vector<16x48xbf16>, vector<48x96xbf16>, vector<16x96xf32> -> vector<16x96xf32>
    %97 = arith.addf %89, %96 : vector<16x96xf32>
    %c2_85 = arith.constant 2 : index
    %c0_86 = arith.constant 0 : index
    %c0_87 = arith.constant 0 : index
    %98 = vector.load %arg5[%c2_85, %c0_86, %c0_87] : memref<9x16x64xbf16, #tpu.memory_space<vmem>>, vector<1x16x64xbf16>
    %99 = vector.shape_cast %98 : vector<1x16x64xbf16> to vector<16x64xbf16>
    %cst_88 = arith.constant dense<0.000000e+00> : vector<16x48xf32>
    %100 = tpu.matmul %99, %80, %cst_88 {dimension_numbers = #tpu.dot_dimension_numbers<[1], [0], [0], [1], [0, 0, 1, 1], [], []>} : vector<16x64xbf16>, vector<64x48xbf16>, vector<16x48xf32> -> vector<16x48xf32>
    %c2_89 = arith.constant 2 : index
    %c0_90 = arith.constant 0 : index
    %c0_91 = arith.constant 0 : index
    %101 = vector.load %arg6[%c2_89, %c0_90, %c0_91] : memref<9x48x96xbf16, #tpu.memory_space<vmem>>, vector<1x48x96xbf16>
    %102 = vector.shape_cast %101 : vector<1x48x96xbf16> to vector<48x96xbf16>
    %103 = arith.truncf %100 : vector<16x48xf32> to vector<16x48xbf16>
    %cst_92 = arith.constant dense<0.000000e+00> : vector<16x96xf32>
    %104 = tpu.matmul %103, %102, %cst_92 {dimension_numbers = #tpu.dot_dimension_numbers<[1], [0], [0], [1], [0, 0, 1, 1], [], []>} : vector<16x48xbf16>, vector<48x96xbf16>, vector<16x96xf32> -> vector<16x96xf32>
    %105 = arith.addf %97, %104 : vector<16x96xf32>
    %c3_93 = arith.constant 3 : index
    %c0_94 = arith.constant 0 : index
    %c0_95 = arith.constant 0 : index
    %106 = vector.load %arg5[%c3_93, %c0_94, %c0_95] : memref<9x16x64xbf16, #tpu.memory_space<vmem>>, vector<1x16x64xbf16>
    %107 = vector.shape_cast %106 : vector<1x16x64xbf16> to vector<16x64xbf16>
    %cst_96 = arith.constant dense<0.000000e+00> : vector<16x48xf32>
    %108 = tpu.matmul %107, %80, %cst_96 {dimension_numbers = #tpu.dot_dimension_numbers<[1], [0], [0], [1], [0, 0, 1, 1], [], []>} : vector<16x64xbf16>, vector<64x48xbf16>, vector<16x48xf32> -> vector<16x48xf32>
    %c3_97 = arith.constant 3 : index
    %c0_98 = arith.constant 0 : index
    %c0_99 = arith.constant 0 : index
    %109 = vector.load %arg6[%c3_97, %c0_98, %c0_99] : memref<9x48x96xbf16, #tpu.memory_space<vmem>>, vector<1x48x96xbf16>
    %110 = vector.shape_cast %109 : vector<1x48x96xbf16> to vector<48x96xbf16>
    %111 = arith.truncf %108 : vector<16x48xf32> to vector<16x48xbf16>
    %cst_100 = arith.constant dense<0.000000e+00> : vector<16x96xf32>
    %112 = tpu.matmul %111, %110, %cst_100 {dimension_numbers = #tpu.dot_dimension_numbers<[1], [0], [0], [1], [0, 0, 1, 1], [], []>} : vector<16x48xbf16>, vector<48x96xbf16>, vector<16x96xf32> -> vector<16x96xf32>
    %113 = arith.addf %105, %112 : vector<16x96xf32>
    %c4_101 = arith.constant 4 : index
    %c0_102 = arith.constant 0 : index
    %c0_103 = arith.constant 0 : index
    %114 = vector.load %arg5[%c4_101, %c0_102, %c0_103] : memref<9x16x64xbf16, #tpu.memory_space<vmem>>, vector<1x16x64xbf16>
    %115 = vector.shape_cast %114 : vector<1x16x64xbf16> to vector<16x64xbf16>
    %cst_104 = arith.constant dense<0.000000e+00> : vector<16x48xf32>
    %116 = tpu.matmul %115, %80, %cst_104 {dimension_numbers = #tpu.dot_dimension_numbers<[1], [0], [0], [1], [0, 0, 1, 1], [], []>} : vector<16x64xbf16>, vector<64x48xbf16>, vector<16x48xf32> -> vector<16x48xf32>
    %c4_105 = arith.constant 4 : index
    %c0_106 = arith.constant 0 : index
    %c0_107 = arith.constant 0 : index
    %117 = vector.load %arg6[%c4_105, %c0_106, %c0_107] : memref<9x48x96xbf16, #tpu.memory_space<vmem>>, vector<1x48x96xbf16>
    %118 = vector.shape_cast %117 : vector<1x48x96xbf16> to vector<48x96xbf16>
    %119 = arith.truncf %116 : vector<16x48xf32> to vector<16x48xbf16>
    %cst_108 = arith.constant dense<0.000000e+00> : vector<16x96xf32>
    %120 = tpu.matmul %119, %118, %cst_108 {dimension_numbers = #tpu.dot_dimension_numbers<[1], [0], [0], [1], [0, 0, 1, 1], [], []>} : vector<16x48xbf16>, vector<48x96xbf16>, vector<16x96xf32> -> vector<16x96xf32>
    %121 = arith.addf %113, %120 : vector<16x96xf32>
    %c5_109 = arith.constant 5 : index
    %c0_110 = arith.constant 0 : index
    %c0_111 = arith.constant 0 : index
    %122 = vector.load %arg5[%c5_109, %c0_110, %c0_111] : memref<9x16x64xbf16, #tpu.memory_space<vmem>>, vector<1x16x64xbf16>
    %123 = vector.shape_cast %122 : vector<1x16x64xbf16> to vector<16x64xbf16>
    %cst_112 = arith.constant dense<0.000000e+00> : vector<16x48xf32>
    %124 = tpu.matmul %123, %80, %cst_112 {dimension_numbers = #tpu.dot_dimension_numbers<[1], [0], [0], [1], [0, 0, 1, 1], [], []>} : vector<16x64xbf16>, vector<64x48xbf16>, vector<16x48xf32> -> vector<16x48xf32>
    %c5_113 = arith.constant 5 : index
    %c0_114 = arith.constant 0 : index
    %c0_115 = arith.constant 0 : index
    %125 = vector.load %arg6[%c5_113, %c0_114, %c0_115] : memref<9x48x96xbf16, #tpu.memory_space<vmem>>, vector<1x48x96xbf16>
    %126 = vector.shape_cast %125 : vector<1x48x96xbf16> to vector<48x96xbf16>
    %127 = arith.truncf %124 : vector<16x48xf32> to vector<16x48xbf16>
    %cst_116 = arith.constant dense<0.000000e+00> : vector<16x96xf32>
    %128 = tpu.matmul %127, %126, %cst_116 {dimension_numbers = #tpu.dot_dimension_numbers<[1], [0], [0], [1], [0, 0, 1, 1], [], []>} : vector<16x48xbf16>, vector<48x96xbf16>, vector<16x96xf32> -> vector<16x96xf32>
    %129 = arith.addf %121, %128 : vector<16x96xf32>
    %c6_117 = arith.constant 6 : index
    %c0_118 = arith.constant 0 : index
    %c0_119 = arith.constant 0 : index
    %130 = vector.load %arg5[%c6_117, %c0_118, %c0_119] : memref<9x16x64xbf16, #tpu.memory_space<vmem>>, vector<1x16x64xbf16>
    %131 = vector.shape_cast %130 : vector<1x16x64xbf16> to vector<16x64xbf16>
    %cst_120 = arith.constant dense<0.000000e+00> : vector<16x48xf32>
    %132 = tpu.matmul %131, %80, %cst_120 {dimension_numbers = #tpu.dot_dimension_numbers<[1], [0], [0], [1], [0, 0, 1, 1], [], []>} : vector<16x64xbf16>, vector<64x48xbf16>, vector<16x48xf32> -> vector<16x48xf32>
    %c6_121 = arith.constant 6 : index
    %c0_122 = arith.constant 0 : index
    %c0_123 = arith.constant 0 : index
    %133 = vector.load %arg6[%c6_121, %c0_122, %c0_123] : memref<9x48x96xbf16, #tpu.memory_space<vmem>>, vector<1x48x96xbf16>
    %134 = vector.shape_cast %133 : vector<1x48x96xbf16> to vector<48x96xbf16>
    %135 = arith.truncf %132 : vector<16x48xf32> to vector<16x48xbf16>
    %cst_124 = arith.constant dense<0.000000e+00> : vector<16x96xf32>
    %136 = tpu.matmul %135, %134, %cst_124 {dimension_numbers = #tpu.dot_dimension_numbers<[1], [0], [0], [1], [0, 0, 1, 1], [], []>} : vector<16x48xbf16>, vector<48x96xbf16>, vector<16x96xf32> -> vector<16x96xf32>
    %137 = arith.addf %129, %136 : vector<16x96xf32>
    %c7_125 = arith.constant 7 : index
    %c0_126 = arith.constant 0 : index
    %c0_127 = arith.constant 0 : index
    %138 = vector.load %arg5[%c7_125, %c0_126, %c0_127] : memref<9x16x64xbf16, #tpu.memory_space<vmem>>, vector<1x16x64xbf16>
    %139 = vector.shape_cast %138 : vector<1x16x64xbf16> to vector<16x64xbf16>
    %cst_128 = arith.constant dense<0.000000e+00> : vector<16x48xf32>
    %140 = tpu.matmul %139, %80, %cst_128 {dimension_numbers = #tpu.dot_dimension_numbers<[1], [0], [0], [1], [0, 0, 1, 1], [], []>} : vector<16x64xbf16>, vector<64x48xbf16>, vector<16x48xf32> -> vector<16x48xf32>
    %c7_129 = arith.constant 7 : index
    %c0_130 = arith.constant 0 : index
    %c0_131 = arith.constant 0 : index
    %141 = vector.load %arg6[%c7_129, %c0_130, %c0_131] : memref<9x48x96xbf16, #tpu.memory_space<vmem>>, vector<1x48x96xbf16>
    %142 = vector.shape_cast %141 : vector<1x48x96xbf16> to vector<48x96xbf16>
    %143 = arith.truncf %140 : vector<16x48xf32> to vector<16x48xbf16>
    %cst_132 = arith.constant dense<0.000000e+00> : vector<16x96xf32>
    %144 = tpu.matmul %143, %142, %cst_132 {dimension_numbers = #tpu.dot_dimension_numbers<[1], [0], [0], [1], [0, 0, 1, 1], [], []>} : vector<16x48xbf16>, vector<48x96xbf16>, vector<16x96xf32> -> vector<16x96xf32>
    %145 = arith.addf %137, %144 : vector<16x96xf32>
    %c8_133 = arith.constant 8 : index
    %c0_134 = arith.constant 0 : index
    %c0_135 = arith.constant 0 : index
    %146 = vector.load %arg5[%c8_133, %c0_134, %c0_135] : memref<9x16x64xbf16, #tpu.memory_space<vmem>>, vector<1x16x64xbf16>
    %147 = vector.shape_cast %146 : vector<1x16x64xbf16> to vector<16x64xbf16>
    %cst_136 = arith.constant dense<0.000000e+00> : vector<16x48xf32>
    %148 = tpu.matmul %147, %80, %cst_136 {dimension_numbers = #tpu.dot_dimension_numbers<[1], [0], [0], [1], [0, 0, 1, 1], [], []>} : vector<16x64xbf16>, vector<64x48xbf16>, vector<16x48xf32> -> vector<16x48xf32>
    %c8_137 = arith.constant 8 : index
    %c0_138 = arith.constant 0 : index
    %c0_139 = arith.constant 0 : index
    %149 = vector.load %arg6[%c8_137, %c0_138, %c0_139] : memref<9x48x96xbf16, #tpu.memory_space<vmem>>, vector<1x48x96xbf16>
    %150 = vector.shape_cast %149 : vector<1x48x96xbf16> to vector<48x96xbf16>
    %151 = arith.truncf %148 : vector<16x48xf32> to vector<16x48xbf16>
    %cst_140 = arith.constant dense<0.000000e+00> : vector<16x96xf32>
    %152 = tpu.matmul %151, %150, %cst_140 {dimension_numbers = #tpu.dot_dimension_numbers<[1], [0], [0], [1], [0, 0, 1, 1], [], []>} : vector<16x48xbf16>, vector<48x96xbf16>, vector<16x96xf32> -> vector<16x96xf32>
    %153 = arith.addf %145, %152 : vector<16x96xf32>
    %c0_141 = arith.constant 0 : index
    %c0_142 = arith.constant 0 : index
    %154 = vector.load %arg7[%c0_141, %c0_142] : memref<1x96xf32, #tpu.memory_space<vmem>>, vector<1x96xf32>
    %155 = vector.broadcast %154 : vector<1x96xf32> to vector<16x96xf32>
    %156 = arith.addf %153, %155 : vector<16x96xf32>
    %cst_143 = arith.constant 0.000000e+00 : f32
    %157 = vector.broadcast %cst_143 : f32 to vector<16x96xf32>
    %158 = arith.maximumf %156, %157 : vector<16x96xf32>
    %c0_144 = arith.constant 0 : index
    %c0_145 = arith.constant 0 : index
    %159 = vector.load %arg8[%c0_144, %c0_145] : memref<96x96xbf16, #tpu.memory_space<vmem>>, vector<96x96xbf16>
    %160 = arith.truncf %158 : vector<16x96xf32> to vector<16x96xbf16>
    %cst_146 = arith.constant dense<0.000000e+00> : vector<16x96xf32>
    %161 = tpu.matmul %160, %159, %cst_146 {dimension_numbers = #tpu.dot_dimension_numbers<[1], [0], [0], [1], [0, 0, 1, 1], [], []>} : vector<16x96xbf16>, vector<96x96xbf16>, vector<16x96xf32> -> vector<16x96xf32>
    %c0_147 = arith.constant 0 : index
    %c0_148 = arith.constant 0 : index
    %162 = vector.load %arg9[%c0_147, %c0_148] : memref<1x96xf32, #tpu.memory_space<vmem>>, vector<1x96xf32>
    %163 = vector.broadcast %162 : vector<1x96xf32> to vector<16x96xf32>
    %164 = arith.addf %161, %163 : vector<16x96xf32>
    %cst_149 = arith.constant 0.000000e+00 : f32
    %165 = vector.broadcast %cst_149 : f32 to vector<16x96xf32>
    %166 = arith.maximumf %164, %165 : vector<16x96xf32>
    %c0_150 = arith.constant 0 : index
    %c0_151 = arith.constant 0 : index
    %167 = vector.load %arg10[%c0_150, %c0_151] : memref<64x4xf32, #tpu.memory_space<vmem>>, vector<64x4xf32>
    %c0_152 = arith.constant 0 : index
    %c0_153 = arith.constant 0 : index
    %168 = vector.load %arg11[%c0_152, %c0_153] : memref<16x4xf32, #tpu.memory_space<vmem>>, vector<16x4xf32>
    %c0_154 = arith.constant 0 : index
    %c0_155 = arith.constant 0 : index
    %169 = vector.load %arg12[%c0_154, %c0_155] : memref<16x64xbf16, #tpu.memory_space<vmem>>, vector<16x64xbf16>
    %c0_156 = arith.constant 0 : index
    %c0_157 = arith.constant 0 : index
    %170 = vector.load %arg13[%c0_156, %c0_157] : memref<24x4xbf16, #tpu.memory_space<vmem>>, vector<24x4xbf16>
    %c0_158 = arith.constant 0 : index
    %c0_159 = arith.constant 0 : index
    %171 = vector.load %arg14[%c0_158, %c0_159] : memref<1x4xf32, #tpu.memory_space<vmem>>, vector<1x4xf32>
    %c0_160 = arith.constant 0 : index
    %c0_161 = arith.constant 0 : index
    %172 = vector.load %arg15[%c0_160, %c0_161] : memref<16x4xf32, #tpu.memory_space<vmem>>, vector<16x4xf32>
    %cst_162 = arith.constant 0.000000e+00 : f32
    %173 = vector.broadcast %cst_162 : f32 to vector<1x16xf32>
    %cst_163 = arith.constant 0.000000e+00 : f32
    %174 = vector.broadcast %cst_163 : f32 to vector<1x8xf32>
    %cst_164 = arith.constant 0.000000e+00 : f32
    %175 = vector.broadcast %cst_164 : f32 to vector<1x16xf32>
    %176 = vector.extract_strided_slice %166 {offsets = [0, 0], sizes = [16, 16], strides = [1, 1]} : vector<16x96xf32> to vector<16x16xf32>
    %cst_165 = arith.constant dense<0.000000e+00> : vector<16xf32>
    %177 = vector.multi_reduction <add>, %176, %cst_165 [0] : vector<16x16xf32> to vector<16xf32>
    %178 = vector.shape_cast %177 : vector<16xf32> to vector<1x16xf32>
    %179 = arith.addf %173, %178 : vector<1x16xf32>
    %180 = vector.extract_strided_slice %79 {offsets = [0, 0], sizes = [64, 8], strides = [1, 1]} : vector<64x48xf32> to vector<64x8xf32>
    %181 = vector.extract_strided_slice %167 {offsets = [0, 0], sizes = [64, 1], strides = [1, 1]} : vector<64x4xf32> to vector<64x1xf32>
    %182 = vector.broadcast %181 : vector<64x1xf32> to vector<64x8xf32>
    %183 = arith.mulf %180, %182 : vector<64x8xf32>
    %cst_166 = arith.constant dense<0.000000e+00> : vector<8xf32>
    %184 = vector.multi_reduction <add>, %183, %cst_166 [0] : vector<64x8xf32> to vector<8xf32>
    %185 = vector.shape_cast %184 : vector<8xf32> to vector<1x8xf32>
    %186 = arith.addf %174, %185 : vector<1x8xf32>
    %187 = vector.extract_strided_slice %158 {offsets = [0, 0], sizes = [16, 16], strides = [1, 1]} : vector<16x96xf32> to vector<16x16xf32>
    %188 = vector.extract_strided_slice %168 {offsets = [0, 0], sizes = [16, 1], strides = [1, 1]} : vector<16x4xf32> to vector<16x1xf32>
    %189 = vector.broadcast %188 : vector<16x1xf32> to vector<16x16xf32>
    %190 = arith.mulf %187, %189 : vector<16x16xf32>
    %cst_167 = arith.constant dense<0.000000e+00> : vector<16xf32>
    %191 = vector.multi_reduction <add>, %190, %cst_167 [0] : vector<16x16xf32> to vector<16xf32>
    %192 = vector.shape_cast %191 : vector<16xf32> to vector<1x16xf32>
    %193 = arith.addf %175, %192 : vector<1x16xf32>
    %194 = vector.extract_strided_slice %166 {offsets = [0, 32], sizes = [16, 16], strides = [1, 1]} : vector<16x96xf32> to vector<16x16xf32>
    %cst_168 = arith.constant dense<0.000000e+00> : vector<16xf32>
    %195 = vector.multi_reduction <add>, %194, %cst_168 [0] : vector<16x16xf32> to vector<16xf32>
    %196 = vector.shape_cast %195 : vector<16xf32> to vector<1x16xf32>
    %197 = arith.addf %179, %196 : vector<1x16xf32>
    %198 = vector.extract_strided_slice %79 {offsets = [0, 16], sizes = [64, 8], strides = [1, 1]} : vector<64x48xf32> to vector<64x8xf32>
    %199 = vector.extract_strided_slice %167 {offsets = [0, 2], sizes = [64, 1], strides = [1, 1]} : vector<64x4xf32> to vector<64x1xf32>
    %200 = vector.broadcast %199 : vector<64x1xf32> to vector<64x8xf32>
    %201 = arith.mulf %198, %200 : vector<64x8xf32>
    %cst_169 = arith.constant dense<0.000000e+00> : vector<8xf32>
    %202 = vector.multi_reduction <add>, %201, %cst_169 [0] : vector<64x8xf32> to vector<8xf32>
    %203 = vector.shape_cast %202 : vector<8xf32> to vector<1x8xf32>
    %204 = arith.addf %186, %203 : vector<1x8xf32>
    %205 = vector.extract_strided_slice %158 {offsets = [0, 32], sizes = [16, 16], strides = [1, 1]} : vector<16x96xf32> to vector<16x16xf32>
    %206 = vector.extract_strided_slice %168 {offsets = [0, 2], sizes = [16, 1], strides = [1, 1]} : vector<16x4xf32> to vector<16x1xf32>
    %207 = vector.broadcast %206 : vector<16x1xf32> to vector<16x16xf32>
    %208 = arith.mulf %205, %207 : vector<16x16xf32>
    %cst_170 = arith.constant dense<0.000000e+00> : vector<16xf32>
    %209 = vector.multi_reduction <add>, %208, %cst_170 [0] : vector<16x16xf32> to vector<16xf32>
    %210 = vector.shape_cast %209 : vector<16xf32> to vector<1x16xf32>
    %211 = arith.addf %193, %210 : vector<1x16xf32>
    %cst_171 = arith.constant 3.125000e-02 : f32
    %212 = vector.broadcast %cst_171 : f32 to vector<1x16xf32>
    %213 = arith.mulf %197, %212 : vector<1x16xf32>
    %cst_172 = arith.constant 5.000000e-01 : f32
    %214 = vector.broadcast %cst_172 : f32 to vector<1x8xf32>
    %215 = arith.mulf %204, %214 : vector<1x8xf32>
    %cst_173 = arith.constant 5.000000e-01 : f32
    %216 = vector.broadcast %cst_173 : f32 to vector<1x16xf32>
    %217 = arith.mulf %211, %216 : vector<1x16xf32>
    %218 = vector.extract_strided_slice %166 {offsets = [0, 64], sizes = [16, 16], strides = [1, 1]} : vector<16x96xf32> to vector<16x16xf32>
    %cst_174 = arith.constant dense<0.000000e+00> : vector<1x16xf32>
    %219 = tpu.matmul %213, %218, %cst_174 {dimension_numbers = #tpu.dot_dimension_numbers<[1], [1], [0], [0], [0, 0, 1, 0], [], []>} : vector<1x16xf32>, vector<16x16xf32>, vector<1x16xf32> -> vector<1x16xf32>
    %220 = vector.extract_strided_slice %158 {offsets = [0, 64], sizes = [16, 16], strides = [1, 1]} : vector<16x96xf32> to vector<16x16xf32>
    %221 = vector.broadcast %217 : vector<1x16xf32> to vector<16x16xf32>
    %222 = arith.mulf %220, %221 : vector<16x16xf32>
    %223 = vector.extract_strided_slice %79 {offsets = [0, 32], sizes = [64, 8], strides = [1, 1]} : vector<64x48xf32> to vector<64x8xf32>
    %224 = vector.broadcast %215 : vector<1x8xf32> to vector<64x8xf32>
    %225 = arith.mulf %223, %224 : vector<64x8xf32>
    %226 = arith.truncf %225 : vector<64x8xf32> to vector<64x8xbf16>
    %cst_175 = arith.constant dense<0.000000e+00> : vector<16x8xf32>
    %227 = tpu.matmul %169, %226, %cst_175 {dimension_numbers = #tpu.dot_dimension_numbers<[1], [0], [0], [1], [0, 0, 1, 1], [], []>} : vector<16x64xbf16>, vector<64x8xbf16>, vector<16x8xf32> -> vector<16x8xf32>
    %228 = vector.extract_strided_slice %170 {offsets = [0, 0], sizes = [8, 4], strides = [1, 1]} : vector<24x4xbf16> to vector<8x4xbf16>
    %229 = arith.truncf %227 : vector<16x8xf32> to vector<16x8xbf16>
    %cst_176 = arith.constant dense<0.000000e+00> : vector<16x4xf32>
    %230 = tpu.matmul %229, %228, %cst_176 {dimension_numbers = #tpu.dot_dimension_numbers<[1], [0], [0], [1], [0, 0, 1, 1], [], []>} : vector<16x8xbf16>, vector<8x4xbf16>, vector<16x4xf32> -> vector<16x4xf32>
    %231 = vector.extract_strided_slice %170 {offsets = [8, 0], sizes = [16, 4], strides = [1, 1]} : vector<24x4xbf16> to vector<16x4xbf16>
    %232 = arith.truncf %222 : vector<16x16xf32> to vector<16x16xbf16>
    %cst_177 = arith.constant dense<0.000000e+00> : vector<16x4xf32>
    %233 = tpu.matmul %232, %231, %cst_177 {dimension_numbers = #tpu.dot_dimension_numbers<[1], [0], [0], [1], [0, 0, 1, 1], [], []>} : vector<16x16xbf16>, vector<16x4xbf16>, vector<16x4xf32> -> vector<16x4xf32>
    %234 = arith.addf %230, %233 : vector<16x4xf32>
    %235 = vector.broadcast %171 : vector<1x4xf32> to vector<16x4xf32>
    %236 = arith.addf %234, %235 : vector<16x4xf32>
    %cst_178 = arith.constant dense<0xFF800000> : vector<4xf32>
    %237 = vector.multi_reduction <maximumf>, %236, %cst_178 [0] : vector<16x4xf32> to vector<4xf32>
    %238 = vector.shape_cast %237 : vector<4xf32> to vector<1x4xf32>
    %239 = vector.broadcast %238 : vector<1x4xf32> to vector<16x4xf32>
    %240 = arith.subf %236, %239 : vector<16x4xf32>
    %241 = math.exp %240 : vector<16x4xf32>
    %cst_179 = arith.constant dense<0.000000e+00> : vector<4xf32>
    %242 = vector.multi_reduction <add>, %241, %cst_179 [0] : vector<16x4xf32> to vector<4xf32>
    %243 = vector.shape_cast %242 : vector<4xf32> to vector<1x4xf32>
    %244 = tpu.reciprocal %243 {approx = true} : vector<1x4xf32> -> vector<1x4xf32>
    %245 = vector.broadcast %244 : vector<1x4xf32> to vector<16x4xf32>
    %246 = arith.mulf %241, %245 : vector<16x4xf32>
    %247 = arith.mulf %246, %172 : vector<16x4xf32>
    %cst_180 = arith.constant dense<0.000000e+00> : vector<4xf32>
    %248 = vector.multi_reduction <add>, %247, %cst_180 [0] : vector<16x4xf32> to vector<4xf32>
    %249 = vector.shape_cast %248 : vector<4xf32> to vector<1x4xf32>
    %cst_181 = arith.constant 5.000000e-01 : f32
    %250 = vector.broadcast %cst_181 : f32 to vector<1x4xf32>
    %251 = arith.addf %249, %250 : vector<1x4xf32>
    %cst_182 = arith.constant 4.000000e+00 : f32
    %252 = vector.broadcast %cst_182 : f32 to vector<1x4xf32>
    %253 = arith.mulf %251, %252 : vector<1x4xf32>
    %cst_183 = arith.constant 0.000000e+00 : f32
    %254 = vector.broadcast %cst_183 : f32 to vector<1x16xf32>
    %cst_184 = arith.constant 0.000000e+00 : f32
    %255 = vector.broadcast %cst_184 : f32 to vector<1x8xf32>
    %cst_185 = arith.constant 0.000000e+00 : f32
    %256 = vector.broadcast %cst_185 : f32 to vector<1x16xf32>
    %257 = vector.extract_strided_slice %166 {offsets = [0, 16], sizes = [16, 16], strides = [1, 1]} : vector<16x96xf32> to vector<16x16xf32>
    %cst_186 = arith.constant dense<0.000000e+00> : vector<16xf32>
    %258 = vector.multi_reduction <add>, %257, %cst_186 [0] : vector<16x16xf32> to vector<16xf32>
    %259 = vector.shape_cast %258 : vector<16xf32> to vector<1x16xf32>
    %260 = arith.addf %254, %259 : vector<1x16xf32>
    %261 = vector.extract_strided_slice %79 {offsets = [0, 8], sizes = [64, 8], strides = [1, 1]} : vector<64x48xf32> to vector<64x8xf32>
    %262 = vector.extract_strided_slice %167 {offsets = [0, 1], sizes = [64, 1], strides = [1, 1]} : vector<64x4xf32> to vector<64x1xf32>
    %263 = vector.broadcast %262 : vector<64x1xf32> to vector<64x8xf32>
    %264 = arith.mulf %261, %263 : vector<64x8xf32>
    %cst_187 = arith.constant dense<0.000000e+00> : vector<8xf32>
    %265 = vector.multi_reduction <add>, %264, %cst_187 [0] : vector<64x8xf32> to vector<8xf32>
    %266 = vector.shape_cast %265 : vector<8xf32> to vector<1x8xf32>
    %267 = arith.addf %255, %266 : vector<1x8xf32>
    %268 = vector.extract_strided_slice %158 {offsets = [0, 16], sizes = [16, 16], strides = [1, 1]} : vector<16x96xf32> to vector<16x16xf32>
    %269 = vector.extract_strided_slice %168 {offsets = [0, 1], sizes = [16, 1], strides = [1, 1]} : vector<16x4xf32> to vector<16x1xf32>
    %270 = vector.broadcast %269 : vector<16x1xf32> to vector<16x16xf32>
    %271 = arith.mulf %268, %270 : vector<16x16xf32>
    %cst_188 = arith.constant dense<0.000000e+00> : vector<16xf32>
    %272 = vector.multi_reduction <add>, %271, %cst_188 [0] : vector<16x16xf32> to vector<16xf32>
    %273 = vector.shape_cast %272 : vector<16xf32> to vector<1x16xf32>
    %274 = arith.addf %256, %273 : vector<1x16xf32>
    %275 = vector.extract_strided_slice %166 {offsets = [0, 48], sizes = [16, 16], strides = [1, 1]} : vector<16x96xf32> to vector<16x16xf32>
    %cst_189 = arith.constant dense<0.000000e+00> : vector<16xf32>
    %276 = vector.multi_reduction <add>, %275, %cst_189 [0] : vector<16x16xf32> to vector<16xf32>
    %277 = vector.shape_cast %276 : vector<16xf32> to vector<1x16xf32>
    %278 = arith.addf %260, %277 : vector<1x16xf32>
    %279 = vector.extract_strided_slice %79 {offsets = [0, 24], sizes = [64, 8], strides = [1, 1]} : vector<64x48xf32> to vector<64x8xf32>
    %280 = vector.extract_strided_slice %167 {offsets = [0, 3], sizes = [64, 1], strides = [1, 1]} : vector<64x4xf32> to vector<64x1xf32>
    %281 = vector.broadcast %280 : vector<64x1xf32> to vector<64x8xf32>
    %282 = arith.mulf %279, %281 : vector<64x8xf32>
    %cst_190 = arith.constant dense<0.000000e+00> : vector<8xf32>
    %283 = vector.multi_reduction <add>, %282, %cst_190 [0] : vector<64x8xf32> to vector<8xf32>
    %284 = vector.shape_cast %283 : vector<8xf32> to vector<1x8xf32>
    %285 = arith.addf %267, %284 : vector<1x8xf32>
    %286 = vector.extract_strided_slice %158 {offsets = [0, 48], sizes = [16, 16], strides = [1, 1]} : vector<16x96xf32> to vector<16x16xf32>
    %287 = vector.extract_strided_slice %168 {offsets = [0, 3], sizes = [16, 1], strides = [1, 1]} : vector<16x4xf32> to vector<16x1xf32>
    %288 = vector.broadcast %287 : vector<16x1xf32> to vector<16x16xf32>
    %289 = arith.mulf %286, %288 : vector<16x16xf32>
    %cst_191 = arith.constant dense<0.000000e+00> : vector<16xf32>
    %290 = vector.multi_reduction <add>, %289, %cst_191 [0] : vector<16x16xf32> to vector<16xf32>
    %291 = vector.shape_cast %290 : vector<16xf32> to vector<1x16xf32>
    %292 = arith.addf %274, %291 : vector<1x16xf32>
    %cst_192 = arith.constant 3.125000e-02 : f32
    %293 = vector.broadcast %cst_192 : f32 to vector<1x16xf32>
    %294 = arith.mulf %278, %293 : vector<1x16xf32>
    %cst_193 = arith.constant 5.000000e-01 : f32
    %295 = vector.broadcast %cst_193 : f32 to vector<1x8xf32>
    %296 = arith.mulf %285, %295 : vector<1x8xf32>
    %cst_194 = arith.constant 5.000000e-01 : f32
    %297 = vector.broadcast %cst_194 : f32 to vector<1x16xf32>
    %298 = arith.mulf %292, %297 : vector<1x16xf32>
    %299 = vector.extract_strided_slice %166 {offsets = [0, 80], sizes = [16, 16], strides = [1, 1]} : vector<16x96xf32> to vector<16x16xf32>
    %cst_195 = arith.constant dense<0.000000e+00> : vector<1x16xf32>
    %300 = tpu.matmul %294, %299, %cst_195 {dimension_numbers = #tpu.dot_dimension_numbers<[1], [1], [0], [0], [0, 0, 1, 0], [], []>} : vector<1x16xf32>, vector<16x16xf32>, vector<1x16xf32> -> vector<1x16xf32>
    %301 = vector.extract_strided_slice %158 {offsets = [0, 80], sizes = [16, 16], strides = [1, 1]} : vector<16x96xf32> to vector<16x16xf32>
    %302 = vector.broadcast %298 : vector<1x16xf32> to vector<16x16xf32>
    %303 = arith.mulf %301, %302 : vector<16x16xf32>
    %304 = vector.extract_strided_slice %79 {offsets = [0, 40], sizes = [64, 8], strides = [1, 1]} : vector<64x48xf32> to vector<64x8xf32>
    %305 = vector.broadcast %296 : vector<1x8xf32> to vector<64x8xf32>
    %306 = arith.mulf %304, %305 : vector<64x8xf32>
    %307 = arith.truncf %306 : vector<64x8xf32> to vector<64x8xbf16>
    %cst_196 = arith.constant dense<0.000000e+00> : vector<16x8xf32>
    %308 = tpu.matmul %169, %307, %cst_196 {dimension_numbers = #tpu.dot_dimension_numbers<[1], [0], [0], [1], [0, 0, 1, 1], [], []>} : vector<16x64xbf16>, vector<64x8xbf16>, vector<16x8xf32> -> vector<16x8xf32>
    %309 = vector.extract_strided_slice %170 {offsets = [0, 0], sizes = [8, 4], strides = [1, 1]} : vector<24x4xbf16> to vector<8x4xbf16>
    %310 = arith.truncf %308 : vector<16x8xf32> to vector<16x8xbf16>
    %cst_197 = arith.constant dense<0.000000e+00> : vector<16x4xf32>
    %311 = tpu.matmul %310, %309, %cst_197 {dimension_numbers = #tpu.dot_dimension_numbers<[1], [0], [0], [1], [0, 0, 1, 1], [], []>} : vector<16x8xbf16>, vector<8x4xbf16>, vector<16x4xf32> -> vector<16x4xf32>
    %312 = vector.extract_strided_slice %170 {offsets = [8, 0], sizes = [16, 4], strides = [1, 1]} : vector<24x4xbf16> to vector<16x4xbf16>
    %313 = arith.truncf %303 : vector<16x16xf32> to vector<16x16xbf16>
    %cst_198 = arith.constant dense<0.000000e+00> : vector<16x4xf32>
    %314 = tpu.matmul %313, %312, %cst_198 {dimension_numbers = #tpu.dot_dimension_numbers<[1], [0], [0], [1], [0, 0, 1, 1], [], []>} : vector<16x16xbf16>, vector<16x4xbf16>, vector<16x4xf32> -> vector<16x4xf32>
    %315 = arith.addf %311, %314 : vector<16x4xf32>
    %316 = vector.broadcast %171 : vector<1x4xf32> to vector<16x4xf32>
    %317 = arith.addf %315, %316 : vector<16x4xf32>
    %cst_199 = arith.constant dense<0xFF800000> : vector<4xf32>
    %318 = vector.multi_reduction <maximumf>, %317, %cst_199 [0] : vector<16x4xf32> to vector<4xf32>
    %319 = vector.shape_cast %318 : vector<4xf32> to vector<1x4xf32>
    %320 = vector.broadcast %319 : vector<1x4xf32> to vector<16x4xf32>
    %321 = arith.subf %317, %320 : vector<16x4xf32>
    %322 = math.exp %321 : vector<16x4xf32>
    %cst_200 = arith.constant dense<0.000000e+00> : vector<4xf32>
    %323 = vector.multi_reduction <add>, %322, %cst_200 [0] : vector<16x4xf32> to vector<4xf32>
    %324 = vector.shape_cast %323 : vector<4xf32> to vector<1x4xf32>
    %325 = tpu.reciprocal %324 {approx = true} : vector<1x4xf32> -> vector<1x4xf32>
    %326 = vector.broadcast %325 : vector<1x4xf32> to vector<16x4xf32>
    %327 = arith.mulf %322, %326 : vector<16x4xf32>
    %328 = arith.mulf %327, %172 : vector<16x4xf32>
    %cst_201 = arith.constant dense<0.000000e+00> : vector<4xf32>
    %329 = vector.multi_reduction <add>, %328, %cst_201 [0] : vector<16x4xf32> to vector<4xf32>
    %330 = vector.shape_cast %329 : vector<4xf32> to vector<1x4xf32>
    %cst_202 = arith.constant 5.000000e-01 : f32
    %331 = vector.broadcast %cst_202 : f32 to vector<1x4xf32>
    %332 = arith.addf %330, %331 : vector<1x4xf32>
    %cst_203 = arith.constant 4.000000e+00 : f32
    %333 = vector.broadcast %cst_203 : f32 to vector<1x4xf32>
    %334 = arith.mulf %332, %333 : vector<1x4xf32>
    %335 = tpu.concatenate %219, %300 in 0 : vector<1x16xf32>, vector<1x16xf32> -> vector<2x16xf32>
    %c0_204 = arith.constant 0 : index
    %c0_205 = arith.constant 0 : index
    %336 = vector.load %arg16[%c0_204, %c0_205] : memref<2x16xf32, #tpu.memory_space<vmem>>, vector<2x16xf32>
    tpu.vector_store %arg16[%c0_204, %c0_205], %335 {strides = array<i32>} : memref<2x16xf32, #tpu.memory_space<vmem>>, vector<2x16xf32>,
    %337 = tpu.concatenate %253, %334 in 0 : vector<1x4xf32>, vector<1x4xf32> -> vector<2x4xf32>
    %c0_206 = arith.constant 0 : index
    %c0_207 = arith.constant 0 : index
    %338 = vector.load %arg17[%c0_206, %c0_207] : memref<2x4xf32, #tpu.memory_space<vmem>>, vector<2x4xf32>
    tpu.vector_store %arg17[%c0_206, %c0_207], %337 {strides = array<i32>} : memref<2x4xf32, #tpu.memory_space<vmem>>, vector<2x4xf32>,
    return
  }
  func.func @transform_0(%arg0: i32) -> (i32, i32) {
    %c0_i32 = arith.constant 0 : i32
    %c0_i32_0 = arith.constant 0 : i32
    %c0_i32_1 = arith.constant 0 : i32
    return %c0_i32, %c0_i32_0 : i32, i32
  }
  func.func @transform_1(%arg0: i32) -> (i32, i32, i32) {
    %c0_i32 = arith.constant 0 : i32
    %c0_i32_0 = arith.constant 0 : i32
    %c0_i32_1 = arith.constant 0 : i32
    %c0_i32_2 = arith.constant 0 : i32
    return %c0_i32, %c0_i32_0, %c0_i32_1 : i32, i32, i32
  }
  func.func @transform_2(%arg0: i32) -> (i32, i32, i32) {
    %c0_i32 = arith.constant 0 : i32
    %c0_i32_0 = arith.constant 0 : i32
    %c0_i32_1 = arith.constant 0 : i32
    %c0_i32_2 = arith.constant 0 : i32
    return %c0_i32, %c0_i32_0, %c0_i32_1 : i32, i32, i32
  }
  func.func @transform_3(%arg0: i32) -> (i32, i32) {
    %c0_i32 = arith.constant 0 : i32
    %c0_i32_0 = arith.constant 0 : i32
    %c0_i32_1 = arith.constant 0 : i32
    return %c0_i32, %c0_i32_0 : i32, i32
  }
  func.func @transform_4(%arg0: i32) -> (i32, i32, i32) {
    %c0_i32 = arith.constant 0 : i32
    %c0_i32_0 = arith.constant 0 : i32
    %c0_i32_1 = arith.constant 0 : i32
    %c0_i32_2 = arith.constant 0 : i32
    return %c0_i32, %c0_i32_0, %c0_i32_1 : i32, i32, i32
  }
  func.func @transform_5(%arg0: i32) -> (i32, i32, i32) {
    %c0_i32 = arith.constant 0 : i32
    %c0_i32_0 = arith.constant 0 : i32
    %c0_i32_1 = arith.constant 0 : i32
    %c0_i32_2 = arith.constant 0 : i32
    return %c0_i32, %c0_i32_0, %c0_i32_1 : i32, i32, i32
  }
  func.func @transform_6(%arg0: i32) -> (i32, i32) {
    %c0_i32 = arith.constant 0 : i32
    %c0_i32_0 = arith.constant 0 : i32
    %c0_i32_1 = arith.constant 0 : i32
    return %c0_i32, %c0_i32_0 : i32, i32
  }
  func.func @transform_7(%arg0: i32) -> (i32, i32) {
    %c0_i32 = arith.constant 0 : i32
    %c0_i32_0 = arith.constant 0 : i32
    %c0_i32_1 = arith.constant 0 : i32
    return %c0_i32, %c0_i32_0 : i32, i32
  }
  func.func @transform_8(%arg0: i32) -> (i32, i32) {
    %c0_i32 = arith.constant 0 : i32
    %c0_i32_0 = arith.constant 0 : i32
    %c0_i32_1 = arith.constant 0 : i32
    return %c0_i32, %c0_i32_0 : i32, i32
  }
  func.func @transform_9(%arg0: i32) -> (i32, i32) {
    %c0_i32 = arith.constant 0 : i32
    %c0_i32_0 = arith.constant 0 : i32
    %c0_i32_1 = arith.constant 0 : i32
    return %c0_i32, %c0_i32_0 : i32, i32
  }
  func.func @transform_10(%arg0: i32) -> (i32, i32) {
    %c0_i32 = arith.constant 0 : i32
    %c0_i32_0 = arith.constant 0 : i32
    %c0_i32_1 = arith.constant 0 : i32
    return %c0_i32, %c0_i32_0 : i32, i32
  }
  func.func @transform_11(%arg0: i32) -> (i32, i32) {
    %c0_i32 = arith.constant 0 : i32
    %c0_i32_0 = arith.constant 0 : i32
    %c0_i32_1 = arith.constant 0 : i32
    return %c0_i32, %c0_i32_0 : i32, i32
  }
  func.func @transform_12(%arg0: i32) -> (i32, i32) {
    %c0_i32 = arith.constant 0 : i32
    %c0_i32_0 = arith.constant 0 : i32
    %c0_i32_1 = arith.constant 0 : i32
    return %c0_i32, %c0_i32_0 : i32, i32
  }
  func.func @transform_13(%arg0: i32) -> (i32, i32) {
    %c0_i32 = arith.constant 0 : i32
    %c0_i32_0 = arith.constant 0 : i32
    %c0_i32_1 = arith.constant 0 : i32
    return %c0_i32, %c0_i32_0 : i32, i32
  }
  func.func @transform_14(%arg0: i32) -> (i32, i32) {
    %c0_i32 = arith.constant 0 : i32
    %c0_i32_0 = arith.constant 0 : i32
    %c0_i32_1 = arith.constant 0 : i32
    return %c0_i32, %c0_i32_0 : i32, i32
  }
  func.func @transform_15(%arg0: i32) -> (i32, i32) {
    %c0_i32 = arith.constant 0 : i32
    %c0_i32_0 = arith.constant 0 : i32
    %c0_i32_1 = arith.constant 0 : i32
    return %c0_i32, %c0_i32_0 : i32, i32
  }
  func.func @transform_16(%arg0: i32) -> (i32, i32) {
    %c0_i32 = arith.constant 0 : i32
    %c0_i32_0 = arith.constant 0 : i32
    %c0_i32_1 = arith.constant 0 : i32
    return %c0_i32, %c0_i32_0 : i32, i32
  }
}

</mosaic_0001>

<bundles_post_ra>
// kernel: tile.18
= control target key start
LH: loop header
LB: loop body
LE: loop exit
PB: predicated region body
PF: predicated region fallthrough
CT: control target
= control target key end

     0   :  { %s22_s0 = inlined_call_operand.vmem [shape: f32[8], index: 0, kind: input, shape index: {}]   ;;  %s23_s1 = inlined_call_operand.vmem [shape: f32[6,8], index: 1, kind: output, shape index: {}]  }
   0x1   :  { %v4_v0 = vld [vmem:[%s22_s0] ss:$0 sm:$0xff] }
   0x2   :  { %5 = vst [vmem:[%s23_s1] sm:$0xff] %v4_v0 }

// kernel: tile.19
= control target key start
LH: loop header
LB: loop body
LE: loop exit
PB: predicated region body
PF: predicated region fallthrough
CT: control target
= control target key end

     0   :  { %s51_s10 = smov 40   ;;  %s52_s11 = smov 24   ;;  %vm3_vm0 = vcmask 64512   ;;  %vm9_vm1 = vcmask 392512   ;;  %vm15_vm2 = vcmask 326912   ;;  %vm21_vm3 = vcmask 261312   ;;  %s87_s0 = inlined_call_operand.vmem [shape: f32[6,8], index: 0, kind: input, shape index: {}]   ;;  %s88_s1 = inlined_call_operand.vmem [shape: f32[1,48], index: 1, kind: output, shape index: {}]  }
   0x1   :  { %v41_v0 = vld [vmem:[%s87_s0 + $0x5] sm:$0x1]   ;;  %v43_v1 = vld [vmem:[%s87_s0 + $0x3] sm:$0x1]   ;;  %v42_v2 = vld [vmem:[%s87_s0 + $0x4] sm:$0x1]  }
   0x2   :  { %7 = vrot.lane.b32.xlu0 %v41_v0, %s51_s10  ;;  %19 = vrot.lane.b32.xlu1 %v43_v1, %s52_s11  ;;  %v44_v3 = vld [vmem:[%s87_s0 + $0x2] sm:$0x1]   ;;  %v2_v4 = vld [vmem:[%s87_s0] sm:$0x1]   ;;  %s53_s18 = smov 32   ;;  %s54_s19 = smov 16  }
   0x3   :  { %4 = vst.msk [vmem:[#allocation0] sm:$0x1] %vm3_vm0, %v2_v4   ;;  %v45_v5 = vld [vmem:[%s87_s0 + $0x1] sm:$0x1]   ;;  %s55_s0 = smov 8   ;;  %vm27_vm4 = vcmask 195712  }
   0x4   :  { %vm33_vm5 = vcmask 130112  }
   0x6   :  { %13 = vrot.lane.b32.xlu0 %v42_v2, %s53_s18  ;;  %25 = vrot.lane.b32.xlu1 %v44_v3, %s54_s19 }
   0xa   :  { %31 = vrot.lane.b32.xlu0 %v45_v5, %s55_s0 }
  0x74   :  { %v8_v6 = vpop.permute.xlu0 %7   ;;  %v20_v7 = vpop.permute.xlu1 %19  }
  0x75   :  { %10 = vst.msk [vmem:[#allocation0] sm:$0x1] %vm9_vm1, %v8_v6  }
  0x78   :  { %v14_v8 = vpop.permute.xlu0 %13   ;;  %v26_v9 = vpop.permute.xlu1 %25  }
  0x79   :  { %16 = vst.msk [vmem:[#allocation0] sm:$0x1] %vm15_vm2, %v14_v8  }
  0x7a   :  { %22 = vst.msk [vmem:[#allocation0] sm:$0x1] %vm21_vm3, %v20_v7  }
  0x7b   :  { %28 = vst.msk [vmem:[#allocation0] sm:$0x1] %vm27_vm4, %v26_v9  }
  0x7c   :  { %v32_v10 = vpop.permute.xlu0 %31  }
  0x7d   :  { %34 = vst.msk [vmem:[#allocation0] sm:$0x1] %vm33_vm5, %v32_v10  }
  0x84   :  { %v38_v11 = vld [vmem:[#allocation0] sm:$0x1] }
  0x85   :  { %40 = vst [vmem:[%s88_s1] sm:$0x1] %v38_v11 }

// kernel: tile.23
= control target key start
LH: loop header
LB: loop body
LE: loop exit
PB: predicated region body
PF: predicated region fallthrough
CT: control target
= control target key end

     0   :  { %s22_s0 = inlined_call_operand.vmem [shape: f32[16], index: 0, kind: input, shape index: {}]   ;;  %s23_s1 = inlined_call_operand.vmem [shape: f32[6,16], index: 1, kind: output, shape index: {}]  }
   0x1   :  { %v4_v0 = vld [vmem:[%s22_s0] ss:$0 sm:$0xff] }
   0x2   :  { %5 = vst [vmem:[%s23_s1] sm:$0xff] %v4_v0 }

// kernel: tile.24
= control target key start
LH: loop header
LB: loop body
LE: loop exit
PB: predicated region body
PF: predicated region fallthrough
CT: control target
= control target key end

     0   :  { %s51_s10 = smov 80   ;;  %s52_s11 = smov 48   ;;  %vm3_vm0 = vcmask 130048   ;;  %vm9_vm1 = vcmask 786048   ;;  %vm15_vm2 = vcmask 654848   ;;  %vm21_vm3 = vcmask 523648   ;;  %s87_s0 = inlined_call_operand.vmem [shape: f32[6,16], index: 0, kind: input, shape index: {}]   ;;  %s88_s1 = inlined_call_operand.vmem [shape: f32[1,96], index: 1, kind: output, shape index: {}]  }
   0x1   :  { %v41_v0 = vld [vmem:[%s87_s0 + $0x5] sm:$0x1]   ;;  %v43_v1 = vld [vmem:[%s87_s0 + $0x3] sm:$0x1]   ;;  %v42_v2 = vld [vmem:[%s87_s0 + $0x4] sm:$0x1]  }
   0x2   :  { %7 = vrot.lane.b32.xlu0 %v41_v0, %s51_s10  ;;  %19 = vrot.lane.b32.xlu1 %v43_v1, %s52_s11  ;;  %v44_v3 = vld [vmem:[%s87_s0 + $0x2] sm:$0x1]   ;;  %v2_v4 = vld [vmem:[%s87_s0] sm:$0x1]   ;;  %s53_s18 = smov 64   ;;  %s54_s19 = smov 32  }
   0x3   :  { %4 = vst.msk [vmem:[#allocation0] sm:$0x1] %vm3_vm0, %v2_v4   ;;  %v45_v5 = vld [vmem:[%s87_s0 + $0x1] sm:$0x1]   ;;  %s55_s0 = smov 16   ;;  %vm27_vm4 = vcmask 392448  }
   0x4   :  { %vm33_vm5 = vcmask 261248  }
   0x6   :  { %13 = vrot.lane.b32.xlu0 %v42_v2, %s53_s18  ;;  %25 = vrot.lane.b32.xlu1 %v44_v3, %s54_s19 }
   0xa   :  { %31 = vrot.lane.b32.xlu0 %v45_v5, %s55_s0 }
  0x74   :  { %v8_v6 = vpop.permute.xlu0 %7   ;;  %v20_v7 = vpop.permute.xlu1 %19  }
  0x75   :  { %10 = vst.msk [vmem:[#allocation0] sm:$0x1] %vm9_vm1, %v8_v6  }
  0x78   :  { %v14_v8 = vpop.permute.xlu0 %13   ;;  %v26_v9 = vpop.permute.xlu1 %25  }
  0x79   :  { %16 = vst.msk [vmem:[#allocation0] sm:$0x1] %vm15_vm2, %v14_v8  }
  0x7a   :  { %22 = vst.msk [vmem:[#allocation0] sm:$0x1] %vm21_vm3, %v20_v7  }
  0x7b   :  { %28 = vst.msk [vmem:[#allocation0] sm:$0x1] %vm27_vm4, %v26_v9  }
  0x7c   :  { %v32_v10 = vpop.permute.xlu0 %31  }
  0x7d   :  { %34 = vst.msk [vmem:[#allocation0] sm:$0x1] %vm33_vm5, %v32_v10  }
  0x84   :  { %v38_v11 = vld [vmem:[#allocation0] sm:$0x1] }
  0x85   :  { %40 = vst [vmem:[%s88_s1] sm:$0x1] %v38_v11 }

// kernel: _corner_dimp_forward.1
= control target key start
LH: loop header
LB: loop body
LE: loop exit
PB: predicated region body
PF: predicated region fallthrough
CT: control target
= control target key end

     0   :  { %s7495_s0 = inlined_call_operand.vmem [shape: f32[256,18], index: 0, kind: input, shape index: {}]   ;;  %s7496_s1 = inlined_call_operand.vmem [shape: bf16[9,64,256], index: 1, kind: input, shape index: {}]   ;;  %s7497_s2 = inlined_call_operand.vmem [shape: bf16[9,18,48], index: 2, kind: input, shape index: {}]   ;;  %s7498_s3 = inlined_call_operand.vmem [shape: f32[1,48], index: 3, kind: input, shape index: {}]   ;;  %s7499_s4 = inlined_call_operand.vmem [shape: bf16[9,16,64], index: 4, kind: input, shape index: {}]   ;;  %s7500_s5 = inlined_call_operand.vmem [shape: bf16[9,48,96], index: 5, kind: input, shape index: {}]   ;;  %s7501_s6 = inlined_call_operand.vmem [shape: f32[1,96], index: 6, kind: input, shape index: {}]   ;;  %s7502_s7 = inlined_call_operand.vmem [shape: bf16[96,96], index: 7, kind: input, shape index: {}]   ;;  %s7503_s8 = inlined_call_operand.vmem [shape: f32[1,96], index: 8, kind: input, shape index: {}]   ;;  %s7504_s9 = inlined_call_operand.vmem [shape: f32[64,4], index: 9, kind: input, shape index: {}]   ;;  %s7505_s10 = inlined_call_operand.vmem [shape: f32[16,4], index: 10, kind: input, shape index: {}]   ;;  %s7506_s11 = inlined_call_operand.vmem [shape: bf16[16,64], index: 11, kind: input, shape index: {}]   ;;  %s7507_s12 = inlined_call_operand.vmem [shape: bf16[24,4], index: 12, kind: input, shape index: {}]   ;;  %s7508_s13 = inlined_call_operand.vmem [shape: f32[1,4], index: 13, kind: input, shape index: {}]   ;;  %s7509_s14 = inlined_call_operand.vmem [shape: f32[16,4], index: 14, kind: input, shape index: {}]   ;;  %s7510_s15 = inlined_call_operand.vmem [shape: f32[2,16], index: 15, kind: output, shape index: {0}]   ;;  %s7511_s16 = inlined_call_operand.hbm [shape: f32[2,4], index: 16, kind: output, shape index: {1}]  }
   0x1   :  { %7513 = sst [smem:[#allocation5_spill]] %s7495_s0 }
   0x2   :  { %s7514_s23 = sld [smem:[#allocation5_spill]]  ;;  %v5796_v26 = vld [vmem:[%s7496_s1 + $0x44] ss:$8 sps:$4 sm:$0xff]   ;;  %v5794_v50 = vld [vmem:[%s7496_s1 + $0x40] ss:$8 sps:$4 sm:$0xff]  }
   0x3   :  { %303 = vmatprep.mubr.bf16.mxu1 %v5796_v26  ;;  %v5802_v32 = vld [vmem:[%s7496_s1 + $0x4] ss:$8 sps:$4 sm:$0xff]   ;;  %v5800_v51 = vld [vmem:[%s7496_s1] ss:$8 sps:$4 sm:$0xff]   ;;  %v5797_v52 = vld [vmem:[%s7496_s1 + $0x54] ss:$8 sps:$4 sm:$0xff]  }
   0x4   :  { %182 = vmatprep.mubr.bf16.mxu0 %v5802_v32  ;;  %v5806_v53 = vld [vmem:[%s7496_s1 + $0x14] ss:$8 sps:$4 sm:$0xff]   ;;  %v5799_v54 = vld [vmem:[%s7496_s1 + $0x50] ss:$8 sps:$4 sm:$0xff]   ;;  %v5803_v56 = vld [vmem:[%s7496_s1 + $0x64] ss:$8 sps:$4 sm:$0xff]  }
   0x5   :  { %v5810_v55 = vld [vmem:[%s7496_s1 + $0x10] ss:$8 sps:$4 sm:$0xff]   ;;  %v5812_v57 = vld [vmem:[%s7496_s1 + $0x24] ss:$8 sps:$4 sm:$0xff]   ;;  %v5805_v58 = vld [vmem:[%s7496_s1 + $0x60] ss:$8 sps:$4 sm:$0xff]  }
   0x6   :  { %v5817_v59 = vld [vmem:[%s7496_s1 + $0x20] ss:$8 sps:$4 sm:$0xff]   ;;  %v5808_v60 = vld [vmem:[%s7496_s1 + $0x74] ss:$8 sps:$4 sm:$0xff]   ;;  %v5811_v62 = vld [vmem:[%s7496_s1 + $0x70] ss:$8 sps:$4 sm:$0xff]  }
   0x7   :  { %v5818_v61 = vld [vmem:[%s7496_s1 + $0x34] ss:$8 sps:$4 sm:$0xff]   ;;  %v5822_v63 = vld [vmem:[%s7496_s1 + $0x30] ss:$8 sps:$4 sm:$0xff]  }
   0x8   :  { %v70_v0 = vld [vmem:[%s7514_s23 + $0x80] sm:$0xff]  ;;  %v71_v1 = vld [vmem:[%s7514_s23 + $0x88] sm:$0xff]  ;;  %v72_v5 = vld [vmem:[%s7514_s23 + $0x90] sm:$0xff] }
   0x9   :  { %v54_v2 = vld [vmem:[%s7514_s23] sm:$0xff]  ;;  %v6116_v3 = vpack.c.bf16 %v71_v1, %v70_v0  ;;  %v55_v4 = vld [vmem:[%s7514_s23 + $0x8] sm:$0xff]  ;;  %v73_v6 = vld [vmem:[%s7514_s23 + $0x98] sm:$0xff] }
   0xa   :  { %v6127_v7 = vpack.c.bf16 %v55_v4, %v54_v2  ;;  %v6129_v8 = vpack.c.bf16 %v73_v6, %v72_v5  ;;  %v56_v9 = vld [vmem:[%s7514_s23 + $0x10] sm:$0xff]  ;;  %v57_v10 = vld [vmem:[%s7514_s23 + $0x18] sm:$0xff]  ;;  %v74_v11 = vld [vmem:[%s7514_s23 + $0xa0] sm:$0xff] }
   0xb   :  { %4803 = vmatprep.subr.bf16.mxu1 %v6116_v3  ;;  %v75_v12 = vld [vmem:[%s7514_s23 + $0xa8] sm:$0xff]  ;;  %4763 = vmatprep.subr.bf16.mxu0 %v6116_v3  ;;  %v6146_v13 = vpack.c.bf16 %v57_v10, %v56_v9  ;;  %v58_v15 = vld [vmem:[%s7514_s23 + $0x20] sm:$0xff]  ;;  %v76_v17 = vld [vmem:[%s7514_s23 + $0xb0] sm:$0xff] }
   0xc   :  { %4804 = vmatpush3.bf16.msra.mxu1 %v6127_v7  ;;  %4764 = vmatpush3.bf16.msra.mxu0 %v6127_v7  ;;  %v6150_v14 = vpack.c.bf16 %v75_v12, %v74_v11  ;;  %v59_v16 = vld [vmem:[%s7514_s23 + $0x28] sm:$0xff]  ;;  %v77_v18 = vld [vmem:[%s7514_s23 + $0xb8] sm:$0xff]  ;;  %v60_v21 = vld [vmem:[%s7514_s23 + $0x30] sm:$0xff] }
   0xd   :  { %4805 = vmatprep.subr.bf16.mxu1 %v6129_v8  ;;  %4765 = vmatprep.subr.bf16.mxu0 %v6129_v8  ;;  %v6166_v19 = vpack.c.bf16 %v59_v16, %v58_v15  ;;  %v6170_v20 = vpack.c.bf16 %v77_v18, %v76_v17  ;;  %v61_v22 = vld [vmem:[%s7514_s23 + $0x38] sm:$0xff]  ;;  %v78_v23 = vld [vmem:[%s7514_s23 + $0xc0] sm:$0xff]  ;;  %v79_v24 = vld [vmem:[%s7514_s23 + $0xc8] sm:$0xff] }
   0xe   :  { %v62_v25 = vld [vmem:[%s7514_s23 + $0x40] sm:$0xff]  ;;  %v6192_v27 = vpack.c.bf16 %v61_v22, %v60_v21  ;;  %v63_v28 = vld [vmem:[%s7514_s23 + $0x48] sm:$0xff]  ;;  %v6199_v29 = vpack.c.bf16 %v79_v24, %v78_v23  ;;  %v80_v30 = vld [vmem:[%s7514_s23 + $0xd0] sm:$0xff] }
   0xf   :  { %v81_v31 = vld [vmem:[%s7514_s23 + $0xd8] sm:$0xff]  ;;  %v6212_v33 = vpack.c.bf16 %v63_v28, %v62_v25  ;;  %v64_v34 = vld [vmem:[%s7514_s23 + $0x50] sm:$0xff]  ;;  %v82_v37 = vld [vmem:[%s7514_s23 + $0xe0] sm:$0xff] }
  0x10   :  { %4806 = vmatpush3.bf16.msra.mxu1 %v6146_v13  ;;  %4766 = vmatpush3.bf16.msra.mxu0 %v6146_v13  ;;  %v6219_v35 = vpack.c.bf16 %v81_v31, %v80_v30  ;;  %v65_v36 = vld [vmem:[%s7514_s23 + $0x58] sm:$0xff]  ;;  %v83_v38 = vld [vmem:[%s7514_s23 + $0xe8] sm:$0xff]  ;;  %v66_v40 = vld [vmem:[%s7514_s23 + $0x60] sm:$0xff] }
  0x11   :  { %4807 = vmatprep.subr.bf16.mxu1 %v6150_v14  ;;  %4767 = vmatprep.subr.bf16.mxu0 %v6150_v14  ;;  %v6232_v39 = vpack.c.bf16 %v65_v36, %v64_v34  ;;  %v67_v41 = vld [vmem:[%s7514_s23 + $0x68] sm:$0xff]  ;;  %v6242_v42 = vpack.c.bf16 %v83_v38, %v82_v37  ;;  %v84_v43 = vld [vmem:[%s7514_s23 + $0xf0] sm:$0xff]  ;;  %v85_v44 = vld [vmem:[%s7514_s23 + $0xf8] sm:$0xff] }
  0x12   :  { %v6252_v45 = vpack.c.bf16 %v67_v41, %v66_v40  ;;  %v68_v46 = vld [vmem:[%s7514_s23 + $0x70] sm:$0xff]  ;;  %v6259_v47 = vpack.c.bf16 %v85_v44, %v84_v43  ;;  %v69_v48 = vld [vmem:[%s7514_s23 + $0x78] sm:$0xff]  ;;  %v5816_v0 = vld [vmem:[%s7496_s1 + $0x84] ss:$8 sps:$4 sm:$0xff]  }
  0x13   :  { %v6266_v49 = vpack.c.bf16 %v69_v48, %v68_v46  ;;  %v5814_v1 = vld [vmem:[%s7496_s1 + $0x80] ss:$8 sps:$4 sm:$0xff]   ;;  %v5820_v2 = vld [vmem:[%s7496_s1 + $0x94] ss:$8 sps:$4 sm:$0xff]   ;;  %v5823_v4 = vld [vmem:[%s7496_s1 + $0x90] ss:$8 sps:$4 sm:$0xff]  }
  0x14   :  { %4808 = vmatpush3.bf16.msra.mxu1 %v6166_v19  ;;  %4768 = vmatpush3.bf16.msra.mxu0 %v6166_v19  ;;  %v5824_v5 = vld [vmem:[%s7496_s1 + $0xa4] ss:$8 sps:$4 sm:$0xff]   ;;  %v5826_v6 = vld [vmem:[%s7496_s1 + $0xa0] ss:$8 sps:$4 sm:$0xff]   ;;  %v5827_v9 = vld [vmem:[%s7496_s1 + $0xb4] ss:$8 sps:$4 sm:$0xff]  }
  0x15   :  { %4809 = vmatprep.subr.bf16.mxu1 %v6170_v20  ;;  %4769 = vmatprep.subr.bf16.mxu0 %v6170_v20 }
  0x18   :  { %4810 = vmatpush3.bf16.msra.mxu1 %v6192_v27  ;;  %4770 = vmatpush3.bf16.msra.mxu0 %v6192_v27 }
  0x19   :  { %4811 = vmatprep.subr.bf16.mxu1 %v6199_v29  ;;  %4771 = vmatprep.subr.bf16.mxu0 %v6199_v29 }
  0x1c   :  { %4812 = vmatpush3.bf16.msra.mxu1 %v6212_v33  ;;  %4772 = vmatpush3.bf16.msra.mxu0 %v6212_v33 }
  0x1d   :  { %4813 = vmatprep.subr.bf16.mxu1 %v6219_v35  ;;  %4773 = vmatprep.subr.bf16.mxu0 %v6219_v35 }
  0x20   :  { %4814 = vmatpush3.bf16.msra.mxu1 %v6232_v39  ;;  %4774 = vmatpush3.bf16.msra.mxu0 %v6232_v39 }
  0x21   :  { %4815 = vmatprep.subr.bf16.mxu1 %v6242_v42  ;;  %4775 = vmatprep.subr.bf16.mxu0 %v6242_v42 }
  0x24   :  { %4816 = vmatpush3.bf16.msra.mxu1 %v6252_v45  ;;  %4776 = vmatpush3.bf16.msra.mxu0 %v6252_v45 }
  0x25   :  { %4817 = vmatprep.subr.bf16.mxu1 %v6259_v47  ;;  %4777 = vmatprep.subr.bf16.mxu0 %v6259_v47 }
  0x28   :  { %4818 = vmatpush3.bf16.msra.mxu1 %v6266_v49  ;;  %4778 = vmatpush3.bf16.msra.mxu0 %v6266_v49 }
  0x29   :  { %4855 = vmatprep.subr.bf16.mxu1 %v6116_v3 }
  0x2b   :  { %304 = vmatmul.mubr.bf16.vlgmr.msra.gmra.mrb[0].mxu1 %v5794_v50  ;;  %183 = vmatmul.mubr.bf16.vlgmr.msra.gmra.mrb[0].mxu0 %v5800_v51 }
  0x2c   :  { %4856 = vmatpush3.bf16.msra.mxu1 %v6127_v7  ;;  %311 = vmatprep.mubr.bf16.mxu1 %v5797_v52 }
  0x2d   :  { %4857 = vmatprep.subr.bf16.mxu1 %v6129_v8  ;;  %190 = vmatprep.mubr.bf16.mxu0 %v5806_v53 }
  0x30   :  { %4858 = vmatpush3.bf16.msra.mxu1 %v6146_v13 }
  0x31   :  { %4859 = vmatprep.subr.bf16.mxu1 %v6150_v14 }
  0x33   :  { %312 = vmatmul.mubr.bf16.gmra.mrb[4].mxu1 %v5799_v54  ;;  %191 = vmatmul.mubr.bf16.gmra.mrb[4].mxu0 %v5810_v55 }
  0x34   :  { %4860 = vmatpush3.bf16.msra.mxu1 %v6166_v19  ;;  %319 = vmatprep.mubr.bf16.mxu1 %v5803_v56 }
  0x35   :  { %4861 = vmatprep.subr.bf16.mxu1 %v6170_v20  ;;  %198 = vmatprep.mubr.bf16.mxu0 %v5812_v57 }
  0x38   :  { %4862 = vmatpush3.bf16.msra.mxu1 %v6192_v27 }
  0x39   :  { %4863 = vmatprep.subr.bf16.mxu1 %v6199_v29 }
  0x3b   :  { %320 = vmatmul.mubr.bf16.gmra.mrb[8].mxu1 %v5805_v58  ;;  %199 = vmatmul.mubr.bf16.gmra.mrb[8].mxu0 %v5817_v59 }
  0x3c   :  { %4864 = vmatpush3.bf16.msra.mxu1 %v6212_v33  ;;  %327 = vmatprep.mubr.bf16.mxu1 %v5808_v60 }
  0x3d   :  { %4865 = vmatprep.subr.bf16.mxu1 %v6219_v35  ;;  %206 = vmatprep.mubr.bf16.mxu0 %v5818_v61 }
  0x40   :  { %4866 = vmatpush3.bf16.msra.mxu1 %v6232_v39 }
  0x41   :  { %4867 = vmatprep.subr.bf16.mxu1 %v6242_v42 }
  0x43   :  { %328 = vmatmul.mubr.bf16.gmra.mrb[12].mxu1 %v5811_v62  ;;  %207 = vmatmul.mubr.bf16.gmra.mrb[12].mxu0 %v5822_v63 }
  0x44   :  { %4868 = vmatpush3.bf16.msra.mxu1 %v6252_v45  ;;  %605 = vmatprep.mubr.bf16.mxu1 %v5816_v0 }
  0x45   :  { %4869 = vmatprep.subr.bf16.mxu1 %v6259_v47 }
  0x48   :  { %4870 = vmatpush3.bf16.msra.mxu1 %v6266_v49 }
  0x49   :  { %4901 = vmatprep.subr.bf16.mxu1 %v6116_v3 }
  0x4b   :  { %606 = vmatmul.mubr.bf16.vlgmr.msra.gmra.mrb[16].mxu1 %v5814_v1 }
  0x4c   :  { %4902 = vmatpush3.bf16.msra.mxu1 %v6127_v7  ;;  %613 = vmatprep.mubr.bf16.mxu1 %v5820_v2 }
  0x4d   :  { %4903 = vmatprep.subr.bf16.mxu1 %v6129_v8 }
  0x50   :  { %4904 = vmatpush3.bf16.msra.mxu1 %v6146_v13 }
  0x51   :  { %4905 = vmatprep.subr.bf16.mxu1 %v6150_v14 }
  0x53   :  { %614 = vmatmul.mubr.bf16.gmra.mrb[20].mxu1 %v5823_v4 }
  0x54   :  { %4906 = vmatpush3.bf16.msra.mxu1 %v6166_v19  ;;  %621 = vmatprep.mubr.bf16.mxu1 %v5824_v5 }
  0x55   :  { %4907 = vmatprep.subr.bf16.mxu1 %v6170_v20 }
  0x58   :  { %4908 = vmatpush3.bf16.msra.mxu1 %v6192_v27 }
  0x59   :  { %4909 = vmatprep.subr.bf16.mxu1 %v6199_v29 }
  0x5b   :  { %622 = vmatmul.mubr.bf16.gmra.mrb[24].mxu1 %v5826_v6 }
  0x5c   :  { %4910 = vmatpush3.bf16.msra.mxu1 %v6212_v33  ;;  %629 = vmatprep.mubr.bf16.mxu1 %v5827_v9 }
  0x5d   :  { %4911 = vmatprep.subr.bf16.mxu1 %v6219_v35 }
  0x5e   :  { %22 = vsyncpa [#allocation3], 0  ;;  %v5829_v10 = vld [vmem:[%s7496_s1 + $0xb0] ss:$8 sps:$4 sm:$0xff]   ;;  %v5832_v11 = vld [vmem:[%s7496_s1 + $0xc4] ss:$8 sps:$4 sm:$0xff]  }
  0x5f   :  { %v5830_v12 = vld [vmem:[%s7496_s1 + $0xc0] ss:$8 sps:$4 sm:$0xff]   ;;  %v5833_v15 = vld [vmem:[%s7496_s1 + $0xd4] ss:$8 sps:$4 sm:$0xff]   ;;  %v5835_v16 = vld [vmem:[%s7496_s1 + $0xd0] ss:$8 sps:$4 sm:$0xff]  }
  0x60   :  { %4912 = vmatpush3.bf16.msra.mxu1 %v6232_v39  ;;  %v5836_v17 = vld [vmem:[%s7496_s1 + $0xe4] ss:$8 sps:$4 sm:$0xff]   ;;  %v5838_v18 = vld [vmem:[%s7496_s1 + $0xe0] ss:$8 sps:$4 sm:$0xff]   ;;  %v5839_v21 = vld [vmem:[%s7496_s1 + $0xf4] ss:$8 sps:$4 sm:$0xff]  }
  0x61   :  { %4913 = vmatprep.subr.bf16.mxu1 %v6242_v42  ;;  %v5841_v22 = vld [vmem:[%s7496_s1 + $0xf0] ss:$8 sps:$4 sm:$0xff]   ;;  %v5844_v23 = vld [vmem:[%s7496_s1 + $0x104] ss:$8 sps:$4 sm:$0xff]   ;;  %v5842_v25 = vld [vmem:[%s7496_s1 + $0x100] ss:$8 sps:$4 sm:$0xff]  }
  0x62   :  { %v5854_v24 = vld [vmem:[%s7497_s2 + $0xc] sm:$0xff]   ;;  %v5845_v26 = vld [vmem:[%s7496_s1 + $0x114] ss:$8 sps:$4 sm:$0xff]   ;;  %vm366_vm0 = vcmask 1040384   ;;  %v5850_v34 = vld [vmem:[%s7496_s1 + $0x120] ss:$8 sps:$4 sm:$0xff]  }
  0x63   :  { %630 = vmatmul.mubr.bf16.gmra.mrb[28].mxu1 %v5829_v10  ;;  %5289 = vmatprep.subr.bf16.mxu0 %v5854_v24  ;;  %v5855_v28 = vld [vmem:[%s7497_s2 + $0x14] ss:$0 sps:$4 sm:$0x11]   ;;  %v5847_v31 = vld [vmem:[%s7496_s1 + $0x110] ss:$8 sps:$4 sm:$0xff]   ;;  %v6452_v37 = vld [vmem:[%s7497_s2] sm:$0xff]  }
  0x64   :  { %4914 = vmatpush3.bf16.msra.mxu1 %v6252_v45  ;;  %824 = vmatprep.mubr.bf16.mxu1 %v5832_v11  ;;  %v368_v30 = vsel %vm366_vm0, %v5855_v28, 0  ;;  %v5848_v32 = vld [vmem:[%s7496_s1 + $0x124] ss:$8 sps:$4 sm:$0xff]   ;;  %v5851_v36 = vld [vmem:[%s7496_s1 + $0x134] ss:$8 sps:$4 sm:$0xff]   ;;  %vm353_vm1 = vcmask 146432  }
  0x65   :  { %4915 = vmatprep.subr.bf16.mxu1 %v6259_v47  ;;  %5290 = vmatpush3.bf16.msra.mxu0 %v5854_v24  ;;  %v5853_v38 = vld [vmem:[%s7496_s1 + $0x130] ss:$8 sps:$4 sm:$0xff]   ;;  %v5866_v40 = vld [vmem:[%s7496_s1 + $0x184] ss:$8 sps:$4 sm:$0xff]   ;;  %v5864_v41 = vld [vmem:[%s7496_s1 + $0x180] ss:$8 sps:$4 sm:$0xff]  }
  0x66   :  { %5745 = vmatprep.subr.msk.bf16.mxu0 %vm366_vm0, %v5855_v28  ;;  %v5867_v54 = vld [vmem:[%s7496_s1 + $0x194] ss:$8 sps:$4 sm:$0xff]   ;;  %v5869_v57 = vld [vmem:[%s7496_s1 + $0x190] ss:$8 sps:$4 sm:$0xff]   ;;  %v5873_v9 = vld [vmem:[%s7496_s1 + $0x1a4] ss:$8 sps:$4 sm:$0xff]  }
  0x67   :  { %vm6011_vm2 = vmmov 0   ;;  %vm3487_vm3 = vcmask 195712   ;;  %vm2091_vm4 = vcmask 523264   ;;  %s6012_s21 = smov 112   ;;  %vm3387_vm5 = vcmask 64512   ;;  %s6017_s17 = smov 96  }
  0x68   :  { %4916 = vmatpush3.bf16.msra.mxu1 %v6266_v49  ;;  %vm2221_vm6 = vcmask 392192   ;;  %vm3263_vm7 = vcmask 785408   ;;  %vm3432_vm8 = vcmask 392448   ;;  %vm3328_vm9 = vcmask 130048  }
  0x69   :  { %4947 = vmatprep.subr.bf16.mxu1 %v6116_v3  ;;  %5292 = vmatpush3.bf16.msra.mxu0 %v368_v30  ;;  %vm3965_vm10 = vcmask 523648   ;;  %vm3871_vm11 = vcmask 261248   ;;  %vm7306_vm12 = vmpackc.low %vm3328_vm9, %vm3328_vm9  ;;  %vm4020_vm13 = vcmask 261312   ;;  %vm3922_vm14 = vcmask 130112  }
  0x6a   :  { %5301 = vmatprep.subr.bf16.mxu0 %v6452_v37  ;;  %vm3777_vm15 = vcmask 1043456  }
  0x6b   :  { %825 = vmatmul.mubr.bf16.vlgmr.msra.gmra.mrb[32].mxu1 %v5830_v12  ;;  %v5875_v12 = vld [vmem:[%s7496_s1 + $0x1a0] ss:$8 sps:$4 sm:$0xff]  }
  0x6c   :  { %4948 = vmatpush3.bf16.msra.mxu1 %v6127_v7  ;;  %832 = vmatprep.mubr.bf16.mxu1 %v5833_v15 }
  0x6d   :  { %4949 = vmatprep.subr.bf16.mxu1 %v6129_v8 }
  0x70   :  { %4950 = vmatpush3.bf16.msra.mxu1 %v6146_v13 }
  0x71   :  { %4951 = vmatprep.subr.bf16.mxu1 %v6150_v14 }
  0x73   :  { %833 = vmatmul.mubr.bf16.gmra.mrb[36].mxu1 %v5835_v16 }
  0x74   :  { %4952 = vmatpush3.bf16.msra.mxu1 %v6166_v19  ;;  %840 = vmatprep.mubr.bf16.mxu1 %v5836_v17 }
  0x75   :  { %4953 = vmatprep.subr.bf16.mxu1 %v6170_v20 }
  0x78   :  { %4954 = vmatpush3.bf16.msra.mxu1 %v6192_v27 }
  0x79   :  { %4955 = vmatprep.subr.bf16.mxu1 %v6199_v29 }
  0x7b   :  { %841 = vmatmul.mubr.bf16.gmra.mrb[40].mxu1 %v5838_v18 }
  0x7c   :  { %4956 = vmatpush3.bf16.msra.mxu1 %v6212_v33  ;;  %848 = vmatprep.mubr.bf16.mxu1 %v5839_v21  ;;  %v5857_v21 = vld [vmem:[%s7497_s2 + $0x8] ss:$0 sps:$4 sm:$0x11]  }
  0x7d   :  { %4957 = vmatprep.subr.bf16.mxu1 %v6219_v35 }
  0x80   :  { %4958 = vmatpush3.bf16.msra.mxu1 %v6232_v39 }
  0x81   :  { %4959 = vmatprep.subr.bf16.mxu1 %v6242_v42 }
  0x83   :  { %849 = vmatmul.mubr.bf16.gmra.mrb[44].mxu1 %v5841_v22 }
  0x84   :  { %4960 = vmatpush3.bf16.msra.mxu1 %v6252_v45  ;;  %1043 = vmatprep.mubr.bf16.mxu1 %v5844_v23 }
  0x85   :  { %4961 = vmatprep.subr.bf16.mxu1 %v6259_v47 }
  0x88   :  { %4962 = vmatpush3.bf16.msra.mxu1 %v6266_v49 }
  0x89   :  { %5039 = vmatprep.subr.bf16.mxu1 %v6116_v3 }
  0x8b   :  { %1044 = vmatmul.mubr.bf16.vlgmr.msra.gmra.mrb[48].mxu1 %v5842_v25 }
  0x8c   :  { %1051 = vmatprep.mubr.bf16.mxu1 %v5845_v26  ;;  %5040 = vmatpush3.bf16.msra.mxu1 %v6127_v7  ;;  %v5878_v26 = vld [vmem:[%s7496_s1 + $0x1b4] ss:$8 sps:$4 sm:$0xff]  }
  0x8d   :  { %5041 = vmatprep.subr.bf16.mxu1 %v6129_v8 }
  0x90   :  { %5042 = vmatpush3.bf16.msra.mxu1 %v6146_v13 }
  0x91   :  { %5043 = vmatprep.subr.bf16.mxu1 %v6150_v14 }
  0x93   :  { %1052 = vmatmul.mubr.bf16.gmra.mrb[52].mxu1 %v5847_v31 }
  0x94   :  { %1059 = vmatprep.mubr.bf16.mxu1 %v5848_v32  ;;  %5044 = vmatpush3.bf16.msra.mxu1 %v6166_v19  ;;  %v457_v32 = vsel %vm366_vm0, %v5857_v21, 0 }
  0x95   :  { %5045 = vmatprep.subr.bf16.mxu1 %v6170_v20 }
  0x98   :  { %5046 = vmatpush3.bf16.msra.mxu1 %v6192_v27 }
  0x99   :  { %5047 = vmatprep.subr.bf16.mxu1 %v6199_v29 }
  0x9b   :  { %1060 = vmatmul.mubr.bf16.gmra.mrb[56].mxu1 %v5850_v34 }
  0x9c   :  { %1067 = vmatprep.mubr.bf16.mxu1 %v5851_v36  ;;  %5048 = vmatpush3.bf16.msra.mxu1 %v6212_v33  ;;  %v5858_v36 = vld [vmem:[%s7497_s2 + $0x18] sm:$0xff]  }
  0x9d   :  { %5049 = vmatprep.subr.bf16.mxu1 %v6219_v35 }
  0xa0   :  { %5050 = vmatpush3.bf16.msra.mxu1 %v6232_v39 }
  0xa1   :  { %5051 = vmatprep.subr.bf16.mxu1 %v6242_v42 }
  0xa3   :  { %1068 = vmatmul.mubr.bf16.gmra.mrb[60].mxu1 %v5853_v38 }
  0xa4   :  { %5052 = vmatpush3.bf16.msra.mxu1 %v6252_v45  ;;  %1481 = vmatprep.mubr.bf16.mxu1 %v5866_v40  ;;  %v5881_v40 = vld [vmem:[%s7496_s1 + $0x1b0] ss:$8 sps:$4 sm:$0xff]  }
  0xa5   :  { %5053 = vmatprep.subr.bf16.mxu1 %v6259_v47 }
  0xa8   :  { %5054 = vmatpush3.bf16.msra.mxu1 %v6266_v49 }
  0xa9   :  { %5085 = vmatprep.subr.bf16.mxu1 %v6116_v3 }
  0xab   :  { %1482 = vmatmul.mubr.bf16.vlgmr.msra.gmra.mrb[64].mxu1 %v5864_v41 }
  0xac   :  { %5086 = vmatpush3.bf16.msra.mxu1 %v6127_v7  ;;  %1489 = vmatprep.mubr.bf16.mxu1 %v5867_v54  ;;  %v5884_v54 = vld [vmem:[%s7496_s1 + $0x1c0] ss:$8 sps:$4 sm:$0xff]  }
  0xad   :  { %5087 = vmatprep.subr.bf16.mxu1 %v6129_v8 }
  0xb0   :  { %5088 = vmatpush3.bf16.msra.mxu1 %v6146_v13 }
  0xb1   :  { %5089 = vmatprep.subr.bf16.mxu1 %v6150_v14 }
  0xb3   :  { %1490 = vmatmul.mubr.bf16.gmra.mrb[68].mxu1 %v5869_v57 }
  0xb4   :  { %5090 = vmatpush3.bf16.msra.mxu1 %v6166_v19  ;;  %1497 = vmatprep.mubr.bf16.mxu1 %v5873_v9 }
  0xb5   :  { %5091 = vmatprep.subr.bf16.mxu1 %v6170_v20 }
  0xb8   :  { %5092 = vmatpush3.bf16.msra.mxu1 %v6192_v27 }
  0xb9   :  { %5093 = vmatprep.subr.bf16.mxu1 %v6199_v29 }
  0xbb   :  { %1498 = vmatmul.mubr.bf16.gmra.mrb[72].mxu1 %v5875_v12 }
  0xbc   :  { %5094 = vmatpush3.bf16.msra.mxu1 %v6212_v33  ;;  %1505 = vmatprep.mubr.bf16.mxu1 %v5878_v26 }
  0xbd   :  { %5095 = vmatprep.subr.bf16.mxu1 %v6219_v35 }
  0xc0   :  { %5096 = vmatpush3.bf16.msra.mxu1 %v6232_v39 }
  0xc1   :  { %5097 = vmatprep.subr.bf16.mxu1 %v6242_v42 }
  0xc3   :  { %1506 = vmatmul.mubr.bf16.gmra.mrb[76].mxu1 %v5881_v40  ;;  %v5902_v40 = vld [vmem:[%s7496_s1 + $0x204] ss:$8 sps:$4 sm:$0xff]  }
  0xc4   :  { %5098 = vmatpush3.bf16.msra.mxu1 %v6252_v45 }
  0xc5   :  { %5099 = vmatprep.subr.bf16.mxu1 %v6259_v47 }
  0xc8   :  { %5100 = vmatpush3.bf16.msra.mxu1 %v6266_v49 }
  0xc9   :  { %5131 = vmatprep.subr.bf16.mxu1 %v6116_v3 }
  0xfe   :  { %v4819_v43 = vpop.f32.mrb[0].mxu1  ;;  %v4779_v44 = vpop.f32.mrb[0].mxu0 }
  0xff   :  { %v4820_v46 = vpop.f32.mrb[1].mxu1  ;;  %v4780_v48 = vpop.f32.mrb[1].mxu0 }
 0x100   :  { %v4821_v50 = vadd.f32 %v4820_v46, %v4819_v43  ;;  %v4822_v51 = vpop.f32.mrb[2].mxu1  ;;  %v6474_v52 = vadd.f32 %v4780_v48, %v4779_v44  ;;  %v4782_v53 = vpop.f32.mrb[2].mxu0 }
 0x101   :  { %v4823_v55 = vpop.f32.mrb[3].mxu1  ;;  %v4783_v56 = vpop.f32.mrb[3].mxu0 }
 0x102   :  { %v4824_v58 = vadd.f32 %v4823_v55, %v4822_v51  ;;  %v6484_v59 = vadd.f32 %v4783_v56, %v4782_v53  ;;  %v5886_v55 = vld [vmem:[%s7496_s1 + $0x1c4] ss:$8 sps:$4 sm:$0xff]  }
 0x103   :  { %1700 = vmatprep.mubr.bf16.mxu1 %v5886_v55 }
 0x104   :  { %v340_v60 = vpack.c.bf16 %v4824_v58, %v4821_v50  ;;  %v218_v61 = vpack.c.bf16 %v6484_v59, %v6474_v52  ;;  %1701 = vmatmul.mubr.bf16.vlgmr.msra.gmra.mrb[80].mxu1 %v5884_v54  ;;  %v5859_v59 = vld [vmem:[%s7497_s2 + $0x20] ss:$0 sps:$4 sm:$0x11]  }
 0x105   :  { %5132 = vmatpush3.bf16.msra.mxu1 %v6127_v7 }
 0x106   :  { %v4825_v62 = vpop.f32.mrb[4].mxu1  ;;  %5293 = vmatprep.mubr.msk.bf16.mxu0 %vm353_vm1, %v340_v60  ;;  %v4785_v63 = vpop.f32.mrb[4].mxu0  ;;  %5133 = vmatprep.subr.bf16.mxu1 %v6129_v8 }
 0x107   :  { %v4826_v0 = vpop.f32.mrb[5].mxu1  ;;  %v4786_v1 = vpop.f32.mrb[5].mxu0 }
 0x108   :  { %v4827_v2 = vadd.f32 %v4826_v0, %v4825_v62  ;;  %v4828_v4 = vpop.f32.mrb[6].mxu1  ;;  %v6491_v5 = vadd.f32 %v4786_v1, %v4785_v63  ;;  %v4788_v6 = vpop.f32.mrb[6].mxu0 }
 0x109   :  { %v4829_v10 = vpop.f32.mrb[7].mxu1  ;;  %v4789_v11 = vpop.f32.mrb[7].mxu0  ;;  %5134 = vmatpush3.bf16.msra.mxu1 %v6146_v13 }
 0x10a   :  { %v4830_v15 = vadd.f32 %v4829_v10, %v4828_v4  ;;  %v6501_v16 = vadd.f32 %v4789_v11, %v4788_v6  ;;  %v5890_v10 = vld [vmem:[%s7496_s1 + $0x1d4] ss:$8 sps:$4 sm:$0xff]   ;;  %5135 = vmatprep.subr.bf16.mxu1 %v6150_v14 }
 0x10b   :  { %1708 = vmatprep.mubr.bf16.mxu1 %v5890_v10 }
 0x10c   :  { %v341_v17 = vpack.c.bf16 %v4830_v15, %v4827_v2  ;;  %v219_v18 = vpack.c.bf16 %v6501_v16, %v6491_v5  ;;  %v668_v5 = vsel %vm366_vm0, %v5859_v59, 0  ;;  %v5860_v16 = vld [vmem:[%s7497_s2 + $0x24] sm:$0xff]  }
 0x10d   :  { %5136 = vmatpush3.bf16.msra.mxu1 %v6166_v19 }
 0x10e   :  { %v4831_v22 = vpop.f32.mrb[8].mxu1  ;;  %5294 = vmatmul.mubr.msk.bf16.vlgmr.msra.gmra.mrb[16].mxu0 %vm353_vm1, %v341_v17  ;;  %v4791_v23 = vpop.f32.mrb[8].mxu0  ;;  %v5893_v17 = vld [vmem:[%s7496_s1 + $0x1d0] ss:$8 sps:$4 sm:$0xff]   ;;  %5137 = vmatprep.subr.bf16.mxu1 %v6170_v20 }
 0x10f   :  { %v4832_v24 = vpop.f32.mrb[9].mxu1  ;;  %5302 = vmatpush3.bf16.msra.mxu0 %v6452_v37  ;;  %v4792_v25 = vpop.f32.mrb[9].mxu0  ;;  %1709 = vmatmul.mubr.bf16.gmra.mrb[84].mxu1 %v5893_v17  ;;  %v5908_v17 = vld [vmem:[%s7496_s1 + $0x220] ss:$8 sps:$4 sm:$0xff]  }
 0x110   :  { %v4833_v28 = vadd.f32 %v4832_v24, %v4831_v22  ;;  %v4834_v30 = vpop.f32.mrb[10].mxu1  ;;  %5746 = vmatprep.subr.msk.bf16.mxu0 %vm366_vm0, %v5857_v21  ;;  %v6516_v31 = vadd.f32 %v4792_v25, %v4791_v23  ;;  %v4794_v34 = vpop.f32.mrb[10].mxu0  ;;  %v5894_v22 = vld [vmem:[%s7496_s1 + $0x1e4] ss:$8 sps:$4 sm:$0xff]   ;;  %v5896_v24 = vld [vmem:[%s7496_s1 + $0x1e0] ss:$8 sps:$4 sm:$0xff]  }
 0x111   :  { %v4835_v37 = vpop.f32.mrb[11].mxu1  ;;  %v4795_v38 = vpop.f32.mrb[11].mxu0  ;;  %5138 = vmatpush3.bf16.msra.mxu1 %v6192_v27  ;;  %1716 = vmatprep.mubr.bf16.mxu1 %v5894_v22 }
 0x112   :  { %v4836_v41 = vadd.f32 %v4835_v37, %v4834_v30  ;;  %v4796_v43 = vadd.f32 %v4795_v38, %v4794_v34  ;;  %5139 = vmatprep.subr.bf16.mxu1 %v6199_v29 }
 0x113   :  { %5304 = vmatpush3.bf16.msra.mxu0 %v457_v32 }
 0x114   :  { %v342_v44 = vpack.c.bf16 %v4836_v41, %v4833_v28  ;;  %v220_v46 = vpack.c.bf16 %v4796_v43, %v6516_v31  ;;  %5313 = vmatprep.subr.bf16.mxu0 %v5858_v36  ;;  %v5897_v28 = vld [vmem:[%s7496_s1 + $0x1f4] ss:$8 sps:$4 sm:$0xff]  }
 0x115   :  { %5140 = vmatpush3.bf16.msra.mxu1 %v6212_v33 }
 0x116   :  { %v4837_v48 = vpop.f32.mrb[12].mxu1  ;;  %5297 = vmatprep.mubr.msk.bf16.mxu0 %vm353_vm1, %v342_v44  ;;  %v4797_v50 = vpop.f32.mrb[12].mxu0  ;;  %5141 = vmatprep.subr.bf16.mxu1 %v6219_v35 }
 0x117   :  { %v4838_v51 = vpop.f32.mrb[13].mxu1  ;;  %v4798_v53 = vpop.f32.mrb[13].mxu0  ;;  %1717 = vmatmul.mubr.bf16.gmra.mrb[88].mxu1 %v5896_v24  ;;  %v5863_v24 = vld [vmem:[%s7497_s2 + $0x38] ss:$0 sps:$4 sm:$0x11]  }
 0x118   :  { %v4839_v56 = vadd.f32 %v4838_v51, %v4837_v48  ;;  %v4840_v57 = vpop.f32.mrb[14].mxu1  ;;  %v4799_v58 = vadd.f32 %v4798_v53, %v4797_v50  ;;  %v4800_v60 = vpop.f32.mrb[14].mxu0  ;;  %1724 = vmatprep.mubr.bf16.mxu1 %v5897_v28  ;;  %v5900_v51 = vld [vmem:[%s7496_s1 + $0x200] ss:$8 sps:$4 sm:$0xff]   ;;  %v1106_v28 = vsel %vm366_vm0, %v5863_v24, 0 }
 0x119   :  { %v4841_v62 = vpop.f32.mrb[15].mxu1  ;;  %v4801_v63 = vpop.f32.mrb[15].mxu0  ;;  %5142 = vmatpush3.bf16.msra.mxu1 %v6232_v39 }
 0x11a   :  { %v4842_v0 = vadd.f32 %v4841_v62, %v4840_v57  ;;  %v4802_v1 = vadd.f32 %v4801_v63, %v4800_v60  ;;  %5143 = vmatprep.subr.bf16.mxu1 %v6242_v42  ;;  %v5903_v57 = vld [vmem:[%s7496_s1 + $0x214] ss:$8 sps:$4 sm:$0xff]  }
 0x11c   :  { %v343_v2 = vpack.c.bf16 %v4842_v0, %v4839_v56  ;;  %v221_v4 = vpack.c.bf16 %v4802_v1, %v4799_v58  ;;  %v5862_v56 = vld [vmem:[%s7497_s2 + $0x30] sm:$0xff]  }
 0x11d   :  { %5144 = vmatpush3.bf16.msra.mxu1 %v6252_v45  ;;  %v5905_v1 = vld [vmem:[%s7496_s1 + $0x210] ss:$8 sps:$4 sm:$0xff]  }
 0x11e   :  { %5298 = vmatmul.mubr.msk.bf16.gmra.mrb[20].mxu0 %vm353_vm1, %v343_v2  ;;  %v4871_v6 = vpop.f32.mrb[16].mxu1  ;;  %5145 = vmatprep.subr.bf16.mxu1 %v6259_v47 }
 0x11f   :  { %v4872_v9 = vpop.f32.mrb[17].mxu1  ;;  %5305 = vmatprep.mubr.msk.bf16.mxu0 %vm353_vm1, %v218_v61 }
 0x120   :  { %v4873_v11 = vadd.f32 %v4872_v9, %v4871_v6  ;;  %v4874_v12 = vpop.f32.mrb[18].mxu1  ;;  %v5906_v6 = vld [vmem:[%s7496_s1 + $0x224] ss:$8 sps:$4 sm:$0xff]  }
 0x121   :  { %v4875_v15 = vpop.f32.mrb[19].mxu1  ;;  %5146 = vmatpush3.bf16.msra.mxu1 %v6266_v49 }
 0x122   :  { %v4876_v21 = vadd.f32 %v4875_v15, %v4874_v12 }
 0x124   :  { %v642_v52 = vpack.c.bf16 %v4876_v21, %v4873_v11 }
 0x126   :  { %5306 = vmatmul.mubr.msk.bf16.vlgmr.msra.gmra.mrb[16].mxu0 %vm353_vm1, %v219_v18  ;;  %v4877_v61 = vpop.f32.mrb[20].mxu1 }
 0x127   :  { %v4878_v23 = vpop.f32.mrb[21].mxu1  ;;  %5309 = vmatprep.mubr.msk.bf16.mxu0 %vm353_vm1, %v220_v46  ;;  %5314 = vmatpush3.bf16.msra.mxu0 %v5858_v36  ;;  %v5899_v36 = vld [vmem:[%s7496_s1 + $0x1f0] ss:$8 sps:$4 sm:$0xff]   ;;  %v5861_v46 = vld [vmem:[%s7497_s2 + $0x2c] ss:$0 sps:$4 sm:$0x11]  }
 0x128   :  { %v4879_v25 = vadd.f32 %v4878_v23, %v4877_v61  ;;  %v4880_v26 = vpop.f32.mrb[22].mxu1  ;;  %5747 = vmatprep.subr.msk.bf16.mxu0 %vm366_vm0, %v5859_v59  ;;  %1725 = vmatmul.mubr.bf16.gmra.mrb[92].mxu1 %v5899_v36  ;;  %v887_v55 = vsel %vm366_vm0, %v5861_v46, 0  ;;  %v5909_v59 = vld [vmem:[%s7496_s1 + $0x234] ss:$8 sps:$4 sm:$0xff]  }
 0x129   :  { %v4881_v18 = vpop.f32.mrb[23].mxu1  ;;  %1919 = vmatprep.mubr.bf16.mxu1 %v5902_v40 }
 0x12a   :  { %v4882_v30 = vadd.f32 %v4881_v18, %v4880_v26 }
 0x12b   :  { %5316 = vmatpush3.bf16.msra.mxu0 %v668_v5  ;;  %v5911_v5 = vld [vmem:[%s7496_s1 + $0x230] ss:$8 sps:$4 sm:$0xff]  }
 0x12c   :  { %v643_v31 = vpack.c.bf16 %v4882_v30, %v4879_v25  ;;  %5325 = vmatprep.subr.bf16.mxu0 %v5860_v16 }
 0x12e   :  { %5310 = vmatmul.mubr.msk.bf16.gmra.mrb[20].mxu0 %vm353_vm1, %v221_v4  ;;  %v4883_v32 = vpop.f32.mrb[24].mxu1 }
 0x12f   :  { %v4884_v34 = vpop.f32.mrb[25].mxu1  ;;  %5317 = vmatprep.mubr.msk.bf16.mxu0 %vm353_vm1, %v642_v52 }
 0x130   :  { %v4885_v37 = vadd.f32 %v4884_v34, %v4883_v32  ;;  %v4886_v38 = vpop.f32.mrb[26].mxu1  ;;  %1920 = vmatmul.mubr.bf16.vlgmr.msra.gmra.mrb[96].mxu1 %v5900_v51 }
 0x131   :  { %v4887_v41 = vpop.f32.mrb[27].mxu1  ;;  %1927 = vmatprep.mubr.bf16.mxu1 %v5903_v57 }
 0x132   :  { %v4888_v43 = vadd.f32 %v4887_v41, %v4886_v38 }
 0x134   :  { %v644_v44 = vpack.c.bf16 %v4888_v43, %v4885_v37 }
 0x136   :  { %v4889_v48 = vpop.f32.mrb[28].mxu1  ;;  %5318 = vmatmul.mubr.msk.bf16.vlgmr.msra.gmra.mrb[16].mxu0 %vm353_vm1, %v643_v31 }
 0x137   :  { %v4890_v50 = vpop.f32.mrb[29].mxu1  ;;  %5321 = vmatprep.mubr.msk.bf16.mxu0 %vm353_vm1, %v644_v44  ;;  %5326 = vmatpush3.bf16.msra.mxu0 %v5860_v16 }
 0x138   :  { %v4891_v53 = vadd.f32 %v4890_v50, %v4889_v48  ;;  %v4892_v54 = vpop.f32.mrb[30].mxu1  ;;  %5748 = vmatprep.subr.msk.bf16.mxu0 %vm366_vm0, %v5861_v46  ;;  %1928 = vmatmul.mubr.bf16.gmra.mrb[100].mxu1 %v5905_v1 }
 0x139   :  { %v4893_v58 = vpop.f32.mrb[31].mxu1  ;;  %1935 = vmatprep.mubr.bf16.mxu1 %v5906_v6 }
 0x13a   :  { %v4894_v60 = vadd.f32 %v4893_v58, %v4892_v54 }
 0x13b   :  { %5328 = vmatpush3.bf16.msra.mxu0 %v887_v55 }
 0x13c   :  { %v645_v62 = vpack.c.bf16 %v4894_v60, %v4891_v53  ;;  %5337 = vmatprep.subr.bf16.mxu0 %v5862_v56 }
 0x13e   :  { %5322 = vmatmul.mubr.msk.bf16.gmra.mrb[20].mxu0 %vm353_vm1, %v645_v62  ;;  %v4917_v63 = vpop.f32.mrb[32].mxu1 }
 0x13f   :  { %v4918_v0 = vpop.f32.mrb[33].mxu1 }
 0x140   :  { %v4919_v2 = vadd.f32 %v4918_v0, %v4917_v63  ;;  %v4920_v4 = vpop.f32.mrb[34].mxu1  ;;  %1936 = vmatmul.mubr.bf16.gmra.mrb[104].mxu1 %v5908_v17 }
 0x141   :  { %v4921_v9 = vpop.f32.mrb[35].mxu1  ;;  %1943 = vmatprep.mubr.bf16.mxu1 %v5909_v59 }
 0x142   :  { %v4922_v10 = vadd.f32 %v4921_v9, %v4920_v4 }
 0x144   :  { %v861_v11 = vpack.c.bf16 %v4922_v10, %v4919_v2 }
 0x146   :  { %v4923_v12 = vpop.f32.mrb[36].mxu1  ;;  %5329 = vmatprep.mubr.msk.bf16.mxu0 %vm353_vm1, %v861_v11 }
 0x147   :  { %v4924_v15 = vpop.f32.mrb[37].mxu1 }
 0x148   :  { %v4925_v21 = vadd.f32 %v4924_v15, %v4923_v12  ;;  %v4926_v52 = vpop.f32.mrb[38].mxu1  ;;  %1944 = vmatmul.mubr.bf16.gmra.mrb[108].mxu1 %v5911_v5 }
 0x149   :  { %v4927_v61 = vpop.f32.mrb[39].mxu1 }
 0x14a   :  { %v4928_v22 = vadd.f32 %v4927_v61, %v4926_v52 }
 0x14c   :  { %v862_v23 = vpack.c.bf16 %v4928_v22, %v4925_v21 }
 0x14e   :  { %v4929_v25 = vpop.f32.mrb[40].mxu1  ;;  %5330 = vmatmul.mubr.msk.bf16.vlgmr.msra.gmra.mrb[16].mxu0 %vm353_vm1, %v862_v23 }
 0x14f   :  { %v4930_v26 = vpop.f32.mrb[41].mxu1  ;;  %5338 = vmatpush3.bf16.msra.mxu0 %v5862_v56 }
 0x150   :  { %v4931_v16 = vadd.f32 %v4930_v26, %v4929_v25  ;;  %v4932_v18 = vpop.f32.mrb[42].mxu1  ;;  %5749 = vmatprep.subr.msk.bf16.mxu0 %vm366_vm0, %v5863_v24 }
 0x151   :  { %v4933_v30 = vpop.f32.mrb[43].mxu1 }
 0x152   :  { %v4934_v31 = vadd.f32 %v4933_v30, %v4932_v18 }
 0x153   :  { %5340 = vmatpush3.bf16.msra.mxu0 %v1106_v28 }
 0x154   :  { %v863_v32 = vpack.c.bf16 %v4934_v31, %v4931_v16  ;;  %4993 = vmatprep.subr.bf16.mxu0 %v6116_v3 }
 0x156   :  { %v4935_v34 = vpop.f32.mrb[44].mxu1  ;;  %5333 = vmatprep.mubr.msk.bf16.mxu0 %vm353_vm1, %v863_v32 }
 0x157   :  { %v4936_v36 = vpop.f32.mrb[45].mxu1 }
 0x158   :  { %v4937_v37 = vadd.f32 %v4936_v36, %v4935_v34  ;;  %v4938_v38 = vpop.f32.mrb[46].mxu1  ;;  %v5912_v36 = vld [vmem:[%s7497_s2 + $0x3c] sm:$0xff]  }
 0x159   :  { %v4939_v40 = vpop.f32.mrb[47].mxu1 }
 0x15a   :  { %v4940_v41 = vadd.f32 %v4939_v40, %v4938_v38 }
 0x15c   :  { %v864_v43 = vpack.c.bf16 %v4940_v41, %v4937_v37 }
 0x15e   :  { %5334 = vmatmul.mubr.msk.bf16.gmra.mrb[20].mxu0 %vm353_vm1, %v864_v43  ;;  %v4963_v44 = vpop.f32.mrb[48].mxu1 }
 0x15f   :  { %v4964_v46 = vpop.f32.mrb[49].mxu1 }
 0x160   :  { %v4965_v48 = vadd.f32 %v4964_v46, %v4963_v44  ;;  %v4966_v50 = vpop.f32.mrb[50].mxu1  ;;  %v5913_v44 = vld [vmem:[%s7497_s2 + $0x44] ss:$0 sps:$4 sm:$0x11]  }
 0x161   :  { %v4967_v51 = vpop.f32.mrb[51].mxu1 }
 0x162   :  { %v4968_v53 = vadd.f32 %v4967_v51, %v4966_v50 }
 0x164   :  { %v1080_v54 = vpack.c.bf16 %v4968_v53, %v4965_v48  ;;  %v1325_v48 = vsel %vm366_vm0, %v5913_v44, 0 }
 0x166   :  { %v4969_v55 = vpop.f32.mrb[52].mxu1  ;;  %5341 = vmatprep.mubr.msk.bf16.mxu0 %vm353_vm1, %v1080_v54 }
 0x167   :  { %v4970_v3 = vpop.f32.mrb[53].mxu1 }
 0x168   :  { %v4971_v56 = vadd.f32 %v4970_v3, %v4969_v55  ;;  %v4972_v57 = vpop.f32.mrb[54].mxu1 }
 0x169   :  { %v4973_v58 = vpop.f32.mrb[55].mxu1 }
 0x16a   :  { %v4974_v60 = vadd.f32 %v4973_v58, %v4972_v57 }
 0x16c   :  { %v1081_v62 = vpack.c.bf16 %v4974_v60, %v4971_v56 }
 0x16e   :  { %5342 = vmatmul.mubr.msk.bf16.vlgmr.msra.gmra.mrb[16].mxu0 %vm353_vm1, %v1081_v62  ;;  %v4975_v63 = vpop.f32.mrb[56].mxu1 }
 0x16f   :  { %4994 = vmatpush3.bf16.msra.mxu0 %v6127_v7  ;;  %v4976_v0 = vpop.f32.mrb[57].mxu1 }
 0x170   :  { %4995 = vmatprep.subr.bf16.mxu0 %v6129_v8  ;;  %v4977_v1 = vadd.f32 %v4976_v0, %v4975_v63  ;;  %v4978_v2 = vpop.f32.mrb[58].mxu1 }
 0x171   :  { %v4979_v4 = vpop.f32.mrb[59].mxu1 }
 0x172   :  { %v4980_v6 = vadd.f32 %v4979_v4, %v4978_v2  ;;  %v6727_v4 = vld [vmem:[%s7497_s2 + $0x48] sm:$0xff]  }
 0x173   :  { %4996 = vmatpush3.bf16.msra.mxu0 %v6146_v13  ;;  %v5872_v13 = vld [vmem:[%s7496_s1 + $0x144] ss:$8 sps:$4 sm:$0xff]  }
 0x174   :  { %v1082_v9 = vpack.c.bf16 %v4980_v6, %v4977_v1  ;;  %4997 = vmatprep.subr.bf16.mxu0 %v6150_v14  ;;  %v5870_v14 = vld [vmem:[%s7496_s1 + $0x140] ss:$8 sps:$4 sm:$0xff]  }
 0x176   :  { %v4981_v10 = vpop.f32.mrb[60].mxu1  ;;  %5345 = vmatprep.mubr.msk.bf16.mxu0 %vm353_vm1, %v1082_v9 }
 0x177   :  { %4998 = vmatpush3.bf16.msra.mxu0 %v6166_v19  ;;  %v4982_v11 = vpop.f32.mrb[61].mxu1  ;;  %v5876_v19 = vld [vmem:[%s7496_s1 + $0x154] ss:$8 sps:$4 sm:$0xff]  }
 0x178   :  { %4999 = vmatprep.subr.bf16.mxu0 %v6170_v20  ;;  %v4983_v7 = vadd.f32 %v4982_v11, %v4981_v10  ;;  %v4984_v12 = vpop.f32.mrb[62].mxu1  ;;  %v5880_v20 = vld [vmem:[%s7496_s1 + $0x150] ss:$8 sps:$4 sm:$0xff]  }
 0x179   :  { %v4985_v8 = vpop.f32.mrb[63].mxu1 }
 0x17a   :  { %v4986_v15 = vadd.f32 %v4985_v8, %v4984_v12 }
 0x17b   :  { %5000 = vmatpush3.bf16.msra.mxu0 %v6192_v27  ;;  %v5882_v27 = vld [vmem:[%s7496_s1 + $0x164] ss:$8 sps:$4 sm:$0xff]  }
 0x17c   :  { %v1083_v17 = vpack.c.bf16 %v4986_v15, %v4983_v7  ;;  %5001 = vmatprep.subr.bf16.mxu0 %v6199_v29  ;;  %v5887_v29 = vld [vmem:[%s7496_s1 + $0x160] ss:$8 sps:$4 sm:$0xff]  }
 0x17e   :  { %5346 = vmatmul.mubr.msk.bf16.gmra.mrb[20].mxu0 %vm353_vm1, %v1083_v17 }
 0x17f   :  { %5002 = vmatpush3.bf16.msra.mxu0 %v6212_v33  ;;  %1262 = vmatprep.mubr.bf16.mxu0 %v5872_v13  ;;  %v5888_v33 = vld [vmem:[%s7496_s1 + $0x174] ss:$8 sps:$4 sm:$0xff]  }
 0x180   :  { %5003 = vmatprep.subr.bf16.mxu0 %v6219_v35  ;;  %v5892_v35 = vld [vmem:[%s7496_s1 + $0x170] ss:$8 sps:$4 sm:$0xff]   ;;  %s6013_s1 = smov 32  }
 0x183   :  { %5004 = vmatpush3.bf16.msra.mxu0 %v6232_v39  ;;  %v5055_v39 = vpop.f32.mrb[64].mxu1 }
 0x184   :  { %5005 = vmatprep.subr.bf16.mxu0 %v6242_v42  ;;  %v5056_v42 = vpop.f32.mrb[65].mxu1 }
 0x187   :  { %5006 = vmatpush3.bf16.msra.mxu0 %v6252_v45  ;;  %v6680_v45 = vadd.f32 %v5056_v42, %v5055_v39 }
 0x188   :  { %5007 = vmatprep.subr.bf16.mxu0 %v6259_v47  ;;  %v5058_v47 = vpop.f32.mrb[66].mxu1 }
 0x18b   :  { %5008 = vmatpush3.bf16.msra.mxu0 %v6266_v49  ;;  %v5059_v49 = vpop.f32.mrb[67].mxu1 }
 0x18c   :  { %v6682_v21 = vadd.f32 %v5059_v49, %v5058_v47  ;;  %v5061_v59 = vpop.f32.mrb[68].mxu1  ;;  %5349 = vmatprep.subr.bf16.mxu0 %v5912_v36 }
 0x18d   :  { %v5062_v61 = vpop.f32.mrb[69].mxu1 }
 0x18e   :  { %1263 = vmatmul.mubr.bf16.vlgmr.msra.gmra.mrb[24].mxu0 %v5870_v14  ;;  %v1518_v52 = vpack.c.bf16 %v6682_v21, %v6680_v45  ;;  %v6686_v22 = vadd.f32 %v5062_v61, %v5061_v59  ;;  %v5064_v23 = vpop.f32.mrb[70].mxu1  ;;  %v5918_v21 = vld [vmem:[%s7497_s2 + $0x60] sm:$0xff]  }
 0x18f   :  { %1270 = vmatprep.mubr.bf16.mxu0 %v5876_v19  ;;  %v5065_v24 = vpop.f32.mrb[71].mxu1  ;;  %5350 = vmatpush3.bf16.msra.mxu0 %v5912_v36 }
 0x190   :  { %v6688_v25 = vadd.f32 %v5065_v24, %v5064_v23  ;;  %v5067_v5 = vpop.f32.mrb[72].mxu1  ;;  %5750 = vmatprep.subr.msk.bf16.mxu0 %vm366_vm0, %v5913_v44 }
 0x191   :  { %v5068_v16 = vpop.f32.mrb[73].mxu1 }
 0x192   :  { %v1519_v26 = vpack.c.bf16 %v6688_v25, %v6686_v22  ;;  %v5070_v18 = vpop.f32.mrb[74].mxu1  ;;  %v6692_v30 = vadd.f32 %v5068_v16, %v5067_v5  ;;  %v6010_v25 = vmov 0.0  }
 0x193   :  { %v5071_v28 = vpop.f32.mrb[75].mxu1  ;;  %5352 = vmatpush3.bf16.msra.mxu0 %v1325_v48  ;;  %5409 = vmatprep.subr.bf16.mxu1 %v6010_v25 }
 0x194   :  { %v6694_v31 = vadd.f32 %v5071_v28, %v5070_v18  ;;  %5361 = vmatprep.subr.bf16.mxu0 %v6727_v4  ;;  %5417 = vmatprep.mubr.msk.bf16.mxu1 %vm6011_vm2, %v6010_v25 }
 0x196   :  { %1271 = vmatmul.mubr.bf16.gmra.mrb[28].mxu0 %v5880_v20  ;;  %v1520_v32 = vpack.c.bf16 %v6694_v31, %v6692_v30  ;;  %v5073_v34 = vpop.f32.mrb[76].mxu1 }
 0x197   :  { %1278 = vmatprep.mubr.bf16.mxu0 %v5882_v27  ;;  %v5074_v37 = vpop.f32.mrb[77].mxu1 }
 0x198   :  { %v5076_v38 = vpop.f32.mrb[78].mxu1  ;;  %v6701_v41 = vadd.f32 %v5074_v37, %v5073_v34 }
 0x199   :  { %v5077_v40 = vpop.f32.mrb[79].mxu1 }
 0x19a   :  { %v6703_v43 = vadd.f32 %v5077_v40, %v5076_v38 }
 0x19c   :  { %v1521_v46 = vpack.c.bf16 %v6703_v43, %v6701_v41 }
 0x19e   :  { %1279 = vmatmul.mubr.bf16.gmra.mrb[32].mxu0 %v5887_v29 }
 0x19f   :  { %1286 = vmatprep.mubr.bf16.mxu0 %v5888_v33 }
 0x1a6   :  { %1287 = vmatmul.mubr.bf16.gmra.mrb[36].mxu0 %v5892_v35 }
 0x1d7   :  { %v5101_v50 = vpop.f32.mrb[80].mxu1 }
 0x1d8   :  { %v5102_v51 = vpop.f32.mrb[81].mxu1 }
 0x1d9   :  { %v5104_v53 = vpop.f32.mrb[82].mxu1  ;;  %v6712_v55 = vadd.f32 %v5102_v51, %v5101_v50 }
 0x1da   :  { %v5105_v54 = vpop.f32.mrb[83].mxu1 }
 0x1db   :  { %v6714_v3 = vadd.f32 %v5105_v54, %v5104_v53 }
 0x1dd   :  { %v1737_v56 = vpack.c.bf16 %v6714_v3, %v6712_v55 }
 0x1e2   :  { %v5107_v57 = vpop.f32.mrb[84].mxu1 }
 0x1e3   :  { %v5108_v58 = vpop.f32.mrb[85].mxu1 }
 0x1e4   :  { %v5110_v60 = vpop.f32.mrb[86].mxu1  ;;  %v6718_v63 = vadd.f32 %v5108_v58, %v5107_v57  ;;  %v3312_v58 = vld [vmem:[%s7504_s9 + $0x10] sm:$0xff] }
 0x1e5   :  { %v5111_v62 = vpop.f32.mrb[87].mxu1 }
 0x1e6   :  { %v6720_v0 = vadd.f32 %v5111_v62, %v5110_v60  ;;  %v3310_v60 = vld [vmem:[%s7504_s9] sm:$0xff]  ;;  %v6008_v62 = vmov 2  }
 0x1e7   :  { %5769 = vset.pattern.permute.xlu1 %v6008_v62  ;;  %5768 = vset.pattern.permute.xlu0 %v6008_v62 }
 0x1e8   :  { %v1738_v1 = vpack.c.bf16 %v6720_v0, %v6718_v63  ;;  %3456 = vperm.xlu1 %5769, %v3312_v58   ;;  %3448 = vperm.xlu0 %5768, %v3310_v60  }
 0x1ea   :  { %v5113_v2 = vpop.f32.mrb[88].mxu1 }
 0x1eb   :  { %v5114_v6 = vpop.f32.mrb[89].mxu1 }
 0x1ec   :  { %v5116_v9 = vpop.f32.mrb[90].mxu1  ;;  %v6730_v11 = vadd.f32 %v5114_v6, %v5113_v2  ;;  %v3313_v2 = vld [vmem:[%s7504_s9 + $0x18] sm:$0xff]  ;;  %v3311_v6 = vld [vmem:[%s7504_s9 + $0x8] sm:$0xff] }
 0x1ed   :  { %v5117_v10 = vpop.f32.mrb[91].mxu1  ;;  %3460 = vperm.xlu1 %5769, %v3313_v2   ;;  %3452 = vperm.xlu0 %5768, %v3311_v6  }
 0x1ee   :  { %v6732_v7 = vadd.f32 %v5117_v10, %v5116_v9  ;;  %v3315_v9 = vld [vmem:[%s7504_s9 + $0x28] sm:$0xff]  ;;  %v3314_v10 = vld [vmem:[%s7504_s9 + $0x20] sm:$0xff] }
 0x1f0   :  { %v1739_v12 = vpack.c.bf16 %v6732_v7, %v6730_v11 }
 0x1f1   :  { %3468 = vperm.xlu1 %5769, %v3315_v9   ;;  %3464 = vperm.xlu0 %5768, %v3314_v10  }
 0x1fb   :  { %v5119_v8 = vpop.f32.mrb[92].mxu1 }
 0x1fc   :  { %v5120_v15 = vpop.f32.mrb[93].mxu1 }
 0x1fd   :  { %v5122_v13 = vpop.f32.mrb[94].mxu1  ;;  %v6736_v14 = vadd.f32 %v5120_v15, %v5119_v8  ;;  %v3317_v8 = vld [vmem:[%s7504_s9 + $0x38] sm:$0xff]  ;;  %v3316_v15 = vld [vmem:[%s7504_s9 + $0x30] sm:$0xff] }
 0x1fe   :  { %v5123_v17 = vpop.f32.mrb[95].mxu1  ;;  %3476 = vperm.xlu1 %5769, %v3317_v8   ;;  %3472 = vperm.xlu0 %5768, %v3316_v15  }
 0x1ff   :  { %v6738_v19 = vadd.f32 %v5123_v17, %v5122_v13  ;;  %v6009_v13 = vmov 0  }
 0x201   :  { %v1740_v20 = vpack.c.bf16 %v6738_v19, %v6736_v14 }
 0x202   :  { %5771 = vset.pattern.permute.xlu1 %v6009_v13  ;;  %5770 = vset.pattern.permute.xlu0 %v6009_v13 }
 0x203   :  { %v5147_v27 = vpop.f32.mrb[96].mxu1  ;;  %3346 = vperm.xlu1 %5771, %v3311_v6   ;;  %3341 = vperm.xlu0 %5770, %v3310_v60   ;;  %v5916_v6 = vld [vmem:[%s7497_s2 + $0x54] sm:$0xff]  }
 0x204   :  { %v5148_v29 = vpop.f32.mrb[97].mxu1 }
 0x205   :  { %v5150_v33 = vpop.f32.mrb[98].mxu1  ;;  %v6742_v39 = vadd.f32 %v5148_v29, %v5147_v27 }
 0x206   :  { %v5151_v35 = vpop.f32.mrb[99].mxu1 }
 0x207   :  { %v6744_v42 = vadd.f32 %v5151_v35, %v5150_v33  ;;  %3351 = vperm.xlu1 %5771, %v3312_v58   ;;  %3356 = vperm.xlu0 %5770, %v3313_v2  }
 0x209   :  { %v1956_v47 = vpack.c.bf16 %v6744_v42, %v6742_v39 }
 0x20b   :  { %v5153_v49 = vpop.f32.mrb[100].mxu1  ;;  %3361 = vperm.xlu1 %5771, %v3314_v10   ;;  %3366 = vperm.xlu0 %5770, %v3315_v9  }
 0x20c   :  { %v5154_v59 = vpop.f32.mrb[101].mxu1 }
 0x20d   :  { %v5156_v61 = vpop.f32.mrb[102].mxu1  ;;  %v6748_v24 = vadd.f32 %v5154_v59, %v5153_v49 }
 0x20e   :  { %v5157_v23 = vpop.f32.mrb[103].mxu1 }
 0x20f   :  { %v6750_v5 = vadd.f32 %v5157_v23, %v5156_v61  ;;  %3371 = vperm.xlu1 %5771, %v3316_v15   ;;  %3376 = vperm.xlu0 %5770, %v3317_v8  }
 0x211   :  { %v1957_v16 = vpack.c.bf16 %v6750_v5, %v6748_v24 }
 0x213   :  { %v5159_v18 = vpop.f32.mrb[104].mxu1 }
 0x214   :  { %v5160_v28 = vpop.f32.mrb[105].mxu1 }
 0x215   :  { %v5162_v34 = vpop.f32.mrb[106].mxu1  ;;  %v6754_v37 = vadd.f32 %v5160_v28, %v5159_v18 }
 0x216   :  { %v5163_v36 = vpop.f32.mrb[107].mxu1 }
 0x217   :  { %v6756_v38 = vadd.f32 %v5163_v36, %v5162_v34 }
 0x219   :  { %v1958_v40 = vpack.c.bf16 %v6756_v38, %v6754_v37 }
 0x21b   :  { %v5165_v44 = vpop.f32.mrb[108].mxu1 }
 0x21c   :  { %v5166_v48 = vpop.f32.mrb[109].mxu1 }
 0x21d   :  { %v5168_v50 = vpop.f32.mrb[110].mxu1  ;;  %v6760_v51 = vadd.f32 %v5166_v48, %v5165_v44  ;;  %v5915_v48 = vld [vmem:[%s7497_s2 + $0x50] ss:$0 sps:$4 sm:$0x11]  }
 0x21e   :  { %v5169_v53 = vpop.f32.mrb[111].mxu1  ;;  %v1544_v2 = vsel %vm366_vm0, %v5915_v48, 0 }
 0x21f   :  { %v6762_v54 = vadd.f32 %v5169_v53, %v5168_v50 }
 0x221   :  { %v1959_v57 = vpack.c.bf16 %v6762_v54, %v6760_v51 }
 0x261   :  { %v5009_v17 = vpop.f32.mrb[24].mxu0 }
 0x262   :  { %v5010_v27 = vpop.f32.mrb[25].mxu0 }
 0x263   :  { %v5011_v29 = vadd.f32 %v5010_v27, %v5009_v17  ;;  %v5012_v33 = vpop.f32.mrb[26].mxu0 }
 0x264   :  { %v5013_v35 = vpop.f32.mrb[27].mxu0 }
 0x265   :  { %v5014_v49 = vadd.f32 %v5013_v35, %v5012_v33 }
 0x267   :  { %v1299_v59 = vpack.c.bf16 %v5014_v49, %v5011_v29  ;;  %v5917_v49 = vld [vmem:[%s7497_s2 + $0x5c] ss:$0 sps:$4 sm:$0x11]   ;;  %v3449_v30 = vpop.permute.xlu0 %3448 }
 0x268   :  { %v1763_v45 = vsel %vm366_vm0, %v5917_v49, 0 }
 0x269   :  { %v5015_v61 = vpop.f32.mrb[28].mxu0  ;;  %5353 = vmatprep.mubr.msk.bf16.mxu0 %vm353_vm1, %v1299_v59 }
 0x26a   :  { %v5016_v23 = vpop.f32.mrb[29].mxu0 }
 0x26b   :  { %v5017_v18 = vadd.f32 %v5016_v23, %v5015_v61  ;;  %v5018_v28 = vpop.f32.mrb[30].mxu0 }
 0x26c   :  { %v5019_v34 = vpop.f32.mrb[31].mxu0 }
 0x26d   :  { %v5020_v36 = vadd.f32 %v5019_v34, %v5018_v28 }
 0x26f   :  { %v1300_v44 = vpack.c.bf16 %v5020_v36, %v5017_v18 }
 0x271   :  { %v5021_v50 = vpop.f32.mrb[32].mxu0  ;;  %5354 = vmatmul.mubr.msk.bf16.vlgmr.msra.gmra.mrb[16].mxu0 %vm353_vm1, %v1300_v44 }
 0x272   :  { %v5022_v53 = vpop.f32.mrb[33].mxu0  ;;  %5362 = vmatpush3.bf16.msra.mxu0 %v6727_v4 }
 0x273   :  { %v5023_v58 = vadd.f32 %v5022_v53, %v5021_v50  ;;  %v5024_v60 = vpop.f32.mrb[34].mxu0  ;;  %5751 = vmatprep.subr.msk.bf16.mxu0 %vm366_vm0, %v5915_v48 }
 0x274   :  { %v5025_v9 = vpop.f32.mrb[35].mxu0 }
 0x275   :  { %v5026_v10 = vadd.f32 %v5025_v9, %v5024_v60 }
 0x276   :  { %5364 = vmatpush3.bf16.msra.mxu0 %v1544_v2 }
 0x277   :  { %v1301_v8 = vpack.c.bf16 %v5026_v10, %v5023_v58  ;;  %5373 = vmatprep.subr.bf16.mxu0 %v5916_v6 }
 0x279   :  { %v5027_v15 = vpop.f32.mrb[36].mxu0  ;;  %5357 = vmatprep.mubr.msk.bf16.mxu0 %vm353_vm1, %v1301_v8 }
 0x27a   :  { %v5028_v17 = vpop.f32.mrb[37].mxu0 }
 0x27b   :  { %v5029_v4 = vadd.f32 %v5028_v17, %v5027_v15  ;;  %v5030_v27 = vpop.f32.mrb[38].mxu0 }
 0x27c   :  { %v5031_v29 = vpop.f32.mrb[39].mxu0 }
 0x27d   :  { %v5032_v33 = vadd.f32 %v5031_v29, %v5030_v27 }
 0x27f   :  { %v1302_v35 = vpack.c.bf16 %v5032_v33, %v5029_v4 }
 0x281   :  { %5358 = vmatmul.mubr.msk.bf16.gmra.mrb[20].mxu0 %vm353_vm1, %v1302_v35  ;;  %v5920_v35 = vld [vmem:[%s7499_s4 + $0x8] sm:$0xff]  }
 0x282   :  { %5365 = vmatprep.mubr.msk.bf16.mxu0 %vm353_vm1, %v1518_v52  ;;  %v5919_v52 = vld [vmem:[%s7497_s2 + $0x68] ss:$0 sps:$4 sm:$0x11]  }
 0x283   :  { %v1982_v22 = vsel %vm366_vm0, %v5919_v52, 0 }
 0x289   :  { %5366 = vmatmul.mubr.msk.bf16.vlgmr.msra.gmra.mrb[16].mxu0 %vm353_vm1, %v1519_v26  ;;  %v4620_v26 = vld [vmem:[%s7498_s3] ss:$0 sm:$0xff] }
 0x28a   :  { %5369 = vmatprep.mubr.msk.bf16.mxu0 %vm353_vm1, %v1520_v32  ;;  %5374 = vmatpush3.bf16.msra.mxu0 %v5916_v6  ;;  %v3457_v32 = vpop.permute.xlu1 %3456 }
 0x28b   :  { %5752 = vmatprep.subr.msk.bf16.mxu0 %vm366_vm0, %v5917_v49 }
 0x28e   :  { %5376 = vmatpush3.bf16.msra.mxu0 %v1763_v45  ;;  %v3461_v14 = vpop.permute.xlu1 %3460  ;;  %v5921_v45 = vld [vmem:[%s7499_s4] sm:$0xff]  }
 0x28f   :  { %5385 = vmatprep.subr.bf16.mxu0 %v5918_v21 }
 0x291   :  { %5370 = vmatmul.mubr.msk.bf16.gmra.mrb[20].mxu0 %vm353_vm1, %v1521_v46 }
 0x292   :  { %5377 = vmatprep.mubr.msk.bf16.mxu0 %vm353_vm1, %v1737_v56  ;;  %v3469_v34 = vpop.permute.xlu1 %3468 }
 0x296   :  { %v3477_v4 = vpop.permute.xlu1 %3476 }
 0x299   :  { %5378 = vmatmul.mubr.msk.bf16.vlgmr.msra.gmra.mrb[16].mxu0 %vm353_vm1, %v1738_v1  ;;  %v3453_v1 = vpop.permute.xlu0 %3452 }
 0x29a   :  { %5381 = vmatprep.mubr.msk.bf16.mxu0 %vm353_vm1, %v1739_v12  ;;  %5386 = vmatpush3.bf16.msra.mxu0 %v5918_v21 }
 0x29b   :  { %5753 = vmatprep.subr.msk.bf16.mxu0 %vm366_vm0, %v5919_v52 }
 0x29d   :  { %v3465_v51 = vpop.permute.xlu0 %3464 }
 0x29e   :  { %5388 = vmatpush3.bf16.msra.mxu0 %v1982_v22 }
 0x29f   :  { %5397 = vmatprep.subr.bf16.mxu0 %v6010_v25 }
 0x2a1   :  { %5382 = vmatmul.mubr.msk.bf16.gmra.mrb[20].mxu0 %vm353_vm1, %v1740_v20  ;;  %v3473_v9 = vpop.permute.xlu0 %3472 }
 0x2a2   :  { %5389 = vmatprep.mubr.msk.bf16.mxu0 %vm353_vm1, %v1956_v47 }
 0x2a9   :  { %5390 = vmatmul.mubr.msk.bf16.vlgmr.msra.gmra.mrb[16].mxu0 %vm353_vm1, %v1957_v16 }
 0x2aa   :  { %5393 = vmatprep.mubr.msk.bf16.mxu0 %vm353_vm1, %v1958_v40 }
 0x2b1   :  { %5394 = vmatmul.mubr.msk.bf16.gmra.mrb[20].mxu0 %vm353_vm1, %v1959_v57  ;;  %vm3830_vm1 = vcmask 31744  }
 0x2b2   :  { %5405 = vmatprep.mubr.msk.bf16.mxu0 %vm6011_vm2, %v6010_v25 }
 0x37c   :  { %v5391_v31 = vpop.f32.mrb[16].mxu0 }
 0x37d   :  { %v2066_v41 = vadd.f32 %v5391_v31, %v4620_v26  ;;  %v2018_v43 = vpop.f32.mrb[17].mxu0 }
 0x37e   :  { %v2064_v46 = vadd.f32 %v4620_v26, %v2018_v43  ;;  %v5392_v55 = vpop.f32.mrb[18].mxu0 }
 0x37f   :  { %v2067_v3 = vadd.f32 %v5392_v55, %v4620_v26  ;;  %v2021_v56 = vpop.f32.mrb[19].mxu0  ;;  %v6879_v11 = vmax.f32 %v2066_v41, 0.0  ;;  %v5922_v41 = vld [vmem:[%s7500_s5 + $0x18] sm:$0xff]  }
 0x380   :  { %v6877_v63 = vmax.f32 %v2064_v46, 0.0  ;;  %v2065_v0 = vadd.f32 %v4620_v26, %v2021_v56  ;;  %v5923_v46 = vld [vmem:[%s7500_s5 + $0x20] sm:$0xff]   ;;  %v3347_v56 = vpop.permute.xlu1 %3346 }
 0x381   :  { %v6884_v19 = vmax.f32 %v2067_v3, 0.0  ;;  %v3481_v24 = vmul.f32 %v3457_v32, %v6879_v11 }
 0x382   :  { %v6881_v7 = vmax.f32 %v2065_v0, 0.0  ;;  %v3479_v12 = vmul.f32 %v3449_v30, %v6877_v63 }
 0x383   :  { %v6898_v54 = vpack.c.bf16 %v6884_v19, %v6879_v11  ;;  %v3482_v28 = vmul.f32 %v3461_v14, %v6884_v19  ;;  %v3491_v36 = vsel %vm3487_vm3, %v3481_v24, 0.0  ;;  %v5925_v24 = vld [vmem:[%s7500_s5] sm:$0xff]  }
 0x384   :  { %v6888_v20 = vpack.c.bf16 %v6881_v7, %v6877_v63  ;;  %v5395_v39 = vpop.f32.mrb[20].mxu0  ;;  %v3480_v42 = vmul.f32 %v3453_v1, %v6881_v7  ;;  %v3488_v38 = vsel %vm3487_vm3, %v3479_v12, 0.0  ;;  %v3380_v0 = vmul.f32 %v3347_v56, %v6881_v7  ;;  %v3342_v1 = vpop.permute.xlu0 %3341 }
 0x385   :  { %v2034_v47 = vpop.f32.mrb[21].mxu0  ;;  %v2070_v5 = vadd.f32 %v5395_v39, %v4620_v26  ;;  %v3493_v6 = vsel %vm3487_vm3, %v3482_v28, 0.0  ;;  %v3379_v12 = vmul.f32 %v3342_v1, %v6877_v63  ;;  %v3352_v14 = vpop.permute.xlu1 %3351  ;;  %v5927_v28 = vld [vmem:[%s7500_s5 + $0x10] sm:$0xff]  }
 0x386   :  { %v2068_v16 = vadd.f32 %v4620_v26, %v2034_v47  ;;  %v5396_v37 = vpop.f32.mrb[22].mxu0  ;;  %5398 = vmatpush3.bf16.msra.mxu0 %v6888_v20  ;;  %5410 = vmatpush3.bf16.msra.mxu1 %v6888_v20  ;;  %v3489_v40 = vsel %vm3487_vm3, %v3480_v42, 0.0  ;;  %v3389_v39 = vsel %vm3387_vm5, %v3380_v0, 0.0  ;;  %v3381_v47 = vmul.f32 %v3352_v14, %v6879_v11 }
 0x387   :  { %v2037_v57 = vpop.f32.mrb[23].mxu0  ;;  %5399 = vmatprep.subr.bf16.mxu0 %v6010_v25  ;;  %5411 = vmatprep.subr.bf16.mxu1 %v6010_v25  ;;  %v3490_v59 = vadd.f32 %v3489_v40, %v3488_v38  ;;  %v2071_v23 = vadd.f32 %v5396_v37, %v4620_v26  ;;  %v6906_v44 = vmax.f32 %v2070_v5, 0.0  ;;  %v3388_v42 = vsel %vm3387_vm5, %v3379_v12, 0.0  ;;  %v5926_v40 = vld [vmem:[%s7500_s5 + $0x8] sm:$0xff]  }
 0x388   :  { %v6902_v61 = vmax.f32 %v2068_v16, 0.0  ;;  %v2069_v18 = vadd.f32 %v4620_v26, %v2037_v57  ;;  %v3390_v5 = vadd.f32 %v3389_v39, %v3388_v42  ;;  %v3357_v16 = vpop.permute.xlu0 %3356  ;;  %v3391_v37 = vsel %vm3387_vm5, %v3381_v47, 0.0 }
 0x389   :  { %v3492_v53 = vadd.f32 %v3491_v36, %v3490_v59  ;;  %v6915_v58 = vmax.f32 %v2071_v23, 0.0  ;;  %v3485_v8 = vmul.f32 %v3473_v9, %v6906_v44  ;;  %v3382_v38 = vmul.f32 %v3357_v16, %v6884_v19  ;;  %v3362_v57 = vpop.permute.xlu1 %3361  ;;  %v5924_v23 = vld [vmem:[%s7500_s5 + $0x28] sm:$0xff]   ;;  %v5928_v16 = vld [vmem:[%s7499_s4 + $0x10] sm:$0xff]  }
 0x38a   :  { %v6908_v48 = vmax.f32 %v2069_v18, 0.0  ;;  %5400 = vmatpush3.bf16.msra.mxu0 %v6898_v54  ;;  %5412 = vmatpush3.bf16.msra.mxu1 %v6898_v54  ;;  %v3483_v50 = vmul.f32 %v3465_v51, %v6902_v61  ;;  %v3392_v51 = vadd.f32 %v3391_v37, %v3390_v5  ;;  %v3383_v59 = vmul.f32 %v3362_v57, %v6902_v61  ;;  %v5929_v5 = vld [vmem:[%s7500_s5 + $0x30] sm:$0xff]   ;;  %v5930_v37 = vld [vmem:[%s7500_s5 + $0x38] sm:$0xff]  }
 0x38b   :  { %5401 = vmatprep.subr.bf16.mxu0 %v6010_v25  ;;  %5413 = vmatprep.subr.bf16.mxu1 %v6010_v25  ;;  %v3494_v10 = vadd.f32 %v3493_v6, %v3492_v53  ;;  %v6932_v29 = vpack.c.bf16 %v6915_v58, %v6906_v44  ;;  %v3486_v33 = vmul.f32 %v3477_v4, %v6915_v58  ;;  %v3499_v21 = vsel %vm3487_vm3, %v3485_v8, 0.0 }
 0x38c   :  { %v6919_v60 = vpack.c.bf16 %v6908_v48, %v6902_v61  ;;  %v3484_v2 = vmul.f32 %v3469_v34, %v6908_v48  ;;  %v3495_v15 = vsel %vm3487_vm3, %v3483_v50, 0.0  ;;  %v3393_v18 = vsel %vm3387_vm5, %v3382_v38, 0.0  ;;  %v3367_v36 = vpop.permute.xlu0 %3366  ;;  %v5931_v38 = vld [vmem:[%s7500_s5 + $0x40] sm:$0xff]  }
 0x38d   :  { %v3496_v27 = vadd.f32 %v3495_v15, %v3494_v10  ;;  %v3501_v22 = vsel %vm3487_vm3, %v3486_v33, 0.0  ;;  %v3394_v34 = vadd.f32 %v3393_v18, %v3392_v51  ;;  %v3384_v50 = vmul.f32 %v3367_v36, %v6908_v48 }
 0x38e   :  { %5402 = vmatpush3.bf16.msra.mxu0 %v6919_v60  ;;  %5414 = vmatpush3.bf16.msra.mxu1 %v6919_v60  ;;  %v3497_v17 = vsel %vm3487_vm3, %v3484_v2, 0.0  ;;  %v3395_v53 = vsel %vm3387_vm5, %v3383_v59, 0.0  ;;  %v3372_v2 = vpop.permute.xlu1 %3371  ;;  %vm4386_vm3 = vcmask 25600  }
 0x38f   :  { %5403 = vmatprep.subr.bf16.mxu0 %v6010_v25  ;;  %5415 = vmatprep.subr.bf16.mxu1 %v6010_v25  ;;  %v3498_v49 = vadd.f32 %v3497_v17, %v3496_v27  ;;  %v3396_v6 = vadd.f32 %v3395_v53, %v3394_v34  ;;  %v3397_v9 = vsel %vm3387_vm5, %v3384_v50, 0.0  ;;  %v3385_v10 = vmul.f32 %v3372_v2, %v6906_v44 }
 0x390   :  { %v3377_v15 = vpop.permute.xlu0 %3376 }
 0x391   :  { %v3500_v52 = vadd.f32 %v3499_v21, %v3498_v49  ;;  %v3398_v8 = vadd.f32 %v3397_v9, %v3396_v6  ;;  %v3399_v17 = vsel %vm3387_vm5, %v3385_v10, 0.0  ;;  %v3386_v4 = vmul.f32 %v3377_v15, %v6915_v58  ;;  %v5933_v15 = vld [vmem:[%s7500_s5 + $0x48] sm:$0xff]  }
 0x392   :  { %5404 = vmatpush3.bf16.msra.mxu0 %v6932_v29  ;;  %5416 = vmatpush3.bf16.msra.mxu1 %v6932_v29 }
 0x393   :  { %5421 = vmatprep.subr.bf16.mxu0 %v6010_v25  ;;  %5431 = vmatprep.subr.bf16.mxu1 %v6010_v25  ;;  %v3502_v26 = vadd.f32 %v3501_v22, %v3500_v52  ;;  %v3400_v27 = vadd.f32 %v3399_v17, %v3398_v8  ;;  %v3401_v33 = vsel %vm3387_vm5, %v3386_v4, 0.0  ;;  %v3624_v22 = vlaneseq  ;;  %v5932_v8 = vld [vmem:[%s7499_s4 + $0x18] sm:$0xff]   ;;  %v5934_v17 = vld [vmem:[%s7500_s5 + $0x50] sm:$0xff]  }
 0x394   :  { %v5935_v4 = vld [vmem:[%s7500_s5 + $0x58] sm:$0xff]  }
 0x395   :  { %5418 = vmatmul.mubr.msk.bf16.vlgmr.msra.gmra.mrb[112].mxu1 %vm2091_vm4, %v5920_v35  ;;  %5406 = vmatmul.mubr.msk.bf16.vlgmr.msra.gmra.mrb[40].mxu0 %vm2091_vm4, %v5921_v45  ;;  %v3503_v30 = vrot.slane %v3502_v26, 4  ;;  %v3402_v35 = vadd.f32 %v3401_v33, %v3400_v27 }
 0x396   :  { %5427 = vmatprep.mubr.msk.bf16.mxu0 %vm6011_vm2, %v6010_v25  ;;  %5437 = vmatprep.mubr.msk.bf16.mxu1 %vm6011_vm2, %v6010_v25 }
 0x397   :  { %v3504_v31 = vadd.f32 %v3503_v30, %v3502_v26  ;;  %5422 = vmatpush3.bf16.msra.mxu0 %v5922_v41  ;;  %5432 = vmatpush3.bf16.msra.mxu1 %v5925_v24  ;;  %v3403_v49 = vrot.slane %v3402_v35, 4  ;;  %v3625_v30 = vshrl.u32 %v3624_v22, 7 }
 0x398   :  { %5423 = vmatprep.subr.bf16.mxu0 %v6010_v25  ;;  %5433 = vmatprep.subr.bf16.mxu1 %v6010_v25 }
 0x399   :  { %v3505_v32 = vrot.slane %v3504_v31, 2  ;;  %v3404_v45 = vadd.f32 %v3403_v49, %v3402_v35  ;;  %v6994_v41 = vsub.s32 0, %v3625_v30 }
 0x39b   :  { %v3506_v43 = vadd.f32 %v3505_v32, %v3504_v31  ;;  %5424 = vmatpush3.bf16.msra.mxu0 %v5923_v46  ;;  %5434 = vmatpush3.bf16.msra.mxu1 %v5926_v40  ;;  %v3405_v21 = vrot.slane %v3404_v45, 2 }
 0x39c   :  { %5425 = vmatprep.subr.bf16.mxu0 %v6010_v25  ;;  %5435 = vmatprep.subr.bf16.mxu1 %v6010_v25 }
 0x39d   :  { %v3507_v55 = vrot.slane %v3506_v43, 1  ;;  %v3406_v52 = vadd.f32 %v3405_v21, %v3404_v45 }
 0x39f   :  { %v3508_v3 = vadd.f32 %v3507_v55, %v3506_v43  ;;  %5426 = vmatpush3.bf16.msra.mxu0 %v5924_v23  ;;  %5436 = vmatpush3.bf16.msra.mxu1 %v5927_v28  ;;  %v3407_v26 = vrot.slane %v3406_v52, 1 }
 0x3a0   :  { %5441 = vmatprep.subr.bf16.mxu0 %v6010_v25  ;;  %5453 = vmatprep.subr.bf16.mxu1 %v6010_v25 }
 0x3a1   :  { %3510 = vrot.lane.b32.xlu1 %v3508_v3, %s6012_s21  ;;  %v3408_v31 = vadd.f32 %v3407_v26, %v3406_v52 }
 0x413   :  { %v3511_v32 = vpop.permute.xlu1 %3510 }
 0x414   :  { %v3513_v43 = vadd.f32 %v3511_v32, %v3408_v31  ;;  %v5936_v32 = vld [vmem:[%s7499_s4 + $0x20] sm:$0xff]  }
 0x416   :  { %v3539_v46 = vmul.f32 0.5, %v3513_v43  ;;  %v5937_v43 = vld [vmem:[%s7500_s5 + $0x60] sm:$0xff]  }
 0x418   :  { %v3637_v55 = vrot.slane %v3539_v46, %v6994_v41  ;;  %v5938_v46 = vld [vmem:[%s7500_s5 + $0x68] sm:$0xff]  }
 0x41a   :  { %3639 = vrot.lane.b32.xlu0 %v3637_v55, %s6013_s1  ;;  %v5939_v55 = vld [vmem:[%s7500_s5 + $0x70] sm:$0xff]  }
 0x468   :  { %v2188_v3 = vpop.f32.mrb[112].mxu1  ;;  %v2129_v56 = vpop.f32.mrb[40].mxu0 }
 0x469   :  { %v5419_v0 = vpop.f32.mrb[113].mxu1  ;;  %v5407_v1 = vpop.f32.mrb[41].mxu0 }
 0x46a   :  { %v2191_v12 = vpop.f32.mrb[114].mxu1  ;;  %v2132_v14 = vpop.f32.mrb[42].mxu0 }
 0x46b   :  { %v2202_v39 = vpack.c.bf16 %v2191_v12, %v2188_v3  ;;  %v2142_v42 = vpack.c.bf16 %v2132_v14, %v2129_v56  ;;  %v5420_v47 = vpop.f32.mrb[115].mxu1  ;;  %v5408_v24 = vpop.f32.mrb[43].mxu0 }
 0x46d   :  { %5428 = vmatmul.mubr.msk.bf16.vlgmr.msra.gmra.mrb[44].mxu0 %vm2221_vm6, %v2202_v39  ;;  %5438 = vmatmul.mubr.msk.bf16.vlgmr.msra.gmra.mrb[116].mxu1 %vm2221_vm6, %v2142_v42 }
 0x46e   :  { %5442 = vmatpush3.bf16.msra.mxu0 %v6888_v20  ;;  %5449 = vmatprep.mubr.msk.bf16.mxu0 %vm6011_vm2, %v6010_v25 }
 0x46f   :  { %5443 = vmatprep.subr.bf16.mxu0 %v6010_v25  ;;  %5454 = vmatpush3.bf16.msra.mxu1 %v5929_v5 }
 0x470   :  { %5455 = vmatprep.subr.bf16.mxu1 %v6010_v25  ;;  %5459 = vmatprep.mubr.msk.bf16.mxu1 %vm6011_vm2, %v6010_v25 }
 0x472   :  { %5444 = vmatpush3.bf16.msra.mxu0 %v6898_v54 }
 0x473   :  { %5445 = vmatprep.subr.bf16.mxu0 %v6010_v25  ;;  %5456 = vmatpush3.bf16.msra.mxu1 %v5930_v37  ;;  %v5941_v37 = vld [vmem:[%s7500_s5 + $0x78] sm:$0xff]  }
 0x474   :  { %5457 = vmatprep.subr.bf16.mxu1 %v6010_v25 }
 0x476   :  { %5446 = vmatpush3.bf16.msra.mxu0 %v6919_v60 }
 0x477   :  { %5447 = vmatprep.subr.bf16.mxu0 %v6010_v25  ;;  %5458 = vmatpush3.bf16.msra.mxu1 %v5931_v38  ;;  %v5942_v38 = vld [vmem:[%s7500_s5 + $0x80] sm:$0xff]  }
 0x478   :  { %5463 = vmatprep.subr.bf16.mxu1 %v6010_v25 }
 0x47a   :  { %5448 = vmatpush3.bf16.msra.mxu0 %v6932_v29 }
 0x47b   :  { %5475 = vmatprep.subr.bf16.mxu0 %v6010_v25 }
 0x47d   :  { %5450 = vmatmul.mubr.msk.bf16.vlgmr.msra.gmra.mrb[48].mxu0 %vm2091_vm4, %v5928_v16  ;;  %v5940_v16 = vld [vmem:[%s7499_s4 + $0x28] sm:$0xff]  }
 0x47e   :  { %5481 = vmatprep.mubr.msk.bf16.mxu0 %vm6011_vm2, %v6010_v25  ;;  %5476 = vmatpush3.bf16.msra.mxu0 %v5933_v15 }
 0x47f   :  { %5477 = vmatprep.subr.bf16.mxu0 %v6010_v25 }
 0x482   :  { %5478 = vmatpush3.bf16.msra.mxu0 %v5934_v17 }
 0x483   :  { %5479 = vmatprep.subr.bf16.mxu0 %v6010_v25 }
 0x486   :  { %5480 = vmatpush3.bf16.msra.mxu0 %v5935_v4 }
 0x487   :  { %5485 = vmatprep.subr.bf16.mxu0 %v6010_v25 }
 0x540   :  { %v2259_v40 = vpop.f32.mrb[44].mxu0  ;;  %v2321_v51 = vpop.f32.mrb[116].mxu1 }
 0x541   :  { %v5429_v57 = vpop.f32.mrb[45].mxu0  ;;  %v2322_v59 = vadd.f32 %v2321_v51, %v2259_v40  ;;  %v5439_v23 = vpop.f32.mrb[117].mxu1  ;;  %v5943_v40 = vld [vmem:[%s7500_s5 + $0x88] sm:$0xff]  }
 0x542   :  { %v2262_v18 = vpop.f32.mrb[46].mxu0  ;;  %v2324_v28 = vpop.f32.mrb[118].mxu1 }
 0x543   :  { %v5430_v34 = vpop.f32.mrb[47].mxu0  ;;  %v2325_v36 = vadd.f32 %v2324_v28, %v2262_v18  ;;  %v5440_v50 = vpop.f32.mrb[119].mxu1 }
 0x550   :  { %v2373_v53 = vpop.f32.mrb[48].mxu0 }
 0x551   :  { %v5451_v2 = vpop.f32.mrb[49].mxu0 }
 0x552   :  { %v2376_v6 = vpop.f32.mrb[50].mxu0 }
 0x553   :  { %v2387_v9 = vpack.c.bf16 %v2376_v6, %v2373_v53  ;;  %v5452_v10 = vpop.f32.mrb[51].mxu0  ;;  %v5944_v6 = vld [vmem:[%s7499_s4 + $0x30] sm:$0xff]  }
 0x554   :  { %v5946_v10 = vld [vmem:[%s7500_s5 + $0x98] sm:$0xff]  }
 0x555   :  { %5460 = vmatmul.mubr.msk.bf16.vlgmr.msra.gmra.mrb[120].mxu1 %vm2221_vm6, %v2387_v9  ;;  %v5945_v9 = vld [vmem:[%s7500_s5 + $0x90] sm:$0xff]  }
 0x556   :  { %5464 = vmatpush3.bf16.msra.mxu1 %v6888_v20  ;;  %5471 = vmatprep.mubr.msk.bf16.mxu1 %vm6011_vm2, %v6010_v25 }
 0x557   :  { %5465 = vmatprep.subr.bf16.mxu1 %v6010_v25 }
 0x55a   :  { %5466 = vmatpush3.bf16.msra.mxu1 %v6898_v54 }
 0x55b   :  { %5467 = vmatprep.subr.bf16.mxu1 %v6010_v25 }
 0x55e   :  { %5468 = vmatpush3.bf16.msra.mxu1 %v6919_v60 }
 0x55f   :  { %5469 = vmatprep.subr.bf16.mxu1 %v6010_v25 }
 0x562   :  { %5470 = vmatpush3.bf16.msra.mxu1 %v6932_v29 }
 0x563   :  { %5497 = vmatprep.subr.bf16.mxu1 %v6010_v25 }
 0x565   :  { %5472 = vmatmul.mubr.msk.bf16.vlgmr.msra.gmra.mrb[124].mxu1 %vm2091_vm4, %v5932_v8  ;;  %v5947_v8 = vld [vmem:[%s7500_s5 + $0xa0] sm:$0xff]  }
 0x566   :  { %5503 = vmatprep.mubr.msk.bf16.mxu1 %vm6011_vm2, %v6010_v25  ;;  %5498 = vmatpush3.bf16.msra.mxu1 %v5937_v43 }
 0x567   :  { %5499 = vmatprep.subr.bf16.mxu1 %v6010_v25 }
 0x56a   :  { %5500 = vmatpush3.bf16.msra.mxu1 %v5938_v46 }
 0x56b   :  { %5501 = vmatprep.subr.bf16.mxu1 %v6010_v25 }
 0x56e   :  { %5502 = vmatpush3.bf16.msra.mxu1 %v5939_v55 }
 0x56f   :  { %5507 = vmatprep.subr.bf16.mxu1 %v6010_v25 }
 0x628   :  { %v2443_v27 = vpop.f32.mrb[120].mxu1 }
 0x629   :  { %v2450_v33 = vadd.f32 %v2443_v27, %v2322_v59  ;;  %v5461_v35 = vpop.f32.mrb[121].mxu1 }
 0x62a   :  { %v2446_v49 = vpop.f32.mrb[122].mxu1 }
 0x62b   :  { %v2451_v45 = vadd.f32 %v2446_v49, %v2325_v36  ;;  %v5462_v21 = vpop.f32.mrb[123].mxu1 }
 0x638   :  { %v2497_v52 = vpop.f32.mrb[124].mxu1 }
 0x639   :  { %v5473_v22 = vpop.f32.mrb[125].mxu1 }
 0x63a   :  { %v2500_v26 = vpop.f32.mrb[126].mxu1 }
 0x63b   :  { %v2511_v30 = vpack.c.bf16 %v2500_v26, %v2497_v52  ;;  %v5474_v31 = vpop.f32.mrb[127].mxu1  ;;  %v5948_v26 = vld [vmem:[%s7499_s4 + $0x38] sm:$0xff]  }
 0x63c   :  { %v5950_v31 = vld [vmem:[%s7500_s5 + $0xb0] sm:$0xff]  }
 0x63d   :  { %5482 = vmatmul.mubr.msk.bf16.vlgmr.msra.gmra.mrb[52].mxu0 %vm2221_vm6, %v2511_v30  ;;  %v5949_v30 = vld [vmem:[%s7500_s5 + $0xa8] sm:$0xff]  }
 0x63e   :  { %5486 = vmatpush3.bf16.msra.mxu0 %v6888_v20  ;;  %5493 = vmatprep.mubr.msk.bf16.mxu0 %vm6011_vm2, %v6010_v25 }
 0x63f   :  { %5487 = vmatprep.subr.bf16.mxu0 %v6010_v25 }
 0x642   :  { %5488 = vmatpush3.bf16.msra.mxu0 %v6898_v54 }
 0x643   :  { %5489 = vmatprep.subr.bf16.mxu0 %v6010_v25 }
 0x646   :  { %5490 = vmatpush3.bf16.msra.mxu0 %v6919_v60 }
 0x647   :  { %5491 = vmatprep.subr.bf16.mxu0 %v6010_v25 }
 0x64a   :  { %5492 = vmatpush3.bf16.msra.mxu0 %v6932_v29 }
 0x64b   :  { %5519 = vmatprep.subr.bf16.mxu0 %v6010_v25 }
 0x64d   :  { %5494 = vmatmul.mubr.msk.bf16.vlgmr.msra.gmra.mrb[56].mxu0 %vm2091_vm4, %v5936_v32  ;;  %v5951_v32 = vld [vmem:[%s7500_s5 + $0xb8] sm:$0xff]  }
 0x64e   :  { %5525 = vmatprep.mubr.msk.bf16.mxu0 %vm6011_vm2, %v6010_v25  ;;  %5520 = vmatpush3.bf16.msra.mxu0 %v5941_v37 }
 0x64f   :  { %5521 = vmatprep.subr.bf16.mxu0 %v6010_v25 }
 0x652   :  { %5522 = vmatpush3.bf16.msra.mxu0 %v5942_v38 }
 0x653   :  { %5523 = vmatprep.subr.bf16.mxu0 %v6010_v25 }
 0x656   :  { %5524 = vmatpush3.bf16.msra.mxu0 %v5943_v40 }
 0x657   :  { %5529 = vmatprep.subr.bf16.mxu0 %v6010_v25 }
 0x710   :  { %v2567_v3 = vpop.f32.mrb[52].mxu0 }
 0x711   :  { %v2574_v56 = vadd.f32 %v2567_v3, %v2450_v33  ;;  %v5483_v0 = vpop.f32.mrb[53].mxu0 }
 0x712   :  { %v2570_v1 = vpop.f32.mrb[54].mxu0 }
 0x713   :  { %v2575_v12 = vadd.f32 %v2570_v1, %v2451_v45  ;;  %v5484_v14 = vpop.f32.mrb[55].mxu0 }
 0x720   :  { %v2621_v39 = vpop.f32.mrb[56].mxu0 }
 0x721   :  { %v5495_v42 = vpop.f32.mrb[57].mxu0 }
 0x722   :  { %v2624_v47 = vpop.f32.mrb[58].mxu0 }
 0x723   :  { %v2635_v24 = vpack.c.bf16 %v2624_v47, %v2621_v39  ;;  %v5496_v5 = vpop.f32.mrb[59].mxu0  ;;  %v5952_v47 = vld [vmem:[%s7499_s4 + $0x40] sm:$0xff]  }
 0x725   :  { %5504 = vmatmul.mubr.msk.bf16.vlgmr.msra.gmra.mrb[128].mxu1 %vm2221_vm6, %v2635_v24 }
 0x726   :  { %5508 = vmatpush3.bf16.msra.mxu1 %v6888_v20  ;;  %5515 = vmatprep.mubr.msk.bf16.mxu1 %vm6011_vm2, %v6010_v25 }
 0x727   :  { %5509 = vmatprep.subr.bf16.mxu1 %v6010_v25 }
 0x72a   :  { %5510 = vmatpush3.bf16.msra.mxu1 %v6898_v54 }
 0x72b   :  { %5511 = vmatprep.subr.bf16.mxu1 %v6010_v25 }
 0x72e   :  { %5512 = vmatpush3.bf16.msra.mxu1 %v6919_v60 }
 0x72f   :  { %5513 = vmatprep.subr.bf16.mxu1 %v6010_v25 }
 0x732   :  { %5514 = vmatpush3.bf16.msra.mxu1 %v6932_v29 }
 0x733   :  { %5541 = vmatprep.subr.bf16.mxu1 %v6010_v25 }
 0x735   :  { %5516 = vmatmul.mubr.msk.bf16.vlgmr.msra.gmra.mrb[132].mxu1 %vm2091_vm4, %v5940_v16 }
 0x736   :  { %5547 = vmatprep.mubr.msk.bf16.mxu1 %vm6011_vm2, %v6010_v25  ;;  %5542 = vmatpush3.bf16.msra.mxu1 %v5945_v9 }
 0x737   :  { %5543 = vmatprep.subr.bf16.mxu1 %v6010_v25 }
 0x73a   :  { %5544 = vmatpush3.bf16.msra.mxu1 %v5946_v10 }
 0x73b   :  { %5545 = vmatprep.subr.bf16.mxu1 %v6010_v25 }
 0x73e   :  { %5546 = vmatpush3.bf16.msra.mxu1 %v5947_v8 }
 0x73f   :  { %5551 = vmatprep.subr.bf16.mxu1 %v6010_v25 }
 0x7f8   :  { %v2691_v51 = vpop.f32.mrb[128].mxu1 }
 0x7f9   :  { %v2698_v57 = vadd.f32 %v2691_v51, %v2574_v56  ;;  %v5505_v59 = vpop.f32.mrb[129].mxu1 }
 0x7fa   :  { %v2694_v23 = vpop.f32.mrb[130].mxu1  ;;  %v5956_v59 = vld [vmem:[%s7502_s7] sm:$0xff]  }
 0x7fb   :  { %v2699_v18 = vadd.f32 %v2694_v23, %v2575_v12  ;;  %v5506_v28 = vpop.f32.mrb[131].mxu1 }
 0x7fc   :  { %v5957_v28 = vld [vmem:[%s7502_s7 + $0x8] sm:$0xff]  }
 0x808   :  { %v2745_v34 = vpop.f32.mrb[132].mxu1 }
 0x809   :  { %v5517_v36 = vpop.f32.mrb[133].mxu1 }
 0x80a   :  { %v2748_v50 = vpop.f32.mrb[134].mxu1  ;;  %v5959_v36 = vld [vmem:[%s7502_s7 + $0x18] sm:$0xff]  }
 0x80b   :  { %v2759_v53 = vpack.c.bf16 %v2748_v50, %v2745_v34  ;;  %v5518_v2 = vpop.f32.mrb[135].mxu1  ;;  %v5958_v34 = vld [vmem:[%s7502_s7 + $0x10] sm:$0xff]   ;;  %v5960_v50 = vld [vmem:[%s7502_s7 + $0x20] sm:$0xff]  }
 0x80d   :  { %5526 = vmatmul.mubr.msk.bf16.vlgmr.msra.gmra.mrb[60].mxu0 %vm2221_vm6, %v2759_v53  ;;  %v5961_v53 = vld [vmem:[%s7502_s7 + $0x28] sm:$0xff]  }
 0x80e   :  { %5530 = vmatpush3.bf16.msra.mxu0 %v6888_v20  ;;  %5537 = vmatprep.mubr.msk.bf16.mxu0 %vm6011_vm2, %v6010_v25 }
 0x80f   :  { %5531 = vmatprep.subr.bf16.mxu0 %v6010_v25 }
 0x812   :  { %5532 = vmatpush3.bf16.msra.mxu0 %v6898_v54 }
 0x813   :  { %5533 = vmatprep.subr.bf16.mxu0 %v6010_v25 }
 0x816   :  { %5534 = vmatpush3.bf16.msra.mxu0 %v6919_v60 }
 0x817   :  { %5535 = vmatprep.subr.bf16.mxu0 %v6010_v25 }
 0x81a   :  { %5536 = vmatpush3.bf16.msra.mxu0 %v6932_v29 }
 0x81b   :  { %5563 = vmatprep.subr.bf16.mxu0 %v6010_v25 }
 0x81d   :  { %5538 = vmatmul.mubr.msk.bf16.vlgmr.msra.gmra.mrb[64].mxu0 %vm2091_vm4, %v5944_v6  ;;  %v4739_v6 = vld [vmem:[%s7501_s6] ss:$0 sm:$0xff] }
 0x81e   :  { %5569 = vmatprep.mubr.msk.bf16.mxu0 %vm6011_vm2, %v6010_v25  ;;  %5564 = vmatpush3.bf16.msra.mxu0 %v5949_v30 }
 0x81f   :  { %5565 = vmatprep.subr.bf16.mxu0 %v6010_v25 }
 0x822   :  { %5566 = vmatpush3.bf16.msra.mxu0 %v5950_v31  ;;  %v3640_v31 = vpop.permute.xlu0 %3639 }
 0x823   :  { %5567 = vmatprep.subr.bf16.mxu0 %v6010_v25 }
 0x826   :  { %5568 = vmatpush3.bf16.msra.mxu0 %v5951_v32 }
 0x827   :  { %5573 = vmatprep.subr.bf16.mxu0 %v6010_v25 }
 0x8e0   :  { %v2815_v15 = vpop.f32.mrb[60].mxu0 }
 0x8e1   :  { %v2822_v17 = vadd.f32 %v2815_v15, %v2698_v57  ;;  %v5527_v4 = vpop.f32.mrb[61].mxu0 }
 0x8e2   :  { %v2818_v27 = vpop.f32.mrb[62].mxu0 }
 0x8e3   :  { %v2823_v33 = vadd.f32 %v2818_v27, %v2699_v18  ;;  %v5528_v35 = vpop.f32.mrb[63].mxu0 }
 0x8f0   :  { %v2869_v49 = vpop.f32.mrb[64].mxu0 }
 0x8f1   :  { %v5539_v45 = vpop.f32.mrb[65].mxu0 }
 0x8f2   :  { %v2872_v21 = vpop.f32.mrb[66].mxu0  ;;  %v6014_v45 = vmov 3  }
 0x8f3   :  { %v2883_v52 = vpack.c.bf16 %v2872_v21, %v2869_v49  ;;  %v5540_v22 = vpop.f32.mrb[67].mxu0  ;;  %5778 = vset.pattern.permute.xlu1 %v6014_v45  ;;  %5777 = vset.pattern.permute.xlu0 %v6014_v45  ;;  %v4740_v21 = vld [vmem:[%s7503_s8] ss:$0 sm:$0xff]  ;;  %s6016_s8 = smov 64  }
 0x8f5   :  { %5548 = vmatmul.mubr.msk.bf16.vlgmr.msra.gmra.mrb[136].mxu1 %vm2221_vm6, %v2883_v52  ;;  %v6015_v52 = vmov 0.0|0.0  }
 0x8f6   :  { %5552 = vmatpush3.bf16.msra.mxu1 %v6888_v20  ;;  %5559 = vmatprep.mubr.msk.bf16.mxu1 %vm6011_vm2, %v6010_v25 }
 0x8f7   :  { %5553 = vmatprep.subr.bf16.mxu1 %v6010_v25 }
 0x8fa   :  { %5554 = vmatpush3.bf16.msra.mxu1 %v6898_v54 }
 0x8fb   :  { %5555 = vmatprep.subr.bf16.mxu1 %v6010_v25 }
 0x8fe   :  { %5556 = vmatpush3.bf16.msra.mxu1 %v6919_v60 }
 0x8ff   :  { %5557 = vmatprep.subr.bf16.mxu1 %v6010_v25 }
 0x902   :  { %5558 = vmatpush3.bf16.msra.mxu1 %v6932_v29 }
 0x903   :  { %5585 = vmatprep.subr.bf16.mxu1 %v6010_v25 }
 0x905   :  { %5560 = vmatmul.mubr.msk.bf16.vlgmr.msra.gmra.mrb[140].mxu1 %vm2091_vm4, %v5948_v26 }
 0x906   :  { %5591 = vmatprep.mubr.msk.bf16.mxu1 %vm6011_vm2, %v6010_v25 }
 0x9c8   :  { %v2939_v43 = vpop.f32.mrb[136].mxu1 }
 0x9c9   :  { %v2946_v46 = vadd.f32 %v2939_v43, %v2822_v17  ;;  %v5549_v55 = vpop.f32.mrb[137].mxu1 }
 0x9ca   :  { %v2942_v3 = vpop.f32.mrb[138].mxu1 }
 0x9cb   :  { %v2947_v56 = vadd.f32 %v2942_v3, %v2823_v33  ;;  %v5550_v0 = vpop.f32.mrb[139].mxu1 }
 0x9cc   :  { %v3643_v0 = vmul.f32 %v3640_v31, %v6881_v7 }
 0x9d8   :  { %v2993_v1 = vpop.f32.mrb[140].mxu1 }
 0x9d9   :  { %v5561_v12 = vpop.f32.mrb[141].mxu1 }
 0x9da   :  { %v2996_v14 = vpop.f32.mrb[142].mxu1 }
 0x9db   :  { %v3007_v39 = vpack.c.bf16 %v2996_v14, %v2993_v1  ;;  %v5562_v42 = vpop.f32.mrb[143].mxu1 }
 0x9dd   :  { %5570 = vmatmul.mubr.msk.bf16.vlgmr.msra.gmra.mrb[68].mxu0 %vm2221_vm6, %v3007_v39 }
 0x9de   :  { %5574 = vmatpush3.bf16.msra.mxu0 %v6888_v20  ;;  %5581 = vmatprep.mubr.msk.bf16.mxu0 %vm6011_vm2, %v6010_v25  ;;  %v5953_v20 = vld [vmem:[%s7500_s5 + $0xc0] sm:$0xff]  }
 0x9df   :  { %5575 = vmatprep.subr.bf16.mxu0 %v6010_v25  ;;  %5586 = vmatpush3.bf16.msra.mxu1 %v5953_v20 }
 0x9e0   :  { %5587 = vmatprep.subr.bf16.mxu1 %v6010_v25 }
 0x9e2   :  { %5576 = vmatpush3.bf16.msra.mxu0 %v6898_v54  ;;  %v5954_v54 = vld [vmem:[%s7500_s5 + $0xc8] sm:$0xff]  }
 0x9e3   :  { %5577 = vmatprep.subr.bf16.mxu0 %v6010_v25  ;;  %5588 = vmatpush3.bf16.msra.mxu1 %v5954_v54 }
 0x9e4   :  { %5589 = vmatprep.subr.bf16.mxu1 %v6010_v25 }
 0x9e6   :  { %5578 = vmatpush3.bf16.msra.mxu0 %v6919_v60  ;;  %v5955_v60 = vld [vmem:[%s7500_s5 + $0xd0] sm:$0xff]  }
 0x9e7   :  { %5579 = vmatprep.subr.bf16.mxu0 %v6010_v25  ;;  %5590 = vmatpush3.bf16.msra.mxu1 %v5955_v60 }
 0x9e8   :  { %5595 = vmatprep.subr.bf16.mxu1 %v6010_v25 }
 0x9ea   :  { %5580 = vmatpush3.bf16.msra.mxu0 %v6932_v29 }
 0x9eb   :  { %5673 = vmatprep.subr.bf16.mxu0 %v6015_v52 }
 0x9ed   :  { %5582 = vmatmul.mubr.msk.bf16.vlgmr.msra.gmra.mrb[72].mxu0 %vm2091_vm4, %v5952_v47 }
 0x9ee   :  { %5615 = vmatprep.mubr.msk.f32.mxu0 %vm6011_vm2, %v6010_v25 }
 0xab0   :  { %v3063_v29 = vpop.f32.mrb[68].mxu0 }
 0xab1   :  { %v3070_v24 = vadd.f32 %v3063_v29, %v2946_v46  ;;  %v5571_v5 = vpop.f32.mrb[69].mxu0 }
 0xab2   :  { %v3066_v16 = vpop.f32.mrb[70].mxu0 }
 0xab3   :  { %v3071_v37 = vadd.f32 %v3066_v16, %v2947_v56  ;;  %v5572_v38 = vpop.f32.mrb[71].mxu0  ;;  %v3642_v56 = vmul.f32 %v3640_v31, %v6877_v63 }
 0xab5   :  { %v3650_v38 = vpack.c.bf16 %v3643_v0, %v3642_v56 }
 0xac0   :  { %v3117_v40 = vpop.f32.mrb[72].mxu0 }
 0xac1   :  { %v5583_v51 = vpop.f32.mrb[73].mxu0 }
 0xac2   :  { %v3120_v57 = vpop.f32.mrb[74].mxu0  ;;  %v3647_v51 = vmul.f32 %v3640_v31, %v6908_v48 }
 0xac3   :  { %v3131_v23 = vpack.c.bf16 %v3120_v57, %v3117_v40  ;;  %v5584_v18 = vpop.f32.mrb[75].mxu0  ;;  %v3646_v40 = vmul.f32 %v3640_v31, %v6902_v61 }
 0xac5   :  { %5592 = vmatmul.mubr.msk.bf16.vlgmr.msra.gmra.mrb[144].mxu1 %vm2221_vm6, %v3131_v23  ;;  %v3652_v23 = vpack.c.bf16 %v3647_v51, %v3646_v40 }
 0xac6   :  { %5596 = vmatpush3.bf16.msra.mxu1 %v5956_v59  ;;  %5607 = vmatprep.mubr.msk.bf16.mxu1 %vm6011_vm2, %v6010_v25 }
 0xac7   :  { %5597 = vmatprep.subr.bf16.mxu1 %v6010_v25 }
 0xaca   :  { %5598 = vmatpush3.bf16.msra.mxu1 %v5957_v28 }
 0xacb   :  { %5599 = vmatprep.subr.bf16.mxu1 %v6010_v25 }
 0xace   :  { %5600 = vmatpush3.bf16.msra.mxu1 %v5958_v34  ;;  %v3648_v34 = vmul.f32 %v3640_v31, %v6906_v44 }
 0xacf   :  { %5601 = vmatprep.subr.bf16.mxu1 %v6010_v25 }
 0xad2   :  { %5602 = vmatpush3.bf16.msra.mxu1 %v5959_v36  ;;  %v3649_v36 = vmul.f32 %v3640_v31, %v6915_v58 }
 0xad3   :  { %5603 = vmatprep.subr.bf16.mxu1 %v6010_v25 }
 0xad6   :  { %5604 = vmatpush3.bf16.msra.mxu1 %v5960_v50 }
 0xad7   :  { %5605 = vmatprep.subr.bf16.mxu1 %v6010_v25 }
 0xada   :  { %5606 = vmatpush3.bf16.msra.mxu1 %v5961_v53  ;;  %v3644_v53 = vmul.f32 %v3640_v31, %v6879_v11 }
 0xadb   :  { %5630 = vmatprep.subr.bf16.mxu1 %v6010_v25 }
 0xb98   :  { %v3187_v2 = vpop.f32.mrb[144].mxu1 }
 0xb99   :  { %v3194_v9 = vadd.f32 %v3187_v2, %v3070_v24  ;;  %v5593_v10 = vpop.f32.mrb[145].mxu1  ;;  %v3645_v2 = vmul.f32 %v3640_v31, %v6884_v19 }
 0xb9a   :  { %v3190_v8 = vpop.f32.mrb[146].mxu1 }
 0xb9b   :  { %v3203_v15 = vadd.f32 %v4739_v6, %v3194_v9  ;;  %v3195_v17 = vadd.f32 %v3190_v8, %v3071_v37  ;;  %v5594_v4 = vpop.f32.mrb[147].mxu1  ;;  %v3653_v9 = vpack.c.bf16 %v3649_v36, %v3648_v34  ;;  %v3651_v10 = vpack.c.bf16 %v3645_v2, %v3644_v53  ;;  %v5977_v8 = vld [vmem:[%s7504_s9 + $0x18] sm:$0xff] }
 0xb9c   :  { %v5980_v4 = vld [vmem:[%s7504_s9 + $0x10] sm:$0xff] }
 0xb9d   :  { %v3204_v27 = vadd.f32 %v4739_v6, %v3195_v17  ;;  %v7233_v33 = vmax.f32 %v3203_v15, 0.0  ;;  %v5976_v6 = vld [vmem:[%s7504_s9 + $0x8] sm:$0xff]  ;;  %v5978_v15 = vld [vmem:[%s7504_s9] sm:$0xff] }
 0xb9e   :  { %v5979_v17 = vld [vmem:[%s7504_s9 + $0x28] sm:$0xff] }
 0xb9f   :  { %v7235_v35 = vmax.f32 %v3204_v27, 0.0  ;;  %v5981_v27 = vld [vmem:[%s7504_s9 + $0x38] sm:$0xff] }
 0xba1   :  { %v3219_v49 = vpack.c.bf16 %v7235_v35, %v7233_v33 }
 0xba3   :  { %5608 = vmatmul.mubr.msk.bf16.vlgmr.msra.gmra.mrb[148].mxu1 %vm3263_vm7, %v3219_v49  ;;  %v5982_v49 = vld [vmem:[%s7504_s9 + $0x20] sm:$0xff] }
 0xba4   :  { %5632 = vmatprep.mubr.msk.bf16.mxu1 %vm6011_vm2, %v6010_v25 }
 0xc76   :  { %v3301_v22 = vpop.f32.mrb[148].mxu1 }
 0xc77   :  { %v3302_v26 = vadd.f32 %v4740_v21, %v3301_v22  ;;  %v5609_v30 = vpop.f32.mrb[149].mxu1  ;;  %v5983_v22 = vld [vmem:[%s7504_s9 + $0x30] sm:$0xff] }
 0xc78   :  { %v3304_v32 = vpop.f32.mrb[150].mxu1 }
 0xc79   :  { %v3308_v43 = vmax.f32 %v3302_v26, 0.0  ;;  %v3305_v46 = vadd.f32 %v4740_v21, %v3304_v32  ;;  %v5610_v55 = vpop.f32.mrb[151].mxu1  ;;  %v6018_v21 = vmov 1  }
 0xc7a   :  { %v4756_v55 = vld [vmem:[%s7508_s13] ss:$0 sm:$0xff] }
 0xc7b   :  { %v3309_v3 = vmax.f32 %v3305_v46, 0.0  ;;  %v3433_v1 = vsel %vm3432_vm8, %v3308_v43, 0.0  ;;  %v3329_v12 = vsel %vm3328_vm9, %v3308_v43, 0.0  ;;  %v3966_v14 = vsel %vm3965_vm10, %v3308_v43, 0.0 }
 0xc7c   :  { %v3872_v24 = vsel %vm3871_vm11, %v3308_v43, 0.0 }
 0xc7d   :  { %v7252_v39 = vpack.i.bf16 %v3309_v3, %v3308_v43  ;;  %v3434_v42 = vsel %vm3432_vm8, %v3309_v3, 0.0  ;;  %v3330_v47 = vsel %vm3328_vm9, %v3309_v3, 0.0  ;;  %v3967_v20 = vsel %vm3965_vm10, %v3309_v3, 0.0 }
 0xc7e   :  { %v3435_v54 = vadd.f32 %v3434_v42, %v3433_v1  ;;  %v3331_v60 = vadd.f32 %v3330_v47, %v3329_v12  ;;  %v7257_v29 = vadd.f32 %v3967_v20, %v3966_v14  ;;  %v3873_v5 = vsel %vm3871_vm11, %v3309_v3, 0.0 }
 0xc7f   :  { %5773 = vrot.lane.b32.xlu1 %v7252_v39, %s6016_s8  ;;  %v7263_v37 = vadd.f32 %v3873_v5, %v3872_v24 }
 0xc80   :  { %v3436_v16 = vrot.slane %v3435_v54, 4  ;;  %v3332_v26 = vrot.slane %v3331_v60, 4 }
 0xc82   :  { %v3437_v57 = vadd.f32 %v3436_v16, %v3435_v54  ;;  %v3333_v30 = vadd.f32 %v3332_v26, %v3331_v60 }
 0xc83   :  { %3663 = vrot.lane.b32.xlu1 %v3650_v38, %s6017_s17 }
 0xc84   :  { %v3438_v59 = vrot.slane %v3437_v57, 2  ;;  %v3334_v32 = vrot.slane %v3333_v30, 2 }
 0xc86   :  { %v3439_v18 = vadd.f32 %v3438_v59, %v3437_v57  ;;  %v3335_v56 = vadd.f32 %v3334_v32, %v3333_v30 }
 0xc87   :  { %3667 = vrot.lane.b32.xlu1 %v3652_v23, %s6017_s17 }
 0xc88   :  { %v3440_v28 = vrot.slane %v3439_v18, 1 }
 0xc8a   :  { %v3441_v50 = vadd.f32 %v3440_v28, %v3439_v18 }
 0xc8b   :  { %3985 = vperm.xlu1 %5778, %v5976_v6  }
 0xc8c   :  { %3443 = vrot.lane.b32.xlu0 %v3441_v50, %s6017_s17 }
 0xc8f   :  { %3669 = vrot.lane.b32.xlu1 %v3653_v9, %s6017_s17 }
 0xc90   :  { %3665 = vrot.lane.b32.xlu0 %v3651_v10, %s6017_s17 }
 0xc93   :  { %3993 = vperm.xlu1 %5778, %v5977_v8  }
 0xc94   :  { %3981 = vperm.xlu0 %5777, %v5978_v15  }
 0xc97   :  { %4001 = vperm.xlu1 %5778, %v5979_v17  }
 0xc98   :  { %3989 = vperm.xlu0 %5777, %v5980_v4  }
 0xc9b   :  { %4009 = vperm.xlu1 %5778, %v5981_v27  }
 0xc9c   :  { %3997 = vperm.xlu0 %5777, %v5982_v49  }
 0xc9f   :  { %5780 = vset.pattern.permute.xlu1 %v6018_v21 }
 0xca0   :  { %3887 = vperm.xlu1 %5780, %v5976_v6   ;;  %4005 = vperm.xlu0 %5777, %v5983_v22  }
 0xca4   :  { %3891 = vperm.xlu1 %5780, %v5980_v4   ;;  %5779 = vset.pattern.permute.xlu0 %v6018_v21 }
 0xca5   :  { %3883 = vperm.xlu0 %5779, %v5978_v15  }
 0xca8   :  { %3899 = vperm.xlu1 %5780, %v5982_v49  }
 0xca9   :  { %3895 = vperm.xlu0 %5779, %v5977_v8  }
 0xcac   :  { %3907 = vperm.xlu1 %5780, %v5983_v22  }
 0xcad   :  { %3903 = vperm.xlu0 %5779, %v5979_v17  }
 0xcb0   :  { %5782 = vset.pattern.permute.xlu1 %v6008_v62 }
 0xcb1   :  { %3911 = vperm.xlu0 %5779, %v5981_v27  }
 0xcb5   :  { %5781 = vset.pattern.permute.xlu0 %v6008_v62  ;;  %v3336_v62 = vrot.slane %v3335_v56, 1 }
 0xcb7   :  { %v3337_v0 = vadd.f32 %v3336_v62, %v3335_v56 }
 0xcf1   :  { %v5774_v31 = vpop.permute.xlu1 %5773 }
 0xcf2   :  { %v5776_v43 = vunpack.i.h.bf16 %v5774_v31  ;;  %v5775_v46 = vunpack.i.l.bf16 %v5774_v31 }
 0xcf4   :  { %v5674_v3 = vpack.c.bf16 %v5776_v43, %v5775_v46 }
 0xcf5   :  { %v3664_v14 = vpop.permute.xlu1 %3663 }
 0xcf6   :  { %5676 = vmatpush3.bf16.xpose.msk.msra.mxu0 %vm7306_vm12, %v5674_v3 }
 0xcf7   :  { %5618 = vmatprep.subr.bf16.mxu0 %v6010_v25 }
 0xcf9   :  { %v3668_v47 = vpop.permute.xlu1 %3667 }
 0xcfe   :  { %v3444_v1 = vpop.permute.xlu0 %3443 }
 0xcff   :  { %v3446_v12 = vadd.f32 %v3444_v1, %v3337_v0  ;;  %v7339_v0 = vld [vmem:[%s7506_s11] sm:$0xff]  }
 0xd01   :  { %v3538_v42 = vmul.f32 0.03125, %v3446_v12 }
 0xd02   :  { %v3666_v20 = vpop.permute.xlu0 %3665 }
 0xd03   :  { %5616 = vmatmul.mubr.msk.f32.vlgmr.msra.gmra.mrb[76].mxu0 %vm3328_vm9, %v3538_v42 }
 0xd04   :  { %5619 = vmatpush3.bf16.msra.mxu0 %v3664_v14  ;;  %5626 = vmatprep.mubr.msk.bf16.mxu0 %vm6011_vm2, %v6010_v25 }
 0xd05   :  { %5620 = vmatprep.subr.bf16.mxu0 %v6010_v25 }
 0xd08   :  { %5621 = vmatpush3.bf16.msra.mxu0 %v3666_v20 }
 0xd09   :  { %5622 = vmatprep.subr.bf16.mxu0 %v6010_v25 }
 0xd0a   :  { %v3986_v54 = vpop.permute.xlu1 %3985 }
 0xd0b   :  { %v4013_v16 = vmul.f32 %v3986_v54, %v6881_v7 }
 0xd0c   :  { %5623 = vmatpush3.bf16.msra.mxu0 %v3668_v47 }
 0xd0d   :  { %5624 = vmatprep.subr.bf16.mxu0 %v6010_v25  ;;  %v4022_v59 = vsel %vm4020_vm13, %v4013_v16, 0.0 }
 0xd0e   :  { %v3670_v60 = vpop.permute.xlu1 %3669 }
 0xd10   :  { %5625 = vmatpush3.bf16.msra.mxu0 %v3670_v60 }
 0xd11   :  { %5636 = vmatprep.subr.bf16.mxu0 %v6010_v25 }
 0xd12   :  { %v3994_v24 = vpop.permute.xlu1 %3993 }
 0xd13   :  { %v3982_v5 = vpop.permute.xlu0 %3981  ;;  %v4015_v23 = vmul.f32 %v3994_v24, %v6884_v19  ;;  %5627 = vmatmul.mubr.msk.bf16.vlgmr.msra.gmra.mrb[80].mxu0 %vm2091_vm4, %v7339_v0 }
 0xd14   :  { %v4012_v38 = vmul.f32 %v3982_v5, %v6877_v63  ;;  %5638 = vmatprep.mubr.msk.bf16.mxu0 %vm6011_vm2, %v6010_v25 }
 0xd15   :  { %v4026_v53 = vsel %vm4020_vm13, %v4015_v23, 0.0 }
 0xd16   :  { %v4021_v40 = vsel %vm4020_vm13, %v4012_v38, 0.0  ;;  %v4002_v51 = vpop.permute.xlu1 %4001 }
 0xd17   :  { %v3990_v57 = vpop.permute.xlu0 %3989  ;;  %v4023_v28 = vadd.f32 %v4022_v59, %v4021_v40  ;;  %v4017_v2 = vmul.f32 %v4002_v51, %v6908_v48 }
 0xd18   :  { %v4014_v18 = vmul.f32 %v3990_v57, %v6879_v11 }
 0xd19   :  { %v4030_v4 = vsel %vm4020_vm13, %v4017_v2, 0.0 }
 0xd1a   :  { %v4024_v34 = vsel %vm4020_vm13, %v4014_v18, 0.0  ;;  %v4010_v9 = vpop.permute.xlu1 %4009 }
 0xd1b   :  { %v4025_v36 = vadd.f32 %v4024_v34, %v4023_v28  ;;  %v3998_v50 = vpop.permute.xlu0 %3997  ;;  %v4019_v27 = vmul.f32 %v4010_v9, %v6915_v58 }
 0xd1c   :  { %v4016_v6 = vmul.f32 %v3998_v50, %v6902_v61 }
 0xd1d   :  { %v4027_v10 = vadd.f32 %v4026_v53, %v4025_v36  ;;  %v4034_v31 = vsel %vm4020_vm13, %v4019_v27, 0.0 }
 0xd1e   :  { %v4028_v8 = vsel %vm4020_vm13, %v4016_v6, 0.0 }
 0xd1f   :  { %v4029_v15 = vadd.f32 %v4028_v8, %v4027_v10  ;;  %v4006_v17 = vpop.permute.xlu0 %4005  ;;  %v3888_v12 = vpop.permute.xlu1 %3887 }
 0xd20   :  { %v4018_v49 = vmul.f32 %v4006_v17, %v6906_v44  ;;  %v3915_v47 = vmul.f32 %v3888_v12, %v6881_v7 }
 0xd21   :  { %v4031_v22 = vadd.f32 %v4030_v4, %v4029_v15 }
 0xd22   :  { %v4032_v26 = vsel %vm4020_vm13, %v4018_v49, 0.0  ;;  %v3924_v24 = vsel %vm3922_vm14, %v3915_v47, 0.0 }
 0xd23   :  { %v4033_v30 = vadd.f32 %v4032_v26, %v4031_v22  ;;  %v3892_v20 = vpop.permute.xlu1 %3891 }
 0xd24   :  { %v3884_v14 = vpop.permute.xlu0 %3883  ;;  %v3916_v5 = vmul.f32 %v3892_v20, %v6879_v11 }
 0xd25   :  { %v4035_v32 = vadd.f32 %v4034_v31, %v4033_v30  ;;  %v3914_v42 = vmul.f32 %v3884_v14, %v6877_v63 }
 0xd26   :  { %v3926_v40 = vsel %vm3922_vm14, %v3916_v5, 0.0 }
 0xd27   :  { %v4036_v43 = vrot.slane %v4035_v32, 4  ;;  %v3923_v54 = vsel %vm3922_vm14, %v3914_v42, 0.0  ;;  %v3900_v51 = vpop.permute.xlu1 %3899 }
 0xd28   :  { %v3896_v60 = vpop.permute.xlu0 %3895  ;;  %v3925_v16 = vadd.f32 %v3924_v24, %v3923_v54  ;;  %v3918_v18 = vmul.f32 %v3900_v51, %v6902_v61 }
 0xd29   :  { %v4037_v46 = vadd.f32 %v4036_v43, %v4035_v32  ;;  %v3917_v38 = vmul.f32 %v3896_v60, %v6884_v19 }
 0xd2a   :  { %v3927_v57 = vadd.f32 %v3926_v40, %v3925_v16  ;;  %v3930_v36 = vsel %vm3922_vm14, %v3918_v18, 0.0 }
 0xd2b   :  { %v4038_v3 = vrot.slane %v4037_v46, 2  ;;  %v3928_v59 = vsel %vm3922_vm14, %v3917_v38, 0.0  ;;  %v3908_v50 = vpop.permute.xlu1 %3907 }
 0xd2c   :  { %v3904_v23 = vpop.permute.xlu0 %3903  ;;  %v3929_v28 = vadd.f32 %v3928_v59, %v3927_v57  ;;  %v3920_v9 = vmul.f32 %v3908_v50, %v6906_v44 }
 0xd2d   :  { %v4039_v56 = vadd.f32 %v4038_v3, %v4037_v46  ;;  %v3919_v34 = vmul.f32 %v3904_v23, %v6908_v48  ;;  %v3319_v23 = vld [vmem:[%s7505_s10 + $0x8] sm:$0xff] }
 0xd2e   :  { %v3931_v53 = vadd.f32 %v3930_v36, %v3929_v28  ;;  %v3934_v15 = vsel %vm3922_vm14, %v3920_v9, 0.0 }
 0xd2f   :  { %v4040_v62 = vrot.slane %v4039_v56, 1  ;;  %v3932_v2 = vsel %vm3922_vm14, %v3919_v34, 0.0 }
 0xd30   :  { %v3912_v6 = vpop.permute.xlu0 %3911  ;;  %v3933_v10 = vadd.f32 %v3932_v2, %v3931_v53 }
 0xd31   :  { %v4041_v1 = vadd.f32 %v4040_v62, %v4039_v56  ;;  %v3921_v8 = vmul.f32 %v3912_v6, %v6915_v58  ;;  %v3318_v62 = vld [vmem:[%s7505_s10] sm:$0xff]  ;;  %s6020_s10 = smov 48  }
 0xd32   :  { %v3935_v17 = vadd.f32 %v3934_v15, %v3933_v10 }
 0xd33   :  { %4043 = vrot.lane.b32.xlu1 %v4041_v1, %s6012_s21  ;;  %v3936_v4 = vsel %vm3922_vm14, %v3921_v8, 0.0  ;;  %v3322_v1 = vld [vmem:[%s7507_s12] sm:$0xf] }
 0xd34   :  { %v3937_v27 = vadd.f32 %v3936_v4, %v3935_v17  ;;  %v7371_v12 = vsel %vm3777_vm15, %v3322_v1, 0  ;;  %v3969_v4 = vrot.slane %v7257_v29, 4 }
 0xd35   :  { %5637 = vmatpush3.bf16.msra.mxu0 %v7371_v12 }
 0xd36   :  { %v3938_v49 = vrot.slane %v3937_v27, 4  ;;  %5649 = vmatprep.subr.bf16.mxu0 %v6010_v25 }
 0xd38   :  { %v3939_v22 = vadd.f32 %v3938_v49, %v3937_v27 }
 0xd3a   :  { %v3940_v26 = vrot.slane %v3939_v22, 2 }
 0xd3c   :  { %v3941_v30 = vadd.f32 %v3940_v26, %v3939_v22 }
 0xd3e   :  { %v3942_v31 = vrot.slane %v3941_v30, 1 }
 0xd40   :  { %v3943_v32 = vadd.f32 %v3942_v31, %v3941_v30 }
 0xda5   :  { %v4044_v43 = vpop.permute.xlu1 %4043 }
 0xda6   :  { %v4046_v46 = vadd.f32 %v4044_v43, %v3943_v32  ;;  %v3970_v32 = vadd.f32 %v3969_v4, %v7257_v29 }
 0xda8   :  { %v4072_v3 = vmul.f32 0.5, %v4046_v46 }
 0xdaa   :  { %v4170_v56 = vrot.slane %v4072_v3, %v6994_v41  ;;  %v3971_v3 = vrot.slane %v3970_v32, 2 }
 0xdac   :  { %4172 = vrot.lane.b32.xlu0 %v4170_v56, %s6013_s1  ;;  %s6019_s1 = smov 88   ;;  %v3972_v1 = vadd.f32 %v3971_v3, %v3970_v32 }
 0xdb0   :  { %3515 = vperm.xlu0 %5781, %v3318_v62  }
 0xdb4   :  { %5783 = vset.pattern.permute.xlu0 %v6014_v45 }
 0xdd6   :  { %v7375_v14 = vpop.f32.mrb[76].mxu0 }
 0xdd7   :  { %v5617_v42 = vpop.f32.mrb[77].mxu0 }
 0xde6   :  { %v3712_v47 = vpop.f32.mrb[80].mxu0 }
 0xde7   :  { %v5628_v20 = vpop.f32.mrb[81].mxu0 }
 0xde8   :  { %v3715_v54 = vpop.f32.mrb[82].mxu0  ;;  %v3973_v20 = vrot.slane %v3972_v1, 1 }
 0xde9   :  { %v3719_v60 = vpack.c.bf16 %v3715_v54, %v3712_v47  ;;  %v5629_v24 = vpop.f32.mrb[83].mxu0 }
 0xdea   :  { %v3974_v54 = vadd.f32 %v3973_v20, %v3972_v1 }
 0xdeb   :  { %5639 = vmatmul.mubr.msk.bf16.vlgmr.msra.gmra.mrb[84].mxu0 %vm3387_vm5, %v3719_v60 }
 0xdec   :  { %5657 = vmatprep.mubr.msk.bf16.mxu0 %vm6011_vm2, %v6010_v25 }
 0xe1e   :  { %v4173_v5 = vpop.permute.xlu0 %4172 }
 0xe1f   :  { %v4179_v16 = vmul.f32 %v4173_v5, %v6902_v61  ;;  %v4180_v38 = vmul.f32 %v4173_v5, %v6908_v48  ;;  %v4175_v40 = vmul.f32 %v4173_v5, %v6877_v63  ;;  %v4176_v51 = vmul.f32 %v4173_v5, %v6881_v7 }
 0xe20   :  { %v4177_v18 = vmul.f32 %v4173_v5, %v6879_v11  ;;  %v4178_v28 = vmul.f32 %v4173_v5, %v6884_v19  ;;  %v4181_v63 = vmul.f32 %v4173_v5, %v6906_v44  ;;  %v4182_v7 = vmul.f32 %v4173_v5, %v6915_v58 }
 0xe21   :  { %v4185_v57 = vpack.c.bf16 %v4180_v38, %v4179_v16  ;;  %v4183_v59 = vpack.c.bf16 %v4176_v51, %v4175_v40 }
 0xe22   :  { %v4184_v61 = vpack.c.bf16 %v4178_v28, %v4177_v18  ;;  %v4186_v48 = vpack.c.bf16 %v4182_v7, %v4181_v63 }
 0xe23   :  { %4195 = vrot.lane.b32.xlu0 %v4185_v57, %s6019_s1  ;;  %4191 = vrot.lane.b32.xlu1 %v4183_v59, %s6019_s1 }
 0xe27   :  { %4048 = vperm.xlu0 %5783, %v3318_v62   ;;  %3519 = vperm.xlu1 %5782, %v3319_v23  }
 0xe2b   :  { %5786 = vset.pattern.permute.xlu0 %v6009_v13  ;;  %4193 = vrot.lane.b32.xlu1 %v4184_v61, %s6019_s1 }
 0xe2c   :  { %3417 = vperm.xlu0 %5786, %v3319_v23   ;;  %5784 = vset.pattern.permute.xlu1 %v6014_v45 }
 0xe2f   :  { %4197 = vrot.lane.b32.xlu1 %v4186_v48, %s6019_s1  ;;  %v3516_v19 = vpop.permute.xlu0 %3515 }
 0xe30   :  { %5793 = vset.pattern.permute.xlu0 %v6014_v45  ;;  %v3522_v44 = vmul.f32 %v3516_v19, %v7233_v33 }
 0xe32   :  { %v3524_v45 = vsel %vm3432_vm8, %v3522_v44, 0.0  ;;  %v3875_v44 = vrot.slane %v7263_v37, 4 }
 0xe33   :  { %4052 = vperm.xlu1 %5784, %v3319_v23  }
 0xe37   :  { %5785 = vset.pattern.permute.xlu1 %v6009_v13 }
 0xe38   :  { %3412 = vperm.xlu1 %5785, %v3318_v62  }
 0xe3c   :  { %5787 = vset.pattern.permute.xlu1 %v6018_v21 }
 0xe3d   :  { %3946 = vperm.xlu1 %5787, %v3318_v62  }
 0xe41   :  { %3950 = vperm.xlu1 %5787, %v3319_v23  }
 0xe95   :  { %v4192_v11 = vpop.permute.xlu1 %4191  ;;  %v4196_v13 = vpop.permute.xlu0 %4195 }
 0xe96   :  { %5650 = vmatpush3.bf16.msra.mxu0 %v4192_v11 }
 0xe97   :  { %5651 = vmatprep.subr.bf16.mxu0 %v6010_v25 }
 0xea6   :  { %v3520_v58 = vpop.permute.xlu1 %3519  ;;  %v4049_v6 = vpop.permute.xlu0 %4048 }
 0xea7   :  { %v3523_v34 = vmul.f32 %v3520_v58, %v7235_v35  ;;  %v4055_v8 = vmul.f32 %v4049_v6, %v7233_v33 }
 0xea9   :  { %v3525_v36 = vsel %vm3432_vm8, %v3523_v34, 0.0  ;;  %v4057_v22 = vsel %vm3965_vm10, %v4055_v8, 0.0 }
 0xeaa   :  { %v3526_v50 = vadd.f32 %v3525_v36, %v3524_v45  ;;  %v4194_v53 = vpop.permute.xlu1 %4193  ;;  %v3876_v45 = vadd.f32 %v3875_v44, %v7263_v37 }
 0xeab   :  { %5652 = vmatpush3.bf16.msra.mxu0 %v4194_v53 }
 0xeac   :  { %v3527_v21 = vrot.slane %v3526_v50, 4  ;;  %5653 = vmatprep.subr.bf16.mxu0 %v6010_v25 }
 0xeae   :  { %v3528_v2 = vadd.f32 %v3527_v21, %v3526_v50  ;;  %v4198_v9 = vpop.permute.xlu1 %4197  ;;  %v3877_v21 = vrot.slane %v3876_v45, 2 }
 0xeaf   :  { %5654 = vmatpush3.bf16.msra.mxu0 %v4196_v13 }
 0xeb0   :  { %v3529_v10 = vrot.slane %v3528_v2, 2  ;;  %5655 = vmatprep.subr.bf16.mxu0 %v6010_v25 }
 0xeb2   :  { %v4053_v15 = vpop.permute.xlu1 %4052  ;;  %v3530_v17 = vadd.f32 %v3529_v10, %v3528_v2  ;;  %v5963_v10 = vld [vmem:[%s7507_s12 + $0x4] sm:$0xff]  }
 0xeb3   :  { %v4056_v27 = vmul.f32 %v4053_v15, %v7235_v35  ;;  %5656 = vmatpush3.bf16.msra.mxu0 %v4198_v9  ;;  %v3878_v9 = vadd.f32 %v3877_v21, %v3876_v45  ;;  %5631 = vmatpush3.bf16.msra.mxu1 %v5963_v10 }
 0xeb4   :  { %v3531_v49 = vrot.slane %v3530_v17, 1  ;;  %5677 = vmatprep.subr.bf16.mxu1 %v6015_v52 }
 0xeb5   :  { %v4058_v26 = vsel %vm3965_vm10, %v4056_v27, 0.0  ;;  %v3879_v15 = vrot.slane %v3878_v9, 1 }
 0xeb6   :  { %v4059_v30 = vadd.f32 %v4058_v26, %v4057_v22  ;;  %v3532_v31 = vadd.f32 %v3531_v49, %v3530_v17  ;;  %5658 = vmatmul.mubr.msk.bf16.vlgmr.msra.gmra.mrb[88].mxu0 %vm2091_vm4, %v7339_v0  ;;  %v3418_v0 = vpop.permute.xlu0 %3417 }
 0xeb7   :  { %v3413_v29 = vpop.permute.xlu1 %3412  ;;  %v3421_v24 = vmul.f32 %v3418_v0, %v7235_v35  ;;  %v3880_v27 = vadd.f32 %v3879_v15, %v3878_v9 }
 0xeb8   :  { %v4060_v43 = vrot.slane %v4059_v30, 4  ;;  %3534 = vrot.lane.b32.xlu0 %v3532_v31, %s6017_s17  ;;  %v3420_v60 = vmul.f32 %v3413_v29, %v7233_v33 }
 0xeb9   :  { %v3423_v38 = vsel %vm3328_vm9, %v3421_v24, 0.0 }
 0xeba   :  { %v4061_v46 = vadd.f32 %v4060_v43, %v4059_v30  ;;  %v3422_v16 = vsel %vm3328_vm9, %v3420_v60, 0.0 }
 0xebb   :  { %v3424_v40 = vadd.f32 %v3423_v38, %v3422_v16 }
 0xebc   :  { %v4062_v56 = vrot.slane %v4061_v46, 2  ;;  %v3947_v5 = vpop.permute.xlu1 %3946 }
 0xebd   :  { %v3425_v57 = vrot.slane %v3424_v40, 4  ;;  %v3953_v23 = vmul.f32 %v3947_v5, %v7233_v33 }
 0xebe   :  { %v4063_v62 = vadd.f32 %v4062_v56, %v4061_v46  ;;  %v3815_v31 = vpop.f32.mrb[84].mxu0 }
 0xebf   :  { %v3426_v18 = vadd.f32 %v3425_v57, %v3424_v40  ;;  %v3955_v28 = vsel %vm3871_vm11, %v3953_v23, 0.0  ;;  %v5640_v32 = vpop.f32.mrb[85].mxu0 }
 0xec0   :  { %v4064_v42 = vrot.slane %v4063_v62, 1  ;;  %v3951_v51 = vpop.permute.xlu1 %3950  ;;  %v3818_v43 = vpop.f32.mrb[86].mxu0 }
 0xec1   :  { %v3954_v59 = vmul.f32 %v3951_v51, %v7235_v35  ;;  %v3427_v63 = vrot.slane %v3426_v18, 2  ;;  %v5641_v46 = vpop.f32.mrb[87].mxu0 }
 0xec2   :  { %v4065_v47 = vadd.f32 %v4064_v42, %v4063_v62 }
 0xec3   :  { %v3428_v48 = vadd.f32 %v3427_v63, %v3426_v18 }
 0xec4   :  { %4067 = vrot.lane.b32.xlu1 %v4065_v47, %s6017_s17 }
 0xec5   :  { %v3429_v19 = vrot.slane %v3428_v48, 1 }
 0xec7   :  { %v3430_v58 = vadd.f32 %v3429_v19, %v3428_v48 }
 0xec8   :  { %3976 = vrot.lane.b32.xlu1 %v3974_v54, %s6017_s17 }
 0xecc   :  { %5789 = vrot.lane.b32.xlu1 %v7252_v39, %s6020_s10  ;;  %v3956_v39 = vsel %vm3871_vm11, %v3954_v59, 0.0 }
 0xecd   :  { %v3957_v61 = vadd.f32 %v3956_v39, %v3955_v28 }
 0xecf   :  { %v3958_v7 = vrot.slane %v3957_v61, 4 }
 0xed1   :  { %v3959_v11 = vadd.f32 %v3958_v7, %v3957_v61 }
 0xed3   :  { %v3960_v34 = vrot.slane %v3959_v11, 2 }
 0xed5   :  { %v3961_v53 = vadd.f32 %v3960_v34, %v3959_v11 }
 0xed7   :  { %v3962_v6 = vrot.slane %v3961_v53, 1 }
 0xed9   :  { %v3963_v8 = vadd.f32 %v3962_v6, %v3961_v53 }
 0xf2a   :  { %v3535_v36 = vpop.permute.xlu0 %3534 }
 0xf2b   :  { %v3537_v13 = vadd.f32 %v3535_v36, %v3430_v58 }
 0xf2d   :  { %v3540_v50 = vmul.f32 0.5, %v3537_v13 }
 0xf2f   :  { %v3627_v2 = vrot.slane %v3540_v50, %v6994_v41 }
 0xf31   :  { %3629 = vrot.lane.b32.xlu0 %v3627_v2, %s6016_s8 }
 0xf36   :  { %v4068_v17 = vpop.permute.xlu1 %4067 }
 0xf37   :  { %v4070_v37 = vadd.f32 %v4068_v17, %v3963_v8 }
 0xf39   :  { %v4073_v4 = vmul.f32 0.5, %v4070_v37 }
 0xf3a   :  { %v3977_v49 = vpop.permute.xlu1 %3976 }
 0xf3b   :  { %v4160_v22 = vrot.slane %v4073_v4, %v6994_v41  ;;  %v3979_v26 = vadd.f32 %v3977_v49, %v3880_v27 }
 0xf3d   :  { %v4071_v30 = vmul.f32 0.03125, %v3979_v26  ;;  %4162 = vrot.lane.b32.xlu0 %v4160_v22, %s6016_s8 }
 0xf3e   :  { %v5790_v24 = vpop.permute.xlu1 %5789 }
 0xf3f   :  { %4075 = vrot.lane.b32.xlu1 %v4071_v30, %s6012_s21  ;;  %v5792_v5 = vunpack.i.h.bf16 %v5790_v24  ;;  %v5791_v16 = vunpack.i.l.bf16 %v5790_v24 }
 0xf41   :  { %v5678_v38 = vpack.c.bf16 %v5792_v5, %v5791_v16 }
 0xf89   :  { %v4237_v1 = vpop.f32.mrb[88].mxu0 }
 0xf8a   :  { %v5659_v41 = vpop.f32.mrb[89].mxu0 }
 0xf8b   :  { %v4240_v42 = vpop.f32.mrb[90].mxu0 }
 0xf8c   :  { %v4244_v47 = vpack.c.bf16 %v4240_v42, %v4237_v1  ;;  %v5660_v20 = vpop.f32.mrb[91].mxu0 }
 0xfa3   :  { %v3630_v3 = vpop.permute.xlu0 %3629 }
 0xfa4   :  { %v3632_v56 = vmul.f32 %v3630_v3, %v7233_v33  ;;  %v3633_v52 = vmul.f32 %v3630_v3, %v7235_v35 }
 0xfa6   :  { %v3720_v62 = vpack.c.bf16 %v3633_v52, %v3632_v56 }
 0xfa8   :  { %3722 = vrot.lane.b32.xlu0 %v3720_v62, %s6016_s8 }
 0xfaf   :  { %v4163_v54 = vpop.permute.xlu0 %4162 }
 0xfb0   :  { %v4165_v29 = vmul.f32 %v4163_v54, %v7233_v33  ;;  %v4166_v0 = vmul.f32 %v4163_v54, %v7235_v35 }
 0xfb1   :  { %v4076_v33 = vpop.permute.xlu1 %4075 }
 0xfb2   :  { %v4245_v60 = vpack.c.bf16 %v4166_v0, %v4165_v29 }
 0xfb4   :  { %4247 = vrot.lane.b32.xlu0 %v4245_v60, %s6020_s10 }
0x101a   :  { %v3723_v40 = vpop.permute.xlu0 %3722 }
0x101b   :  { %5633 = vmatmul.mubr.msk.bf16.vlgmr.msra.gmra.mrb[152].mxu1 %vm3328_vm9, %v3723_v40 }
0x101c   :  { %5680 = vmatpush3.bf16.xpose.msk.msra.mxu1 %vm7306_vm12, %v5678_v38  ;;  %5646 = vmatprep.mubr.msk.f32.mxu1 %vm6011_vm2, %v6010_v25 }
0x101d   :  { %5661 = vmatprep.subr.bf16.mxu1 %v6010_v25 }
0x1023   :  { %5647 = vmatmul.mubr.msk.f32.vlgmr.msra.gmra.mrb[156].mxu1 %vm3328_vm9, %v4076_v33 }
0x1024   :  { %5662 = vmatpush3.bf16.msra.mxu1 %v5963_v10  ;;  %5663 = vmatprep.mubr.msk.bf16.mxu1 %vm6011_vm2, %v6010_v25 }
0x1025   :  { %5667 = vmatprep.subr.bf16.mxu1 %v6010_v25 }
0x1026   :  { %v4248_v35 = vpop.permute.xlu0 %4247 }
0x1027   :  { %5664 = vmatmul.mubr.msk.bf16.vlgmr.msra.gmra.mrb[160].mxu1 %vm3328_vm9, %v4248_v35 }
0x1028   :  { %5668 = vmatpush3.bf16.msra.mxu1 %v7371_v12  ;;  %5669 = vmatprep.mubr.msk.bf16.mxu1 %vm6011_vm2, %v6010_v25  ;;  %vm4383_vm2 = vcmask 123904  }
0x102f   :  { %5670 = vmatmul.mubr.msk.bf16.vlgmr.msra.gmra.mrb[164].mxu1 %vm3387_vm5, %v4244_v47 }
0x10ee   :  { %v3767_v51 = vpop.f32.mrb[152].mxu1 }
0x10ef   :  { %v3816_v57 = vadd.f32 %v3815_v31, %v3767_v51  ;;  %v5634_v59 = vpop.f32.mrb[153].mxu1 }
0x10f0   :  { %v3770_v23 = vpop.f32.mrb[154].mxu1 }
0x10f1   :  { %v3828_v18 = vadd.f32 %v4756_v55, %v3816_v57  ;;  %v3819_v39 = vadd.f32 %v3818_v43, %v3770_v23  ;;  %v5635_v28 = vpop.f32.mrb[155].mxu1 }
0x10f2   :  { %v3327_v28 = vld [vmem:[%s7509_s14 + $0x8] sm:$0xff] }
0x10f3   :  { %v3829_v61 = vadd.f32 %v4756_v55, %v3819_v39  ;;  %v3831_v12 = vsel %vm3830_vm1, %v3828_v18, -inf  ;;  %v3326_v39 = vld [vmem:[%s7509_s14] sm:$0xff]  ;;  %s6021_s14 = smov [#allocation2]  }
0x10f4   :  { %s4396_s24 = sshll.u32 %s6021_s14, 4  ;;  %s4397_s24 = int_to_ptr.vmem [resolvable:$true] %s4396_s24 }
0x10f5   :  { %v3832_v63 = vsel %vm3830_vm1, %v3829_v61, -inf  ;;  %s5984_s25 = scalar_lea.vmem %s4397_s24, 32  ;;  %p5989_p1 = scmp.lt.s32.totalorder %s4397_s24, %s4397_s24 }
0x10f6   :  { %v3833_v25 = vmax.f32 %v3831_v12, %v3832_v63  ;;  %v4153_v7 = vpop.f32.mrb[156].mxu1  ;;  %p5985_p0 = scmp.ne.s32.totalorder %s4397_s24, %s5984_s25  ;;  %p5990_p2 = scmp.lt.s32.totalorder %s5984_s25, %s5984_s25 }
0x10f7   :  { %v4380_v48 = vrot.slane %v4153_v7, 7  ;;  %v5648_v11 = vpop.f32.mrb[157].mxu1 }
0x10f8   :  { %v3834_v19 = vrot.slane %v3833_v25, 4  ;;  %p5991_p3 = por %p5990_p2, %p5989_p1 }
0x10f9   :  { %v4382_v44 = vsel %vm366_vm0, %v7375_v14, %v4380_v48 }
0x10fa   :  { %v3835_v58 = vmax.f32 %v3833_v25, %v3834_v19  ;;  %4384 = vst.msk [vmem:[%s7510_s15] sm:$0x3] %vm4383_vm2, %v4382_v44  ;;  %v4286_v34 = vpop.f32.mrb[160].mxu1  ;;  %p5992_p4 = pnand %p5991_p3, %p5985_p0 }
0x10fb   :  { %v5665_v45 = vpop.f32.mrb[161].mxu1 }
0x10fc   :  { %v3836_v36 = vrot.slane %v3835_v58, 2  ;;  %v4289_v13 = vpop.f32.mrb[162].mxu1 }
0x10fd   :  { %v5666_v50 = vpop.f32.mrb[163].mxu1 }
0x10fe   :  { %v3837_v53 = vmax.f32 %v3835_v58, %v3836_v36 }
0x1100   :  { %v3838_v21 = vrot.slane %v3837_v53, 1 }
0x1102   :  { %v3839_v2 = vmax.f32 %v3837_v53, %v3838_v21  ;;  %v4330_v6 = vpop.f32.mrb[164].mxu1 }
0x1103   :  { %v4331_v9 = vadd.f32 %v4330_v6, %v4286_v34  ;;  %v5671_v10 = vpop.f32.mrb[165].mxu1 }
0x1104   :  { %v3840_v8 = vsub.f32 %v3828_v18, %v3839_v2  ;;  %v3841_v15 = vsub.f32 %v3829_v61, %v3839_v2  ;;  %v4333_v17 = vpop.f32.mrb[166].mxu1 }
0x1105   :  { %v4337_v14 = vadd.f32 %v4756_v55, %v4331_v9  ;;  %v4334_v37 = vadd.f32 %v4333_v17, %v4289_v13  ;;  %v5672_v4 = vpop.f32.mrb[167].mxu1 }
0x1106   :  { %v3842_v27 = vmul.f32 1.442695, %v3840_v8  ;;  %v3844_v49 = vmul.f32 1.442695, %v3841_v15 }
0x1107   :  { %v4338_v22 = vadd.f32 %v4756_v55, %v4334_v37  ;;  %v4339_v26 = vsel %vm3830_vm1, %v4337_v14, -inf }
0x1108   :  { %5964 = vpow2.f32 %v3842_v27 }
0x1109   :  { %5966 = vpow2.f32 %v3844_v49  ;;  %v4340_v30 = vsel %vm3830_vm1, %v4338_v22, -inf }
0x110a   :  { %v4341_v31 = vmax.f32 %v4339_v26, %v4340_v30 }
0x110c   :  { %v4342_v32 = vrot.slane %v4341_v31, 4 }
0x110e   :  { %v4343_v43 = vmax.f32 %v4341_v31, %v4342_v32 }
0x1110   :  { %v4344_v46 = vrot.slane %v4343_v43, 2 }
0x1112   :  { %v5965_v3 = vpop.eup %5964  ;;  %v4345_v56 = vmax.f32 %v4343_v43, %v4344_v46 }
0x1113   :  { %v5967_v52 = vpop.eup %5966  ;;  %v3846_v62 = vsel %vm3830_vm1, %v5965_v3, 0.0 }
0x1114   :  { %v3847_v1 = vsel %vm3830_vm1, %v5967_v52, 0.0  ;;  %v4346_v41 = vrot.slane %v4345_v56, 1 }
0x1115   :  { %v3848_v42 = vadd.f32 %v3847_v1, %v3846_v62 }
0x1116   :  { %v4347_v47 = vmax.f32 %v4345_v56, %v4346_v41 }
0x1117   :  { %v3849_v20 = vrot.slane %v3848_v42, 4 }
0x1118   :  { %v4348_v54 = vsub.f32 %v4337_v14, %v4347_v47  ;;  %v4349_v29 = vsub.f32 %v4338_v22, %v4347_v47 }
0x1119   :  { %v3850_v0 = vadd.f32 %v3849_v20, %v3848_v42 }
0x111a   :  { %v4350_v60 = vmul.f32 1.442695, %v4348_v54  ;;  %v4352_v24 = vmul.f32 1.442695, %v4349_v29 }
0x111b   :  { %v3851_v5 = vrot.slane %v3850_v0, 2 }
0x111c   :  { %5968 = vpow2.f32 %v4350_v60 }
0x111d   :  { %v3852_v16 = vadd.f32 %v3851_v5, %v3850_v0  ;;  %5970 = vpow2.f32 %v4352_v24 }
0x111f   :  { %v3853_v38 = vrot.slane %v3852_v16, 1 }
0x1121   :  { %v3854_v40 = vadd.f32 %v3853_v38, %v3852_v16 }
0x1123   :  { %5972 = vrcp.f32 %v3854_v40 }
0x1126   :  { %v5969_v33 = vpop.eup %5968 }
0x1127   :  { %v5971_v35 = vpop.eup %5970  ;;  %v4354_v55 = vsel %vm3830_vm1, %v5969_v33, 0.0 }
0x1128   :  { %v4355_v51 = vsel %vm3830_vm1, %v5971_v35, 0.0 }
0x1129   :  { %v4356_v57 = vadd.f32 %v4355_v51, %v4354_v55 }
0x112b   :  { %v4357_v59 = vrot.slane %v4356_v57, 4 }
0x112d   :  { %v5973_v23 = vpop.eup %5972  ;;  %v4358_v18 = vadd.f32 %v4357_v59, %v4356_v57 }
0x112e   :  { %v3857_v61 = vmul.f32 %v5973_v23, %v5967_v52  ;;  %v3856_v12 = vmul.f32 %v5973_v23, %v5965_v3 }
0x112f   :  { %v4359_v63 = vrot.slane %v4358_v18, 2 }
0x1130   :  { %v3858_v25 = vmul.f32 %v3856_v12, %v3326_v39  ;;  %v3859_v7 = vmul.f32 %v3857_v61, %v3327_v28 }
0x1131   :  { %v4360_v48 = vadd.f32 %v4359_v63, %v4358_v18 }
0x1132   :  { %v3860_v11 = vsel %vm3830_vm1, %v3858_v25, 0.0  ;;  %v3861_v19 = vsel %vm3830_vm1, %v3859_v7, 0.0 }
0x1133   :  { %v4361_v44 = vrot.slane %v4360_v48, 1  ;;  %v3862_v58 = vadd.f32 %v3861_v19, %v3860_v11 }
0x1135   :  { %v4362_v34 = vadd.f32 %v4361_v44, %v4360_v48  ;;  %v3863_v45 = vrot.slane %v3862_v58, 4 }
0x1137   :  { %5974 = vrcp.f32 %v4362_v34  ;;  %v3864_v36 = vadd.f32 %v3863_v45, %v3862_v58 }
0x1139   :  { %v3865_v21 = vrot.slane %v3864_v36, 2 }
0x113b   :  { %v3866_v8 = vadd.f32 %v3865_v21, %v3864_v36 }
0x113d   :  { %v3867_v14 = vrot.slane %v3866_v8, 1 }
0x113f   :  { %v3868_v27 = vadd.f32 %v3867_v14, %v3866_v8 }
0x1141   :  { %v5975_v13 = vpop.eup %5974  ;;  %v3869_v26 = vadd.f32 0.5, %v3868_v27 }
0x1142   :  { %v4365_v50 = vmul.f32 %v5975_v13, %v5971_v35  ;;  %v4364_v53 = vmul.f32 %v5975_v13, %v5969_v33 }
0x1143   :  { %v3870_v32 = vmul.f32 4.0, %v3869_v26 }
0x1144   :  { %v4366_v2 = vmul.f32 %v4364_v53, %v3326_v39  ;;  %v4367_v6 = vmul.f32 %v4365_v50, %v3327_v28 }
0x1146   :  { %v4368_v9 = vsel %vm3830_vm1, %v4366_v2, 0.0  ;;  %v4369_v10 = vsel %vm3830_vm1, %v4367_v6, 0.0 }
0x1147   :  { %v4370_v15 = vadd.f32 %v4369_v10, %v4368_v9 }
0x1149   :  { %v4371_v17 = vrot.slane %v4370_v15, 4 }
0x114b   :  { %v4372_v37 = vadd.f32 %v4371_v17, %v4370_v15 }
0x114d   :  { %v4373_v4 = vrot.slane %v4372_v37, 2 }
0x114f   :  { %v4374_v49 = vadd.f32 %v4373_v4, %v4372_v37 }
0x1151   :  { %v4375_v22 = vrot.slane %v4374_v49, 1 }
0x1153   :  { %v4376_v30 = vadd.f32 %v4375_v22, %v4374_v49 }
0x1155   :  { %v4377_v31 = vadd.f32 0.5, %v4376_v30 }
0x1157   :  { %v4378_v43 = vmul.f32 4.0, %v4377_v31 }
0x1159   :  { %v4385_v46 = vsel %vm366_vm0, %v3870_v32, %v4378_v43 }
0x115a   :  { %4387 = vst.msk [vmem:[#allocation2] sm:$0x3] %vm4386_vm3, %v4385_v46 }
0x115b   :  { %5995 = shalt.err (!%p5992_p4)
}
0x115c   :  { %s5996_s28 = scalar_lea.hbm %s7511_s16, 32 }
0x115d   :  { %p5997_p5 = scmp.ne.s32.totalorder %s7511_s16, %s5996_s28  ;;  %p6000_p6 = scmp.lt.u32.totalorder %s5996_s28, %s7511_s16 }
0x115f   :  { %p6002_p7 = pnand %p6000_p6, %p5997_p5 }
0x1161   :  { %6005 = shalt.err (!%p6002_p7)
}
0x1162   :  { %4399 = dma.vmem_to_hbm [thread:$0]  %s4397_s24, 32, %s7511_s16, [#allocation3]  }
0x1163   :  { %6006 = dma.done.wait [#allocation3], 32  }
0x1164   :  { %6007 = vsyncadd [#allocation3], 4294967264 }
0x1165   :  { %4405 = vsyncpa [#allocation3], 1 }

</bundles_post_ra>
